<compile_context>
chip_gen: v7x
topology: tpu7x:2x2x1
jax: 0.10.0
libtpu: 0.0.40
codegen_flags: <defaults>
</compile_context>

<pallas_src>
import jax
import jax.numpy as jnp
from jax import lax
from jax.experimental import pallas as pl
from jax.experimental.pallas import tpu as pltpu

BN_EPS = 1e-5
L2_EPS = 1e-12  # F.normalize default eps

H1, H2, H3, H4 = 512, 768, 768, 512  # hidden widths from the PyTorch module
EMB_PAD = 128                         # embedding_dim padded to one full lane row


def _round_up(x, m):
    return (x + m - 1) // m * m


def _gelu(x):
    # exact (erf-based) GELU, matching torch.nn.GELU() default
    return 0.5 * x * (1.0 + lax.erf(x * (1.0 / jnp.sqrt(2.0).astype(x.dtype))))


def _batchnorm(x, gamma, beta):
    # training-mode BatchNorm1d, scale/shift form, single-pass statistics
    mean = jnp.mean(x, axis=0, keepdims=True)
    var = jnp.mean(x * x, axis=0, keepdims=True) - mean * mean
    scale = gamma * lax.rsqrt(var + BN_EPS)
    shift = beta - mean * scale
    return x * scale + shift


def _packed_layout(dims_out):
    """Static (offset, size) layout of the packed (1, total) f32 vector."""
    d1, d2, d3, d4, d5 = dims_out
    names = ["b1", "b2", "b3", "b4", "b5",
             "g1", "be1", "g2", "be2", "g3", "be3", "g4", "be4"]
    sizes = [d1, d2, d3, d4, d5, d1, d1, d2, d2, d3, d3, d4, d4]
    layout, off = {}, 0
    for n, s in zip(names, sizes):
        layout[n] = (off, s)          # all sizes multiples of 128 -> lane-aligned
        off += s
    return layout, off


def _layer(h, w_bf16, bias, gamma, beta):
    # bf16 MXU operands, f32 accumulation, f32 elementwise chain
    h = jnp.dot(h.astype(jnp.bfloat16), w_bf16,
                preferred_element_type=jnp.float32) + bias
    return _batchnorm(_gelu(h), gamma, beta)


def rec_kernel(idx_ref, table_ref, w1_ref, w2_hbm, w3_hbm, w4_hbm, w5_hbm,
               vec_ref, out_ref,
               emb_ref, w2_buf, w3_buf, w4_buf, w5_buf, dma_sems):
    cp2 = pltpu.make_async_copy(w2_hbm, w2_buf, dma_sems.at[0])
    cp3 = pltpu.make_async_copy(w3_hbm, w3_buf, dma_sems.at[1])
    cp4 = pltpu.make_async_copy(w4_hbm, w4_buf, dma_sems.at[2])
    cp5 = pltpu.make_async_copy(w5_hbm, w5_buf, dma_sems.at[3])
    # Stagger the big-weight DMAs: only two copies in flight at a time, so w2
    # (needed first) is not bandwidth-starved by w4/w5, while later copies are
    # issued as earlier ones land -> the HBM engine never idles and the tail of
    # the transfer hides under layer-2..4 compute.
    cp2.start()
    cp3.start()

    # Embedding lookup: row gather driven by SMEM scalar indices. Rows are a
    # full 128-lane vector thanks to the padded embedding dim.
    B = emb_ref.shape[0]
    for i in range(B):  # small static batch; unrolls fine
        emb_ref[pl.ds(i, 1), :] = table_ref[pl.ds(idx_ref[i], 1), :]

    emb = emb_ref[...]
    # F.normalize(p=2, dim=-1): x / max(||x||_2, eps); zero padding is inert.
    norm = jnp.sqrt(jnp.sum(emb * emb, axis=-1, keepdims=True))
    emb = emb / jnp.maximum(norm, L2_EPS)

    dims_out = (w1_ref.shape[1], w2_buf.shape[1], w3_buf.shape[1],
                w4_buf.shape[1], w5_buf.shape[1])
    layout, _ = _packed_layout(dims_out)

    def vec(name):
        # Lazy, lane-aligned slice straight from the VMEM ref (no big live load).
        off, size = layout[name]
        return vec_ref[:, off:off + size]

    h = _layer(emb, w1_ref[...], vec("b1"), vec("g1"), vec("be1"))

    cp2.wait()
    cp4.start()
    h = _layer(h, w2_buf[...], vec("b2"), vec("g2"), vec("be2"))

    cp3.wait()
    cp5.start()
    h = _layer(h, w3_buf[...], vec("b3"), vec("g3"), vec("be3"))

    cp4.wait()
    h = _layer(h, w4_buf[...], vec("b4"), vec("g4"), vec("be4"))

    cp5.wait()
    # Lane-dense (padded to 128) output block; wrapper slices back to n_items.
    out_ref[...] = jnp.dot(h.astype(jnp.bfloat16), w5_buf[...],
                           preferred_element_type=jnp.float32) + vec("b5")


def init_params(key, n_items=100, n_people=10, embedding_dim=10):
    """Deterministic parameter init matching the PyTorch module's shapes."""
    ks = jax.random.split(key, 6)

    def linear(k, fan_in, fan_out):
        k1, k2 = jax.random.split(k)
        bound = 1.0 / jnp.sqrt(jnp.float32(fan_in))
        w = jax.random.uniform(k1, (fan_in, fan_out), jnp.float32, -bound, bound)
        b = jax.random.uniform(k2, (1, fan_out), jnp.float32, -bound, bound)
        return w, b

    n_out_pad = _round_up(n_items, 128)

    table = jax.random.normal(ks[0], (n_people, embedding_dim), jnp.float32)
    w1, b1 = linear(ks[1], embedding_dim, H1)
    w2, b2 = linear(ks[2], H1, H2)
    w3, b3 = linear(ks[3], H2, H3)
    w4, b4 = linear(ks[4], H3, H4)
    w5, b5 = linear(ks[5], H4, n_items)

    # Pad embedding dim to a full 128-lane row (zeros do not change the L2 norm)
    # and pad w1 rows to match.
    table_p = jnp.zeros((n_people, EMB_PAD), jnp.float32).at[:, :embedding_dim].set(table)
    w1p = jnp.zeros((EMB_PAD, H1), jnp.float32).at[:embedding_dim, :].set(w1)

    # Zero-pad the final layer to a lane-dense 128-multiple output width.
    w5p = jnp.zeros((H4, n_out_pad), jnp.float32).at[:, :n_items].set(w5)
    b5p = jnp.zeros((1, n_out_pad), jnp.float32).at[:, :n_items].set(b5)

    ones = lambda d: jnp.ones((1, d), jnp.float32)
    zeros = lambda d: jnp.zeros((1, d), jnp.float32)
    g1, be1 = ones(H1), zeros(H1)
    g2, be2 = ones(H2), zeros(H2)
    g3, be3 = ones(H3), zeros(H3)
    g4, be4 = ones(H4), zeros(H4)

    # Pack all small per-feature vectors into a single f32 array (one DMA).
    packed = jnp.concatenate(
        [b1, b2, b3, b4, b5p, g1, be1, g2, be2, g3, be3, g4, be4], axis=-1)

    return dict(
        table=table_p,                      # f32, tiny, lane-padded
        w1=w1p.astype(jnp.bfloat16),        # bf16 weight storage halves HBM bytes
        w2=w2.astype(jnp.bfloat16),
        w3=w3.astype(jnp.bfloat16),
        w4=w4.astype(jnp.bfloat16),
        w5=w5p.astype(jnp.bfloat16),
        packed=packed,                      # f32 biases + BN gamma/beta
    )


def rec_forward(people_idx, params, n_items):
    B = people_idx.shape[0]
    table = params["table"]
    w1, w2, w3, w4, w5 = (params[k] for k in ("w1", "w2", "w3", "w4", "w5"))
    packed = params["packed"]
    emb_pad = table.shape[1]
    n_out_pad = w5.shape[1]

    # Clamp indices: TPU VMEM reads do not fault on OOB, so guard untrusted ids.
    idx = jnp.clip(people_idx.astype(jnp.int32), 0, table.shape[0] - 1)

    vmem = pl.BlockSpec(memory_space=pltpu.MemorySpace.VMEM)
    smem = pl.BlockSpec(memory_space=pltpu.MemorySpace.SMEM)
    hbm = pl.BlockSpec(memory_space=pl.ANY)   # big weights: manual DMA in-kernel

    out = pl.pallas_call(
        rec_kernel,
        out_shape=jax.ShapeDtypeStruct((B, n_out_pad), jnp.float32),
        in_specs=[smem,   # people indices -> SMEM scalars (drives the gather)
                  vmem,   # embedding table (tiny, f32, lane-padded)
                  vmem,   # w1 (small, bf16, lane-padded rows)
                  hbm, hbm, hbm, hbm,   # w2..w5: manually prefetched
                  vmem],  # packed biases / BN params (f32), sliced lazily
        out_specs=vmem,
        scratch_shapes=[
            pltpu.VMEM((B, emb_pad), jnp.float32),   # gathered embeddings
            pltpu.VMEM(w2.shape, w2.dtype),          # w2 landing buffer
            pltpu.VMEM(w3.shape, w3.dtype),          # w3 landing buffer
            pltpu.VMEM(w4.shape, w4.dtype),          # w4 landing buffer
            pltpu.VMEM(w5.shape, w5.dtype),          # w5 landing buffer
            pltpu.SemaphoreType.DMA((4,)),
        ],
    )(idx, table, w1, w2, w3, w4, w5, packed)
    return out[:, :n_items]


def rec_reference(people_idx, params, n_items):
    """Pure-JAX reference with identical numerics (bf16 MXU operands, f32 else)."""
    table, packed = params["table"], params["packed"]
    w = [params[k] for k in ("w1", "w2", "w3", "w4", "w5")]
    dims_out = tuple(wi.shape[1] for wi in w)
    layout, _ = _packed_layout(dims_out)

    def vec(name):
        off, size = layout[name]
        return packed[:, off:off + size]

    idx = jnp.clip(people_idx.astype(jnp.int32), 0, table.shape[0] - 1)
    emb = table[idx]
    norm = jnp.sqrt(jnp.sum(emb * emb, axis=-1, keepdims=True))
    emb = emb / jnp.maximum(norm, L2_EPS)

    h = _layer(emb, w[0], vec("b1"), vec("g1"), vec("be1"))
    h = _layer(h, w[1], vec("b2"), vec("g2"), vec("be2"))
    h = _layer(h, w[2], vec("b3"), vec("g3"), vec("be3"))
    h = _layer(h, w[3], vec("b4"), vec("g4"), vec("be4"))
    out = jnp.dot(h.astype(jnp.bfloat16), w[4],
                  preferred_element_type=jnp.float32) + vec("b5")
    return out[:, :n_items]


if __name__ == "__main__":
    key = jax.random.PRNGKey(0)
    pkey, ikey = jax.random.split(key)

    n_items, n_people, embedding_dim = 100, 10, 10
    batch = 32  # kernel is weight-DMA bound: larger B is ~free (BN = one block)

    params = init_params(pkey, n_items=n_items, n_people=n_people,
                         embedding_dim=embedding_dim)
    people = jax.random.randint(ikey, (batch,), 0, n_people, dtype=jnp.int32)

    out = jax.block_until_ready(rec_forward(people, params, n_items))
    assert out.shape == (batch, n_items), out.shape
    assert bool(jnp.all(jnp.isfinite(out)))

    ref = jax.block_until_ready(rec_reference(people, params, n_items))
    max_err = float(jnp.max(jnp.abs(out - ref)))
    assert max_err < 5e-2, f"mismatch vs reference: {max_err}"

    print("KERNEL_OK")
</pallas_src>

<mosaic_0001>
module attributes {stable_mosaic.version = 11 : i64} {
  func.func @rec_kernel(%arg0: memref<32xi32, #tpu.memory_space<smem>>, %arg1: memref<10x128xf32, #tpu.memory_space<vmem>>, %arg2: memref<128x512xbf16, #tpu.memory_space<vmem>>, %arg3: memref<512x768xbf16, #tpu.memory_space<any>>, %arg4: memref<768x768xbf16, #tpu.memory_space<any>>, %arg5: memref<768x512xbf16, #tpu.memory_space<any>>, %arg6: memref<512x128xbf16, #tpu.memory_space<any>>, %arg7: memref<1x7808xf32, #tpu.memory_space<vmem>>, %arg8: memref<32x128xf32, #tpu.memory_space<vmem>>, %arg9: memref<32x128xf32, #tpu.memory_space<vmem>>, %arg10: memref<512x768xbf16, #tpu.memory_space<vmem>>, %arg11: memref<768x768xbf16, #tpu.memory_space<vmem>>, %arg12: memref<768x512xbf16, #tpu.memory_space<vmem>>, %arg13: memref<512x128xbf16, #tpu.memory_space<vmem>>, %arg14: memref<4x!tpu.dma_semaphore, #tpu.memory_space<semaphore_mem>>) attributes {dimension_semantics = [], scalar_prefetch = 0 : i64, scratch_operands = 6 : i64, tpu.core_type = #tpu.core_type<tc>} {
    %c0_i32 = arith.constant 0 : i32
    %0 = tpu.memref_slice %arg14[%c0_i32] : memref<4x!tpu.dma_semaphore, #tpu.memory_space<semaphore_mem>> -> memref<1x!tpu.dma_semaphore, #tpu.memory_space<semaphore_mem>>
    %1 = tpu.memref_squeeze %0 : memref<1x!tpu.dma_semaphore, #tpu.memory_space<semaphore_mem>> -> memref<!tpu.dma_semaphore, #tpu.memory_space<semaphore_mem>>
    tpu.enqueue_dma source(%arg3 : memref<512x768xbf16, #tpu.memory_space<any>>) target(%arg10 : memref<512x768xbf16, #tpu.memory_space<vmem>>) target_semaphore(%1 : memref<!tpu.dma_semaphore, #tpu.memory_space<semaphore_mem>>)
    %c1_i32 = arith.constant 1 : i32
    %2 = tpu.memref_slice %arg14[%c1_i32] : memref<4x!tpu.dma_semaphore, #tpu.memory_space<semaphore_mem>> -> memref<1x!tpu.dma_semaphore, #tpu.memory_space<semaphore_mem>>
    %3 = tpu.memref_squeeze %2 : memref<1x!tpu.dma_semaphore, #tpu.memory_space<semaphore_mem>> -> memref<!tpu.dma_semaphore, #tpu.memory_space<semaphore_mem>>
    tpu.enqueue_dma source(%arg4 : memref<768x768xbf16, #tpu.memory_space<any>>) target(%arg11 : memref<768x768xbf16, #tpu.memory_space<vmem>>) target_semaphore(%3 : memref<!tpu.dma_semaphore, #tpu.memory_space<semaphore_mem>>)
    %c0 = arith.constant 0 : index
    %4 = memref.load %arg0[%c0] : memref<32xi32, #tpu.memory_space<smem>>
    %5 = arith.index_cast %4 : i32 to index
    %c0_0 = arith.constant 0 : index
    %6 = vector.load %arg1[%5, %c0_0] : memref<10x128xf32, #tpu.memory_space<vmem>>, vector<1x128xf32>
    %c0_1 = arith.constant 0 : index
    %c0_2 = arith.constant 0 : index
    %7 = vector.load %arg9[%c0_1, %c0_2] : memref<32x128xf32, #tpu.memory_space<vmem>>, vector<1x128xf32>
    tpu.vector_store %arg9[%c0_1, %c0_2], %6 {strides = array<i32>} : memref<32x128xf32, #tpu.memory_space<vmem>>, vector<1x128xf32>,
    %c1 = arith.constant 1 : index
    %8 = memref.load %arg0[%c1] : memref<32xi32, #tpu.memory_space<smem>>
    %9 = arith.index_cast %8 : i32 to index
    %c0_3 = arith.constant 0 : index
    %10 = vector.load %arg1[%9, %c0_3] : memref<10x128xf32, #tpu.memory_space<vmem>>, vector<1x128xf32>
    %c1_4 = arith.constant 1 : index
    %c0_5 = arith.constant 0 : index
    %11 = vector.load %arg9[%c1_4, %c0_5] : memref<32x128xf32, #tpu.memory_space<vmem>>, vector<1x128xf32>
    tpu.vector_store %arg9[%c1_4, %c0_5], %10 {strides = array<i32>} : memref<32x128xf32, #tpu.memory_space<vmem>>, vector<1x128xf32>,
    %c2 = arith.constant 2 : index
    %12 = memref.load %arg0[%c2] : memref<32xi32, #tpu.memory_space<smem>>
    %13 = arith.index_cast %12 : i32 to index
    %c0_6 = arith.constant 0 : index
    %14 = vector.load %arg1[%13, %c0_6] : memref<10x128xf32, #tpu.memory_space<vmem>>, vector<1x128xf32>
    %c2_7 = arith.constant 2 : index
    %c0_8 = arith.constant 0 : index
    %15 = vector.load %arg9[%c2_7, %c0_8] : memref<32x128xf32, #tpu.memory_space<vmem>>, vector<1x128xf32>
    tpu.vector_store %arg9[%c2_7, %c0_8], %14 {strides = array<i32>} : memref<32x128xf32, #tpu.memory_space<vmem>>, vector<1x128xf32>,
    %c3 = arith.constant 3 : index
    %16 = memref.load %arg0[%c3] : memref<32xi32, #tpu.memory_space<smem>>
    %17 = arith.index_cast %16 : i32 to index
    %c0_9 = arith.constant 0 : index
    %18 = vector.load %arg1[%17, %c0_9] : memref<10x128xf32, #tpu.memory_space<vmem>>, vector<1x128xf32>
    %c3_10 = arith.constant 3 : index
    %c0_11 = arith.constant 0 : index
    %19 = vector.load %arg9[%c3_10, %c0_11] : memref<32x128xf32, #tpu.memory_space<vmem>>, vector<1x128xf32>
    tpu.vector_store %arg9[%c3_10, %c0_11], %18 {strides = array<i32>} : memref<32x128xf32, #tpu.memory_space<vmem>>, vector<1x128xf32>,
    %c4 = arith.constant 4 : index
    %20 = memref.load %arg0[%c4] : memref<32xi32, #tpu.memory_space<smem>>
    %21 = arith.index_cast %20 : i32 to index
    %c0_12 = arith.constant 0 : index
    %22 = vector.load %arg1[%21, %c0_12] : memref<10x128xf32, #tpu.memory_space<vmem>>, vector<1x128xf32>
    %c4_13 = arith.constant 4 : index
    %c0_14 = arith.constant 0 : index
    %23 = vector.load %arg9[%c4_13, %c0_14] : memref<32x128xf32, #tpu.memory_space<vmem>>, vector<1x128xf32>
    tpu.vector_store %arg9[%c4_13, %c0_14], %22 {strides = array<i32>} : memref<32x128xf32, #tpu.memory_space<vmem>>, vector<1x128xf32>,
    %c5 = arith.constant 5 : index
    %24 = memref.load %arg0[%c5] : memref<32xi32, #tpu.memory_space<smem>>
    %25 = arith.index_cast %24 : i32 to index
    %c0_15 = arith.constant 0 : index
    %26 = vector.load %arg1[%25, %c0_15] : memref<10x128xf32, #tpu.memory_space<vmem>>, vector<1x128xf32>
    %c5_16 = arith.constant 5 : index
    %c0_17 = arith.constant 0 : index
    %27 = vector.load %arg9[%c5_16, %c0_17] : memref<32x128xf32, #tpu.memory_space<vmem>>, vector<1x128xf32>
    tpu.vector_store %arg9[%c5_16, %c0_17], %26 {strides = array<i32>} : memref<32x128xf32, #tpu.memory_space<vmem>>, vector<1x128xf32>,
    %c6 = arith.constant 6 : index
    %28 = memref.load %arg0[%c6] : memref<32xi32, #tpu.memory_space<smem>>
    %29 = arith.index_cast %28 : i32 to index
    %c0_18 = arith.constant 0 : index
    %30 = vector.load %arg1[%29, %c0_18] : memref<10x128xf32, #tpu.memory_space<vmem>>, vector<1x128xf32>
    %c6_19 = arith.constant 6 : index
    %c0_20 = arith.constant 0 : index
    %31 = vector.load %arg9[%c6_19, %c0_20] : memref<32x128xf32, #tpu.memory_space<vmem>>, vector<1x128xf32>
    tpu.vector_store %arg9[%c6_19, %c0_20], %30 {strides = array<i32>} : memref<32x128xf32, #tpu.memory_space<vmem>>, vector<1x128xf32>,
    %c7 = arith.constant 7 : index
    %32 = memref.load %arg0[%c7] : memref<32xi32, #tpu.memory_space<smem>>
    %33 = arith.index_cast %32 : i32 to index
    %c0_21 = arith.constant 0 : index
    %34 = vector.load %arg1[%33, %c0_21] : memref<10x128xf32, #tpu.memory_space<vmem>>, vector<1x128xf32>
    %c7_22 = arith.constant 7 : index
    %c0_23 = arith.constant 0 : index
    %35 = vector.load %arg9[%c7_22, %c0_23] : memref<32x128xf32, #tpu.memory_space<vmem>>, vector<1x128xf32>
    tpu.vector_store %arg9[%c7_22, %c0_23], %34 {strides = array<i32>} : memref<32x128xf32, #tpu.memory_space<vmem>>, vector<1x128xf32>,
    %c8 = arith.constant 8 : index
    %36 = memref.load %arg0[%c8] : memref<32xi32, #tpu.memory_space<smem>>
    %37 = arith.index_cast %36 : i32 to index
    %c0_24 = arith.constant 0 : index
    %38 = vector.load %arg1[%37, %c0_24] : memref<10x128xf32, #tpu.memory_space<vmem>>, vector<1x128xf32>
    %c8_25 = arith.constant 8 : index
    %c0_26 = arith.constant 0 : index
    %39 = vector.load %arg9[%c8_25, %c0_26] : memref<32x128xf32, #tpu.memory_space<vmem>>, vector<1x128xf32>
    tpu.vector_store %arg9[%c8_25, %c0_26], %38 {strides = array<i32>} : memref<32x128xf32, #tpu.memory_space<vmem>>, vector<1x128xf32>,
    %c9 = arith.constant 9 : index
    %40 = memref.load %arg0[%c9] : memref<32xi32, #tpu.memory_space<smem>>
    %41 = arith.index_cast %40 : i32 to index
    %c0_27 = arith.constant 0 : index
    %42 = vector.load %arg1[%41, %c0_27] : memref<10x128xf32, #tpu.memory_space<vmem>>, vector<1x128xf32>
    %c9_28 = arith.constant 9 : index
    %c0_29 = arith.constant 0 : index
    %43 = vector.load %arg9[%c9_28, %c0_29] : memref<32x128xf32, #tpu.memory_space<vmem>>, vector<1x128xf32>
    tpu.vector_store %arg9[%c9_28, %c0_29], %42 {strides = array<i32>} : memref<32x128xf32, #tpu.memory_space<vmem>>, vector<1x128xf32>,
    %c10 = arith.constant 10 : index
    %44 = memref.load %arg0[%c10] : memref<32xi32, #tpu.memory_space<smem>>
    %45 = arith.index_cast %44 : i32 to index
    %c0_30 = arith.constant 0 : index
    %46 = vector.load %arg1[%45, %c0_30] : memref<10x128xf32, #tpu.memory_space<vmem>>, vector<1x128xf32>
    %c10_31 = arith.constant 10 : index
    %c0_32 = arith.constant 0 : index
    %47 = vector.load %arg9[%c10_31, %c0_32] : memref<32x128xf32, #tpu.memory_space<vmem>>, vector<1x128xf32>
    tpu.vector_store %arg9[%c10_31, %c0_32], %46 {strides = array<i32>} : memref<32x128xf32, #tpu.memory_space<vmem>>, vector<1x128xf32>,
    %c11 = arith.constant 11 : index
    %48 = memref.load %arg0[%c11] : memref<32xi32, #tpu.memory_space<smem>>
    %49 = arith.index_cast %48 : i32 to index
    %c0_33 = arith.constant 0 : index
    %50 = vector.load %arg1[%49, %c0_33] : memref<10x128xf32, #tpu.memory_space<vmem>>, vector<1x128xf32>
    %c11_34 = arith.constant 11 : index
    %c0_35 = arith.constant 0 : index
    %51 = vector.load %arg9[%c11_34, %c0_35] : memref<32x128xf32, #tpu.memory_space<vmem>>, vector<1x128xf32>
    tpu.vector_store %arg9[%c11_34, %c0_35], %50 {strides = array<i32>} : memref<32x128xf32, #tpu.memory_space<vmem>>, vector<1x128xf32>,
    %c12 = arith.constant 12 : index
    %52 = memref.load %arg0[%c12] : memref<32xi32, #tpu.memory_space<smem>>
    %53 = arith.index_cast %52 : i32 to index
    %c0_36 = arith.constant 0 : index
    %54 = vector.load %arg1[%53, %c0_36] : memref<10x128xf32, #tpu.memory_space<vmem>>, vector<1x128xf32>
    %c12_37 = arith.constant 12 : index
    %c0_38 = arith.constant 0 : index
    %55 = vector.load %arg9[%c12_37, %c0_38] : memref<32x128xf32, #tpu.memory_space<vmem>>, vector<1x128xf32>
    tpu.vector_store %arg9[%c12_37, %c0_38], %54 {strides = array<i32>} : memref<32x128xf32, #tpu.memory_space<vmem>>, vector<1x128xf32>,
    %c13 = arith.constant 13 : index
    %56 = memref.load %arg0[%c13] : memref<32xi32, #tpu.memory_space<smem>>
    %57 = arith.index_cast %56 : i32 to index
    %c0_39 = arith.constant 0 : index
    %58 = vector.load %arg1[%57, %c0_39] : memref<10x128xf32, #tpu.memory_space<vmem>>, vector<1x128xf32>
    %c13_40 = arith.constant 13 : index
    %c0_41 = arith.constant 0 : index
    %59 = vector.load %arg9[%c13_40, %c0_41] : memref<32x128xf32, #tpu.memory_space<vmem>>, vector<1x128xf32>
    tpu.vector_store %arg9[%c13_40, %c0_41], %58 {strides = array<i32>} : memref<32x128xf32, #tpu.memory_space<vmem>>, vector<1x128xf32>,
    %c14 = arith.constant 14 : index
    %60 = memref.load %arg0[%c14] : memref<32xi32, #tpu.memory_space<smem>>
    %61 = arith.index_cast %60 : i32 to index
    %c0_42 = arith.constant 0 : index
    %62 = vector.load %arg1[%61, %c0_42] : memref<10x128xf32, #tpu.memory_space<vmem>>, vector<1x128xf32>
    %c14_43 = arith.constant 14 : index
    %c0_44 = arith.constant 0 : index
    %63 = vector.load %arg9[%c14_43, %c0_44] : memref<32x128xf32, #tpu.memory_space<vmem>>, vector<1x128xf32>
    tpu.vector_store %arg9[%c14_43, %c0_44], %62 {strides = array<i32>} : memref<32x128xf32, #tpu.memory_space<vmem>>, vector<1x128xf32>,
    %c15 = arith.constant 15 : index
    %64 = memref.load %arg0[%c15] : memref<32xi32, #tpu.memory_space<smem>>
    %65 = arith.index_cast %64 : i32 to index
    %c0_45 = arith.constant 0 : index
    %66 = vector.load %arg1[%65, %c0_45] : memref<10x128xf32, #tpu.memory_space<vmem>>, vector<1x128xf32>
    %c15_46 = arith.constant 15 : index
    %c0_47 = arith.constant 0 : index
    %67 = vector.load %arg9[%c15_46, %c0_47] : memref<32x128xf32, #tpu.memory_space<vmem>>, vector<1x128xf32>
    tpu.vector_store %arg9[%c15_46, %c0_47], %66 {strides = array<i32>} : memref<32x128xf32, #tpu.memory_space<vmem>>, vector<1x128xf32>,
    %c16 = arith.constant 16 : index
    %68 = memref.load %arg0[%c16] : memref<32xi32, #tpu.memory_space<smem>>
    %69 = arith.index_cast %68 : i32 to index
    %c0_48 = arith.constant 0 : index
    %70 = vector.load %arg1[%69, %c0_48] : memref<10x128xf32, #tpu.memory_space<vmem>>, vector<1x128xf32>
    %c16_49 = arith.constant 16 : index
    %c0_50 = arith.constant 0 : index
    %71 = vector.load %arg9[%c16_49, %c0_50] : memref<32x128xf32, #tpu.memory_space<vmem>>, vector<1x128xf32>
    tpu.vector_store %arg9[%c16_49, %c0_50], %70 {strides = array<i32>} : memref<32x128xf32, #tpu.memory_space<vmem>>, vector<1x128xf32>,
    %c17 = arith.constant 17 : index
    %72 = memref.load %arg0[%c17] : memref<32xi32, #tpu.memory_space<smem>>
    %73 = arith.index_cast %72 : i32 to index
    %c0_51 = arith.constant 0 : index
    %74 = vector.load %arg1[%73, %c0_51] : memref<10x128xf32, #tpu.memory_space<vmem>>, vector<1x128xf32>
    %c17_52 = arith.constant 17 : index
    %c0_53 = arith.constant 0 : index
    %75 = vector.load %arg9[%c17_52, %c0_53] : memref<32x128xf32, #tpu.memory_space<vmem>>, vector<1x128xf32>
    tpu.vector_store %arg9[%c17_52, %c0_53], %74 {strides = array<i32>} : memref<32x128xf32, #tpu.memory_space<vmem>>, vector<1x128xf32>,
    %c18 = arith.constant 18 : index
    %76 = memref.load %arg0[%c18] : memref<32xi32, #tpu.memory_space<smem>>
    %77 = arith.index_cast %76 : i32 to index
    %c0_54 = arith.constant 0 : index
    %78 = vector.load %arg1[%77, %c0_54] : memref<10x128xf32, #tpu.memory_space<vmem>>, vector<1x128xf32>
    %c18_55 = arith.constant 18 : index
    %c0_56 = arith.constant 0 : index
    %79 = vector.load %arg9[%c18_55, %c0_56] : memref<32x128xf32, #tpu.memory_space<vmem>>, vector<1x128xf32>
    tpu.vector_store %arg9[%c18_55, %c0_56], %78 {strides = array<i32>} : memref<32x128xf32, #tpu.memory_space<vmem>>, vector<1x128xf32>,
    %c19 = arith.constant 19 : index
    %80 = memref.load %arg0[%c19] : memref<32xi32, #tpu.memory_space<smem>>
    %81 = arith.index_cast %80 : i32 to index
    %c0_57 = arith.constant 0 : index
    %82 = vector.load %arg1[%81, %c0_57] : memref<10x128xf32, #tpu.memory_space<vmem>>, vector<1x128xf32>
    %c19_58 = arith.constant 19 : index
    %c0_59 = arith.constant 0 : index
    %83 = vector.load %arg9[%c19_58, %c0_59] : memref<32x128xf32, #tpu.memory_space<vmem>>, vector<1x128xf32>
    tpu.vector_store %arg9[%c19_58, %c0_59], %82 {strides = array<i32>} : memref<32x128xf32, #tpu.memory_space<vmem>>, vector<1x128xf32>,
    %c20 = arith.constant 20 : index
    %84 = memref.load %arg0[%c20] : memref<32xi32, #tpu.memory_space<smem>>
    %85 = arith.index_cast %84 : i32 to index
    %c0_60 = arith.constant 0 : index
    %86 = vector.load %arg1[%85, %c0_60] : memref<10x128xf32, #tpu.memory_space<vmem>>, vector<1x128xf32>
    %c20_61 = arith.constant 20 : index
    %c0_62 = arith.constant 0 : index
    %87 = vector.load %arg9[%c20_61, %c0_62] : memref<32x128xf32, #tpu.memory_space<vmem>>, vector<1x128xf32>
    tpu.vector_store %arg9[%c20_61, %c0_62], %86 {strides = array<i32>} : memref<32x128xf32, #tpu.memory_space<vmem>>, vector<1x128xf32>,
    %c21 = arith.constant 21 : index
    %88 = memref.load %arg0[%c21] : memref<32xi32, #tpu.memory_space<smem>>
    %89 = arith.index_cast %88 : i32 to index
    %c0_63 = arith.constant 0 : index
    %90 = vector.load %arg1[%89, %c0_63] : memref<10x128xf32, #tpu.memory_space<vmem>>, vector<1x128xf32>
    %c21_64 = arith.constant 21 : index
    %c0_65 = arith.constant 0 : index
    %91 = vector.load %arg9[%c21_64, %c0_65] : memref<32x128xf32, #tpu.memory_space<vmem>>, vector<1x128xf32>
    tpu.vector_store %arg9[%c21_64, %c0_65], %90 {strides = array<i32>} : memref<32x128xf32, #tpu.memory_space<vmem>>, vector<1x128xf32>,
    %c22 = arith.constant 22 : index
    %92 = memref.load %arg0[%c22] : memref<32xi32, #tpu.memory_space<smem>>
    %93 = arith.index_cast %92 : i32 to index
    %c0_66 = arith.constant 0 : index
    %94 = vector.load %arg1[%93, %c0_66] : memref<10x128xf32, #tpu.memory_space<vmem>>, vector<1x128xf32>
    %c22_67 = arith.constant 22 : index
    %c0_68 = arith.constant 0 : index
    %95 = vector.load %arg9[%c22_67, %c0_68] : memref<32x128xf32, #tpu.memory_space<vmem>>, vector<1x128xf32>
    tpu.vector_store %arg9[%c22_67, %c0_68], %94 {strides = array<i32>} : memref<32x128xf32, #tpu.memory_space<vmem>>, vector<1x128xf32>,
    %c23 = arith.constant 23 : index
    %96 = memref.load %arg0[%c23] : memref<32xi32, #tpu.memory_space<smem>>
    %97 = arith.index_cast %96 : i32 to index
    %c0_69 = arith.constant 0 : index
    %98 = vector.load %arg1[%97, %c0_69] : memref<10x128xf32, #tpu.memory_space<vmem>>, vector<1x128xf32>
    %c23_70 = arith.constant 23 : index
    %c0_71 = arith.constant 0 : index
    %99 = vector.load %arg9[%c23_70, %c0_71] : memref<32x128xf32, #tpu.memory_space<vmem>>, vector<1x128xf32>
    tpu.vector_store %arg9[%c23_70, %c0_71], %98 {strides = array<i32>} : memref<32x128xf32, #tpu.memory_space<vmem>>, vector<1x128xf32>,
    %c24 = arith.constant 24 : index
    %100 = memref.load %arg0[%c24] : memref<32xi32, #tpu.memory_space<smem>>
    %101 = arith.index_cast %100 : i32 to index
    %c0_72 = arith.constant 0 : index
    %102 = vector.load %arg1[%101, %c0_72] : memref<10x128xf32, #tpu.memory_space<vmem>>, vector<1x128xf32>
    %c24_73 = arith.constant 24 : index
    %c0_74 = arith.constant 0 : index
    %103 = vector.load %arg9[%c24_73, %c0_74] : memref<32x128xf32, #tpu.memory_space<vmem>>, vector<1x128xf32>
    tpu.vector_store %arg9[%c24_73, %c0_74], %102 {strides = array<i32>} : memref<32x128xf32, #tpu.memory_space<vmem>>, vector<1x128xf32>,
    %c25 = arith.constant 25 : index
    %104 = memref.load %arg0[%c25] : memref<32xi32, #tpu.memory_space<smem>>
    %105 = arith.index_cast %104 : i32 to index
    %c0_75 = arith.constant 0 : index
    %106 = vector.load %arg1[%105, %c0_75] : memref<10x128xf32, #tpu.memory_space<vmem>>, vector<1x128xf32>
    %c25_76 = arith.constant 25 : index
    %c0_77 = arith.constant 0 : index
    %107 = vector.load %arg9[%c25_76, %c0_77] : memref<32x128xf32, #tpu.memory_space<vmem>>, vector<1x128xf32>
    tpu.vector_store %arg9[%c25_76, %c0_77], %106 {strides = array<i32>} : memref<32x128xf32, #tpu.memory_space<vmem>>, vector<1x128xf32>,
    %c26 = arith.constant 26 : index
    %108 = memref.load %arg0[%c26] : memref<32xi32, #tpu.memory_space<smem>>
    %109 = arith.index_cast %108 : i32 to index
    %c0_78 = arith.constant 0 : index
    %110 = vector.load %arg1[%109, %c0_78] : memref<10x128xf32, #tpu.memory_space<vmem>>, vector<1x128xf32>
    %c26_79 = arith.constant 26 : index
    %c0_80 = arith.constant 0 : index
    %111 = vector.load %arg9[%c26_79, %c0_80] : memref<32x128xf32, #tpu.memory_space<vmem>>, vector<1x128xf32>
    tpu.vector_store %arg9[%c26_79, %c0_80], %110 {strides = array<i32>} : memref<32x128xf32, #tpu.memory_space<vmem>>, vector<1x128xf32>,
    %c27 = arith.constant 27 : index
    %112 = memref.load %arg0[%c27] : memref<32xi32, #tpu.memory_space<smem>>
    %113 = arith.index_cast %112 : i32 to index
    %c0_81 = arith.constant 0 : index
    %114 = vector.load %arg1[%113, %c0_81] : memref<10x128xf32, #tpu.memory_space<vmem>>, vector<1x128xf32>
    %c27_82 = arith.constant 27 : index
    %c0_83 = arith.constant 0 : index
    %115 = vector.load %arg9[%c27_82, %c0_83] : memref<32x128xf32, #tpu.memory_space<vmem>>, vector<1x128xf32>
    tpu.vector_store %arg9[%c27_82, %c0_83], %114 {strides = array<i32>} : memref<32x128xf32, #tpu.memory_space<vmem>>, vector<1x128xf32>,
    %c28 = arith.constant 28 : index
    %116 = memref.load %arg0[%c28] : memref<32xi32, #tpu.memory_space<smem>>
    %117 = arith.index_cast %116 : i32 to index
    %c0_84 = arith.constant 0 : index
    %118 = vector.load %arg1[%117, %c0_84] : memref<10x128xf32, #tpu.memory_space<vmem>>, vector<1x128xf32>
    %c28_85 = arith.constant 28 : index
    %c0_86 = arith.constant 0 : index
    %119 = vector.load %arg9[%c28_85, %c0_86] : memref<32x128xf32, #tpu.memory_space<vmem>>, vector<1x128xf32>
    tpu.vector_store %arg9[%c28_85, %c0_86], %118 {strides = array<i32>} : memref<32x128xf32, #tpu.memory_space<vmem>>, vector<1x128xf32>,
    %c29 = arith.constant 29 : index
    %120 = memref.load %arg0[%c29] : memref<32xi32, #tpu.memory_space<smem>>
    %121 = arith.index_cast %120 : i32 to index
    %c0_87 = arith.constant 0 : index
    %122 = vector.load %arg1[%121, %c0_87] : memref<10x128xf32, #tpu.memory_space<vmem>>, vector<1x128xf32>
    %c29_88 = arith.constant 29 : index
    %c0_89 = arith.constant 0 : index
    %123 = vector.load %arg9[%c29_88, %c0_89] : memref<32x128xf32, #tpu.memory_space<vmem>>, vector<1x128xf32>
    tpu.vector_store %arg9[%c29_88, %c0_89], %122 {strides = array<i32>} : memref<32x128xf32, #tpu.memory_space<vmem>>, vector<1x128xf32>,
    %c30 = arith.constant 30 : index
    %124 = memref.load %arg0[%c30] : memref<32xi32, #tpu.memory_space<smem>>
    %125 = arith.index_cast %124 : i32 to index
    %c0_90 = arith.constant 0 : index
    %126 = vector.load %arg1[%125, %c0_90] : memref<10x128xf32, #tpu.memory_space<vmem>>, vector<1x128xf32>
    %c30_91 = arith.constant 30 : index
    %c0_92 = arith.constant 0 : index
    %127 = vector.load %arg9[%c30_91, %c0_92] : memref<32x128xf32, #tpu.memory_space<vmem>>, vector<1x128xf32>
    tpu.vector_store %arg9[%c30_91, %c0_92], %126 {strides = array<i32>} : memref<32x128xf32, #tpu.memory_space<vmem>>, vector<1x128xf32>,
    %c31 = arith.constant 31 : index
    %128 = memref.load %arg0[%c31] : memref<32xi32, #tpu.memory_space<smem>>
    %129 = arith.index_cast %128 : i32 to index
    %c0_93 = arith.constant 0 : index
    %130 = vector.load %arg1[%129, %c0_93] : memref<10x128xf32, #tpu.memory_space<vmem>>, vector<1x128xf32>
    %c31_94 = arith.constant 31 : index
    %c0_95 = arith.constant 0 : index
    %131 = vector.load %arg9[%c31_94, %c0_95] : memref<32x128xf32, #tpu.memory_space<vmem>>, vector<1x128xf32>
    tpu.vector_store %arg9[%c31_94, %c0_95], %130 {strides = array<i32>} : memref<32x128xf32, #tpu.memory_space<vmem>>, vector<1x128xf32>,
    %c0_96 = arith.constant 0 : index
    %c0_97 = arith.constant 0 : index
    %132 = vector.load %arg9[%c0_96, %c0_97] : memref<32x128xf32, #tpu.memory_space<vmem>>, vector<32x128xf32>
    %133 = arith.mulf %132, %132 : vector<32x128xf32>
    %cst = arith.constant dense<0.000000e+00> : vector<32xf32>
    %134 = vector.multi_reduction <add>, %133, %cst [1] : vector<32x128xf32> to vector<32xf32>
    %135 = vector.shape_cast %134 : vector<32xf32> to vector<32x1xf32>
    %136 = math.sqrt %135 : vector<32x1xf32>
    %cst_98 = arith.constant 9.99999996E-13 : f32
    %137 = vector.broadcast %cst_98 : f32 to vector<32x1xf32>
    %138 = arith.maximumf %136, %137 : vector<32x1xf32>
    %139 = vector.broadcast %138 : vector<32x1xf32> to vector<32x128xf32>
    %140 = arith.divf %132, %139 : vector<32x128xf32>
    %c0_99 = arith.constant 0 : index
    %c0_100 = arith.constant 0 : index
    %141 = vector.load %arg2[%c0_99, %c0_100] : memref<128x512xbf16, #tpu.memory_space<vmem>>, vector<128x512xbf16>
    %c0_101 = arith.constant 0 : index
    %c0_102 = arith.constant 0 : index
    %142 = vector.load %arg7[%c0_101, %c0_102] : memref<1x7808xf32, #tpu.memory_space<vmem>>, vector<1x512xf32>
    %c0_103 = arith.constant 0 : index
    %c2688 = arith.constant 2688 : index
    %143 = vector.load %arg7[%c0_103, %c2688] : memref<1x7808xf32, #tpu.memory_space<vmem>>, vector<1x512xf32>
    %c0_104 = arith.constant 0 : index
    %c3200 = arith.constant 3200 : index
    %144 = vector.load %arg7[%c0_104, %c3200] : memref<1x7808xf32, #tpu.memory_space<vmem>>, vector<1x512xf32>
    %145 = arith.truncf %140 : vector<32x128xf32> to vector<32x128xbf16>
    %cst_105 = arith.constant dense<0.000000e+00> : vector<32x512xf32>
    %146 = tpu.matmul %145, %141, %cst_105 {dimension_numbers = #tpu.dot_dimension_numbers<[1], [0], [0], [1], [0, 0, 1, 1], [], []>} : vector<32x128xbf16>, vector<128x512xbf16>, vector<32x512xf32> -> vector<32x512xf32>
    %147 = vector.broadcast %142 : vector<1x512xf32> to vector<32x512xf32>
    %148 = arith.addf %146, %147 : vector<32x512xf32>
    %cst_106 = arith.constant 5.000000e-01 : f32
    %149 = vector.broadcast %cst_106 : f32 to vector<32x512xf32>
    %150 = arith.mulf %149, %148 : vector<32x512xf32>
    %cst_107 = arith.constant 2.000000e+00 : f32
    %151 = math.sqrt %cst_107 : f32
    %cst_108 = arith.constant 1.000000e+00 : f32
    %152 = arith.divf %cst_108, %151 : f32
    %153 = vector.broadcast %152 : f32 to vector<32x512xf32>
    %154 = arith.mulf %148, %153 : vector<32x512xf32>
    %155 = math.erf %154 : vector<32x512xf32>
    %cst_109 = arith.constant 1.000000e+00 : f32
    %156 = vector.broadcast %cst_109 : f32 to vector<32x512xf32>
    %157 = arith.addf %156, %155 : vector<32x512xf32>
    %158 = arith.mulf %150, %157 : vector<32x512xf32>
    %cst_110 = arith.constant dense<0.000000e+00> : vector<512xf32>
    %159 = vector.multi_reduction <add>, %158, %cst_110 [0] : vector<32x512xf32> to vector<512xf32>
    %160 = vector.shape_cast %159 : vector<512xf32> to vector<1x512xf32>
    %cst_111 = arith.constant 3.200000e+01 : f32
    %161 = vector.broadcast %cst_111 : f32 to vector<1x512xf32>
    %162 = arith.divf %160, %161 : vector<1x512xf32>
    %163 = arith.mulf %158, %158 : vector<32x512xf32>
    %cst_112 = arith.constant dense<0.000000e+00> : vector<512xf32>
    %164 = vector.multi_reduction <add>, %163, %cst_112 [0] : vector<32x512xf32> to vector<512xf32>
    %165 = vector.shape_cast %164 : vector<512xf32> to vector<1x512xf32>
    %cst_113 = arith.constant 3.200000e+01 : f32
    %166 = vector.broadcast %cst_113 : f32 to vector<1x512xf32>
    %167 = arith.divf %165, %166 : vector<1x512xf32>
    %168 = arith.mulf %162, %162 : vector<1x512xf32>
    %169 = arith.subf %167, %168 : vector<1x512xf32>
    %cst_114 = arith.constant 9.99999974E-6 : f32
    %170 = vector.broadcast %cst_114 : f32 to vector<1x512xf32>
    %171 = arith.addf %169, %170 : vector<1x512xf32>
    %172 = math.rsqrt %171 : vector<1x512xf32>
    %173 = arith.mulf %143, %172 : vector<1x512xf32>
    %174 = arith.mulf %162, %173 : vector<1x512xf32>
    %175 = arith.subf %144, %174 : vector<1x512xf32>
    %176 = vector.broadcast %173 : vector<1x512xf32> to vector<32x512xf32>
    %177 = arith.mulf %158, %176 : vector<32x512xf32>
    %178 = vector.broadcast %175 : vector<1x512xf32> to vector<32x512xf32>
    %179 = arith.addf %177, %178 : vector<32x512xf32>
    %c0_i32_115 = arith.constant 0 : i32
    %180 = tpu.memref_slice %arg14[%c0_i32_115] : memref<4x!tpu.dma_semaphore, #tpu.memory_space<semaphore_mem>> -> memref<1x!tpu.dma_semaphore, #tpu.memory_space<semaphore_mem>>
    %181 = tpu.memref_squeeze %180 : memref<1x!tpu.dma_semaphore, #tpu.memory_space<semaphore_mem>> -> memref<!tpu.dma_semaphore, #tpu.memory_space<semaphore_mem>>
    tpu.wait_dma2 semaphore(%181 : memref<!tpu.dma_semaphore, #tpu.memory_space<semaphore_mem>>) src(%arg3 : memref<512x768xbf16, #tpu.memory_space<any>>) dst(%arg10 : memref<512x768xbf16, #tpu.memory_space<vmem>>)
    %c2_i32 = arith.constant 2 : i32
    %182 = tpu.memref_slice %arg14[%c2_i32] : memref<4x!tpu.dma_semaphore, #tpu.memory_space<semaphore_mem>> -> memref<1x!tpu.dma_semaphore, #tpu.memory_space<semaphore_mem>>
    %183 = tpu.memref_squeeze %182 : memref<1x!tpu.dma_semaphore, #tpu.memory_space<semaphore_mem>> -> memref<!tpu.dma_semaphore, #tpu.memory_space<semaphore_mem>>
    tpu.enqueue_dma source(%arg5 : memref<768x512xbf16, #tpu.memory_space<any>>) target(%arg12 : memref<768x512xbf16, #tpu.memory_space<vmem>>) target_semaphore(%183 : memref<!tpu.dma_semaphore, #tpu.memory_space<semaphore_mem>>)
    %c0_116 = arith.constant 0 : index
    %c0_117 = arith.constant 0 : index
    %184 = vector.load %arg10[%c0_116, %c0_117] : memref<512x768xbf16, #tpu.memory_space<vmem>>, vector<512x768xbf16>
    %c0_118 = arith.constant 0 : index
    %c512 = arith.constant 512 : index
    %185 = vector.load %arg7[%c0_118, %c512] : memref<1x7808xf32, #tpu.memory_space<vmem>>, vector<1x768xf32>
    %c0_119 = arith.constant 0 : index
    %c3712 = arith.constant 3712 : index
    %186 = vector.load %arg7[%c0_119, %c3712] : memref<1x7808xf32, #tpu.memory_space<vmem>>, vector<1x768xf32>
    %c0_120 = arith.constant 0 : index
    %c4480 = arith.constant 4480 : index
    %187 = vector.load %arg7[%c0_120, %c4480] : memref<1x7808xf32, #tpu.memory_space<vmem>>, vector<1x768xf32>
    %188 = arith.truncf %179 : vector<32x512xf32> to vector<32x512xbf16>
    %cst_121 = arith.constant dense<0.000000e+00> : vector<32x768xf32>
    %189 = tpu.matmul %188, %184, %cst_121 {dimension_numbers = #tpu.dot_dimension_numbers<[1], [0], [0], [1], [0, 0, 1, 1], [], []>} : vector<32x512xbf16>, vector<512x768xbf16>, vector<32x768xf32> -> vector<32x768xf32>
    %190 = vector.broadcast %185 : vector<1x768xf32> to vector<32x768xf32>
    %191 = arith.addf %189, %190 : vector<32x768xf32>
    %cst_122 = arith.constant 5.000000e-01 : f32
    %192 = vector.broadcast %cst_122 : f32 to vector<32x768xf32>
    %193 = arith.mulf %192, %191 : vector<32x768xf32>
    %cst_123 = arith.constant 2.000000e+00 : f32
    %194 = math.sqrt %cst_123 : f32
    %cst_124 = arith.constant 1.000000e+00 : f32
    %195 = arith.divf %cst_124, %194 : f32
    %196 = vector.broadcast %195 : f32 to vector<32x768xf32>
    %197 = arith.mulf %191, %196 : vector<32x768xf32>
    %198 = math.erf %197 : vector<32x768xf32>
    %cst_125 = arith.constant 1.000000e+00 : f32
    %199 = vector.broadcast %cst_125 : f32 to vector<32x768xf32>
    %200 = arith.addf %199, %198 : vector<32x768xf32>
    %201 = arith.mulf %193, %200 : vector<32x768xf32>
    %cst_126 = arith.constant dense<0.000000e+00> : vector<768xf32>
    %202 = vector.multi_reduction <add>, %201, %cst_126 [0] : vector<32x768xf32> to vector<768xf32>
    %203 = vector.shape_cast %202 : vector<768xf32> to vector<1x768xf32>
    %cst_127 = arith.constant 3.200000e+01 : f32
    %204 = vector.broadcast %cst_127 : f32 to vector<1x768xf32>
    %205 = arith.divf %203, %204 : vector<1x768xf32>
    %206 = arith.mulf %201, %201 : vector<32x768xf32>
    %cst_128 = arith.constant dense<0.000000e+00> : vector<768xf32>
    %207 = vector.multi_reduction <add>, %206, %cst_128 [0] : vector<32x768xf32> to vector<768xf32>
    %208 = vector.shape_cast %207 : vector<768xf32> to vector<1x768xf32>
    %cst_129 = arith.constant 3.200000e+01 : f32
    %209 = vector.broadcast %cst_129 : f32 to vector<1x768xf32>
    %210 = arith.divf %208, %209 : vector<1x768xf32>
    %211 = arith.mulf %205, %205 : vector<1x768xf32>
    %212 = arith.subf %210, %211 : vector<1x768xf32>
    %cst_130 = arith.constant 9.99999974E-6 : f32
    %213 = vector.broadcast %cst_130 : f32 to vector<1x768xf32>
    %214 = arith.addf %212, %213 : vector<1x768xf32>
    %215 = math.rsqrt %214 : vector<1x768xf32>
    %216 = arith.mulf %186, %215 : vector<1x768xf32>
    %217 = arith.mulf %205, %216 : vector<1x768xf32>
    %218 = arith.subf %187, %217 : vector<1x768xf32>
    %219 = vector.broadcast %216 : vector<1x768xf32> to vector<32x768xf32>
    %220 = arith.mulf %201, %219 : vector<32x768xf32>
    %221 = vector.broadcast %218 : vector<1x768xf32> to vector<32x768xf32>
    %222 = arith.addf %220, %221 : vector<32x768xf32>
    %c1_i32_131 = arith.constant 1 : i32
    %223 = tpu.memref_slice %arg14[%c1_i32_131] : memref<4x!tpu.dma_semaphore, #tpu.memory_space<semaphore_mem>> -> memref<1x!tpu.dma_semaphore, #tpu.memory_space<semaphore_mem>>
    %224 = tpu.memref_squeeze %223 : memref<1x!tpu.dma_semaphore, #tpu.memory_space<semaphore_mem>> -> memref<!tpu.dma_semaphore, #tpu.memory_space<semaphore_mem>>
    tpu.wait_dma2 semaphore(%224 : memref<!tpu.dma_semaphore, #tpu.memory_space<semaphore_mem>>) src(%arg4 : memref<768x768xbf16, #tpu.memory_space<any>>) dst(%arg11 : memref<768x768xbf16, #tpu.memory_space<vmem>>)
    %c3_i32 = arith.constant 3 : i32
    %225 = tpu.memref_slice %arg14[%c3_i32] : memref<4x!tpu.dma_semaphore, #tpu.memory_space<semaphore_mem>> -> memref<1x!tpu.dma_semaphore, #tpu.memory_space<semaphore_mem>>
    %226 = tpu.memref_squeeze %225 : memref<1x!tpu.dma_semaphore, #tpu.memory_space<semaphore_mem>> -> memref<!tpu.dma_semaphore, #tpu.memory_space<semaphore_mem>>
    tpu.enqueue_dma source(%arg6 : memref<512x128xbf16, #tpu.memory_space<any>>) target(%arg13 : memref<512x128xbf16, #tpu.memory_space<vmem>>) target_semaphore(%226 : memref<!tpu.dma_semaphore, #tpu.memory_space<semaphore_mem>>)
    %c0_132 = arith.constant 0 : index
    %c0_133 = arith.constant 0 : index
    %227 = vector.load %arg11[%c0_132, %c0_133] : memref<768x768xbf16, #tpu.memory_space<vmem>>, vector<768x768xbf16>
    %c0_134 = arith.constant 0 : index
    %c1280 = arith.constant 1280 : index
    %228 = vector.load %arg7[%c0_134, %c1280] : memref<1x7808xf32, #tpu.memory_space<vmem>>, vector<1x768xf32>
    %c0_135 = arith.constant 0 : index
    %c5248 = arith.constant 5248 : index
    %229 = vector.load %arg7[%c0_135, %c5248] : memref<1x7808xf32, #tpu.memory_space<vmem>>, vector<1x768xf32>
    %c0_136 = arith.constant 0 : index
    %c6016 = arith.constant 6016 : index
    %230 = vector.load %arg7[%c0_136, %c6016] : memref<1x7808xf32, #tpu.memory_space<vmem>>, vector<1x768xf32>
    %231 = arith.truncf %222 : vector<32x768xf32> to vector<32x768xbf16>
    %cst_137 = arith.constant dense<0.000000e+00> : vector<32x768xf32>
    %232 = tpu.matmul %231, %227, %cst_137 {dimension_numbers = #tpu.dot_dimension_numbers<[1], [0], [0], [1], [0, 0, 1, 1], [], []>} : vector<32x768xbf16>, vector<768x768xbf16>, vector<32x768xf32> -> vector<32x768xf32>
    %233 = vector.broadcast %228 : vector<1x768xf32> to vector<32x768xf32>
    %234 = arith.addf %232, %233 : vector<32x768xf32>
    %cst_138 = arith.constant 5.000000e-01 : f32
    %235 = vector.broadcast %cst_138 : f32 to vector<32x768xf32>
    %236 = arith.mulf %235, %234 : vector<32x768xf32>
    %cst_139 = arith.constant 2.000000e+00 : f32
    %237 = math.sqrt %cst_139 : f32
    %cst_140 = arith.constant 1.000000e+00 : f32
    %238 = arith.divf %cst_140, %237 : f32
    %239 = vector.broadcast %238 : f32 to vector<32x768xf32>
    %240 = arith.mulf %234, %239 : vector<32x768xf32>
    %241 = math.erf %240 : vector<32x768xf32>
    %cst_141 = arith.constant 1.000000e+00 : f32
    %242 = vector.broadcast %cst_141 : f32 to vector<32x768xf32>
    %243 = arith.addf %242, %241 : vector<32x768xf32>
    %244 = arith.mulf %236, %243 : vector<32x768xf32>
    %cst_142 = arith.constant dense<0.000000e+00> : vector<768xf32>
    %245 = vector.multi_reduction <add>, %244, %cst_142 [0] : vector<32x768xf32> to vector<768xf32>
    %246 = vector.shape_cast %245 : vector<768xf32> to vector<1x768xf32>
    %cst_143 = arith.constant 3.200000e+01 : f32
    %247 = vector.broadcast %cst_143 : f32 to vector<1x768xf32>
    %248 = arith.divf %246, %247 : vector<1x768xf32>
    %249 = arith.mulf %244, %244 : vector<32x768xf32>
    %cst_144 = arith.constant dense<0.000000e+00> : vector<768xf32>
    %250 = vector.multi_reduction <add>, %249, %cst_144 [0] : vector<32x768xf32> to vector<768xf32>
    %251 = vector.shape_cast %250 : vector<768xf32> to vector<1x768xf32>
    %cst_145 = arith.constant 3.200000e+01 : f32
    %252 = vector.broadcast %cst_145 : f32 to vector<1x768xf32>
    %253 = arith.divf %251, %252 : vector<1x768xf32>
    %254 = arith.mulf %248, %248 : vector<1x768xf32>
    %255 = arith.subf %253, %254 : vector<1x768xf32>
    %cst_146 = arith.constant 9.99999974E-6 : f32
    %256 = vector.broadcast %cst_146 : f32 to vector<1x768xf32>
    %257 = arith.addf %255, %256 : vector<1x768xf32>
    %258 = math.rsqrt %257 : vector<1x768xf32>
    %259 = arith.mulf %229, %258 : vector<1x768xf32>
    %260 = arith.mulf %248, %259 : vector<1x768xf32>
    %261 = arith.subf %230, %260 : vector<1x768xf32>
    %262 = vector.broadcast %259 : vector<1x768xf32> to vector<32x768xf32>
    %263 = arith.mulf %244, %262 : vector<32x768xf32>
    %264 = vector.broadcast %261 : vector<1x768xf32> to vector<32x768xf32>
    %265 = arith.addf %263, %264 : vector<32x768xf32>
    %c2_i32_147 = arith.constant 2 : i32
    %266 = tpu.memref_slice %arg14[%c2_i32_147] : memref<4x!tpu.dma_semaphore, #tpu.memory_space<semaphore_mem>> -> memref<1x!tpu.dma_semaphore, #tpu.memory_space<semaphore_mem>>
    %267 = tpu.memref_squeeze %266 : memref<1x!tpu.dma_semaphore, #tpu.memory_space<semaphore_mem>> -> memref<!tpu.dma_semaphore, #tpu.memory_space<semaphore_mem>>
    tpu.wait_dma2 semaphore(%267 : memref<!tpu.dma_semaphore, #tpu.memory_space<semaphore_mem>>) src(%arg5 : memref<768x512xbf16, #tpu.memory_space<any>>) dst(%arg12 : memref<768x512xbf16, #tpu.memory_space<vmem>>)
    %c0_148 = arith.constant 0 : index
    %c0_149 = arith.constant 0 : index
    %268 = vector.load %arg12[%c0_148, %c0_149] : memref<768x512xbf16, #tpu.memory_space<vmem>>, vector<768x512xbf16>
    %c0_150 = arith.constant 0 : index
    %c2048 = arith.constant 2048 : index
    %269 = vector.load %arg7[%c0_150, %c2048] : memref<1x7808xf32, #tpu.memory_space<vmem>>, vector<1x512xf32>
    %c0_151 = arith.constant 0 : index
    %c6784 = arith.constant 6784 : index
    %270 = vector.load %arg7[%c0_151, %c6784] : memref<1x7808xf32, #tpu.memory_space<vmem>>, vector<1x512xf32>
    %c0_152 = arith.constant 0 : index
    %c7296 = arith.constant 7296 : index
    %271 = vector.load %arg7[%c0_152, %c7296] : memref<1x7808xf32, #tpu.memory_space<vmem>>, vector<1x512xf32>
    %272 = arith.truncf %265 : vector<32x768xf32> to vector<32x768xbf16>
    %cst_153 = arith.constant dense<0.000000e+00> : vector<32x512xf32>
    %273 = tpu.matmul %272, %268, %cst_153 {dimension_numbers = #tpu.dot_dimension_numbers<[1], [0], [0], [1], [0, 0, 1, 1], [], []>} : vector<32x768xbf16>, vector<768x512xbf16>, vector<32x512xf32> -> vector<32x512xf32>
    %274 = vector.broadcast %269 : vector<1x512xf32> to vector<32x512xf32>
    %275 = arith.addf %273, %274 : vector<32x512xf32>
    %cst_154 = arith.constant 5.000000e-01 : f32
    %276 = vector.broadcast %cst_154 : f32 to vector<32x512xf32>
    %277 = arith.mulf %276, %275 : vector<32x512xf32>
    %cst_155 = arith.constant 2.000000e+00 : f32
    %278 = math.sqrt %cst_155 : f32
    %cst_156 = arith.constant 1.000000e+00 : f32
    %279 = arith.divf %cst_156, %278 : f32
    %280 = vector.broadcast %279 : f32 to vector<32x512xf32>
    %281 = arith.mulf %275, %280 : vector<32x512xf32>
    %282 = math.erf %281 : vector<32x512xf32>
    %cst_157 = arith.constant 1.000000e+00 : f32
    %283 = vector.broadcast %cst_157 : f32 to vector<32x512xf32>
    %284 = arith.addf %283, %282 : vector<32x512xf32>
    %285 = arith.mulf %277, %284 : vector<32x512xf32>
    %cst_158 = arith.constant dense<0.000000e+00> : vector<512xf32>
    %286 = vector.multi_reduction <add>, %285, %cst_158 [0] : vector<32x512xf32> to vector<512xf32>
    %287 = vector.shape_cast %286 : vector<512xf32> to vector<1x512xf32>
    %cst_159 = arith.constant 3.200000e+01 : f32
    %288 = vector.broadcast %cst_159 : f32 to vector<1x512xf32>
    %289 = arith.divf %287, %288 : vector<1x512xf32>
    %290 = arith.mulf %285, %285 : vector<32x512xf32>
    %cst_160 = arith.constant dense<0.000000e+00> : vector<512xf32>
    %291 = vector.multi_reduction <add>, %290, %cst_160 [0] : vector<32x512xf32> to vector<512xf32>
    %292 = vector.shape_cast %291 : vector<512xf32> to vector<1x512xf32>
    %cst_161 = arith.constant 3.200000e+01 : f32
    %293 = vector.broadcast %cst_161 : f32 to vector<1x512xf32>
    %294 = arith.divf %292, %293 : vector<1x512xf32>
    %295 = arith.mulf %289, %289 : vector<1x512xf32>
    %296 = arith.subf %294, %295 : vector<1x512xf32>
    %cst_162 = arith.constant 9.99999974E-6 : f32
    %297 = vector.broadcast %cst_162 : f32 to vector<1x512xf32>
    %298 = arith.addf %296, %297 : vector<1x512xf32>
    %299 = math.rsqrt %298 : vector<1x512xf32>
    %300 = arith.mulf %270, %299 : vector<1x512xf32>
    %301 = arith.mulf %289, %300 : vector<1x512xf32>
    %302 = arith.subf %271, %301 : vector<1x512xf32>
    %303 = vector.broadcast %300 : vector<1x512xf32> to vector<32x512xf32>
    %304 = arith.mulf %285, %303 : vector<32x512xf32>
    %305 = vector.broadcast %302 : vector<1x512xf32> to vector<32x512xf32>
    %306 = arith.addf %304, %305 : vector<32x512xf32>
    %c3_i32_163 = arith.constant 3 : i32
    %307 = tpu.memref_slice %arg14[%c3_i32_163] : memref<4x!tpu.dma_semaphore, #tpu.memory_space<semaphore_mem>> -> memref<1x!tpu.dma_semaphore, #tpu.memory_space<semaphore_mem>>
    %308 = tpu.memref_squeeze %307 : memref<1x!tpu.dma_semaphore, #tpu.memory_space<semaphore_mem>> -> memref<!tpu.dma_semaphore, #tpu.memory_space<semaphore_mem>>
    tpu.wait_dma2 semaphore(%308 : memref<!tpu.dma_semaphore, #tpu.memory_space<semaphore_mem>>) src(%arg6 : memref<512x128xbf16, #tpu.memory_space<any>>) dst(%arg13 : memref<512x128xbf16, #tpu.memory_space<vmem>>)
    %309 = arith.truncf %306 : vector<32x512xf32> to vector<32x512xbf16>
    %c0_164 = arith.constant 0 : index
    %c0_165 = arith.constant 0 : index
    %310 = vector.load %arg13[%c0_164, %c0_165] : memref<512x128xbf16, #tpu.memory_space<vmem>>, vector<512x128xbf16>
    %cst_166 = arith.constant dense<0.000000e+00> : vector<32x128xf32>
    %311 = tpu.matmul %309, %310, %cst_166 {dimension_numbers = #tpu.dot_dimension_numbers<[1], [0], [0], [1], [0, 0, 1, 1], [], []>} : vector<32x512xbf16>, vector<512x128xbf16>, vector<32x128xf32> -> vector<32x128xf32>
    %c0_167 = arith.constant 0 : index
    %c2560 = arith.constant 2560 : index
    %312 = vector.load %arg7[%c0_167, %c2560] : memref<1x7808xf32, #tpu.memory_space<vmem>>, vector<1x128xf32>
    %313 = vector.broadcast %312 : vector<1x128xf32> to vector<32x128xf32>
    %314 = arith.addf %311, %313 : vector<32x128xf32>
    %c0_168 = arith.constant 0 : index
    %c0_169 = arith.constant 0 : index
    %315 = vector.load %arg8[%c0_168, %c0_169] : memref<32x128xf32, #tpu.memory_space<vmem>>, vector<32x128xf32>
    tpu.vector_store %arg8[%c0_168, %c0_169], %314 {strides = array<i32>} : memref<32x128xf32, #tpu.memory_space<vmem>>, vector<32x128xf32>,
    return
  }
}

</mosaic_0001>

<bundles_post_ra>
// kernel: tpu_custom_call.1
= control target key start
LH: loop header
LB: loop body
LE: loop exit
PB: predicated region body
PF: predicated region fallthrough
CT: control target
= control target key end

     0   :  { %13 = vsyncpa [#allocation11], 0  ;;  %s6500_s0 = inlined_call_operand.hbm [shape: s32[32], index: 0, kind: input, shape index: {}]   ;;  %s6501_s1 = inlined_call_operand.hbm [shape: f32[10,128], index: 1, kind: input, shape index: {}]   ;;  %s6502_s2 = inlined_call_operand.hbm [shape: bf16[128,512], index: 2, kind: input, shape index: {}]   ;;  %s6503_s3 = inlined_call_operand.hbm [shape: bf16[512,768], index: 3, kind: input, shape index: {}]   ;;  %s6504_s4 = inlined_call_operand.hbm [shape: bf16[768,768], index: 4, kind: input, shape index: {}]   ;;  %s6505_s5 = inlined_call_operand.hbm [shape: bf16[768,512], index: 5, kind: input, shape index: {}]   ;;  %s6506_s6 = inlined_call_operand.hbm [shape: bf16[512,128], index: 6, kind: input, shape index: {}]   ;;  %s6507_s7 = inlined_call_operand.hbm [shape: f32[1,7808], index: 7, kind: input, shape index: {}]   ;;  %s6508_s8 = inlined_call_operand.hbm [shape: f32[32,128], index: 8, kind: output, shape index: {}]  }
   0x1   :  { %14 = vsyncpa [#allocation9], 0 }
   0x2   :  { %15 = vsyncpa [#allocation14], 0 }
   0x3   :  { %16 = vsyncpa [#allocation10], 0  ;;  %s5235_s27 = smov [#allocation13]   ;;  %s5099_s9 = scalar_lea.hbm %s6502_s2, 4096 }
   0x4   :  { %s42_s28 = sshll.u32 %s5235_s27, 4  ;;  %p5100_p0 = scmp.ne.s32.totalorder %s6502_s2, %s5099_s9  ;;  %s43_s28 = int_to_ptr.vmem [resolvable:$true] %s42_s28 }
   0x5   :  { %p5103_p1 = scmp.lt.u32.totalorder %s5099_s9, %s6502_s2 }
   0x7   :  { %p5105_p2 = pnand %p5103_p1, %p5100_p0 }
   0x9   :  { %5108 = shalt.err (!%p5105_p2)
}
   0xa   :  { %s5109_s14 = scalar_lea.vmem %s43_s28, 4096  ;;  %p5114_p4 = scmp.lt.s32.totalorder %s43_s28, %s43_s28 }
   0xb   :  { %p5110_p3 = scmp.ne.s32.totalorder %s43_s28, %s5109_s14  ;;  %p5115_p5 = scmp.lt.s32.totalorder %s5109_s14, %s5109_s14 }
   0xd   :  { %p5116_p6 = por %p5115_p5, %p5114_p4 }
   0xf   :  { %p5117_p7 = pnand %p5116_p6, %p5110_p3 }
  0x11   :  { %5120 = shalt.err (!%p5117_p7)
}
  0x12   :  { %s5236_s15 = smov 256   ;;  %s5237_s16 = smov 16  }
  0x13   :  { %48 = dma.hbm_to_vmem [thread:$0]  %s6502_s2, 4096, %s43_s28, [#allocation14], %s5236_s15, %s5236_s15, %s5237_s16  }
  0x14   :  { %s5121_s21 = scalar_lea.hbm %s6500_s0, 16 }
  0x15   :  { %p5122_p8 = scmp.ne.s32.totalorder %s6500_s0, %s5121_s21  ;;  %p5125_p9 = scmp.lt.u32.totalorder %s5121_s21, %s6500_s0 }
  0x17   :  { %p5127_p10 = pnand %p5125_p9, %p5122_p8 }
  0x19   :  { %5130 = shalt.err (!%p5127_p10)
}
  0x1a   :  { %s5238_s26 = smov [#allocation8]   ;;  %s5239_s2 = smov [#allocation12]  }
  0x1b   :  { %24 = dma.hbm_to_smem %s6500_s0, 16, %s5238_s26, [#allocation11]  }
  0x1c   :  { %s30_s28 = sshll.u32 %s5239_s2, 4  ;;  %s5131_s10 = scalar_lea.hbm %s6501_s1, 256  ;;  %s31_s28 = int_to_ptr.vmem [resolvable:$true] %s30_s28 }
  0x1d   :  { %p5132_p11 = scmp.ne.s32.totalorder %s6501_s1, %s5131_s10  ;;  %p5135_p12 = scmp.lt.u32.totalorder %s5131_s10, %s6501_s1 }
  0x1f   :  { %p5137_p13 = pnand %p5135_p12, %p5132_p11 }
  0x21   :  { %5140 = shalt.err (!%p5137_p13)
}
  0x22   :  { %s5141_s16 = scalar_lea.vmem %s31_s28, 256  ;;  %p5146_p1 = scmp.lt.s32.totalorder %s31_s28, %s31_s28 }
  0x23   :  { %p5142_p0 = scmp.ne.s32.totalorder %s31_s28, %s5141_s16  ;;  %p5147_p2 = scmp.lt.s32.totalorder %s5141_s16, %s5141_s16 }
  0x25   :  { %p5148_p3 = por %p5147_p2, %p5146_p1 }
  0x27   :  { %p5149_p4 = pnand %p5148_p3, %p5142_p0 }
  0x29   :  { %5152 = shalt.err (!%p5149_p4)
}
  0x2a   :  { %s5240_s0 = smov 128   ;;  %s5241_s17 = smov 8  }
  0x2b   :  { %36 = dma.hbm_to_vmem [thread:$0]  %s6501_s1, 256, %s31_s28, [#allocation9], %s5240_s0, %s5240_s0, %s5241_s17  }
  0x2c   :  { %s5242_s20 = smov [#allocation15]   ;;  %s5153_s24 = scalar_lea.hbm %s6507_s7, 976 }
  0x2d   :  { %s55_s21 = sshll.u32 %s5242_s20, 4  ;;  %p5154_p5 = scmp.ne.s32.totalorder %s6507_s7, %s5153_s24  ;;  %s56_s21 = int_to_ptr.vmem [resolvable:$true] %s55_s21 }
  0x2e   :  { %p5157_p6 = scmp.lt.u32.totalorder %s5153_s24, %s6507_s7 }
  0x30   :  { %p5159_p7 = pnand %p5157_p6, %p5154_p5 }
  0x32   :  { %5162 = shalt.err (!%p5159_p7)
}
  0x33   :  { %s5163_s2 = scalar_lea.vmem %s56_s21, 976  ;;  %s5167_s1 = scalar_lea.vmem %s56_s21, 992 }
  0x34   :  { %p5164_p8 = scmp.ne.s32.totalorder %s56_s21, %s5163_s2  ;;  %p5168_p9 = scmp.lt.s32.totalorder %s56_s21, %s56_s21 }
  0x35   :  { %p5169_p10 = scmp.lt.s32.totalorder %s5167_s1, %s5163_s2 }
  0x37   :  { %p5170_p11 = por %p5169_p10, %p5168_p9 }
  0x39   :  { %p5171_p12 = pnand %p5170_p11, %p5164_p8 }
  0x3b   :  { %5174 = shalt.err (!%p5171_p12)
}
  0x3c   :  { %58 = dma.hbm_to_vmem [thread:$0]  %s6507_s7, 976, %s56_s21, [#allocation14]  }
  0x3d   :  { %5219 = dma.done.wait [#allocation11], 16  }
  0x3e   :  { %5220 = vsyncadd [#allocation11], 4294967280 }
  0x3f   :  { %5221 = dma.done.wait [#allocation9], 256  }
  0x40   :  { %5222 = vsyncadd [#allocation9], 4294967040 }
  0x41   :  { %5223 = dma.done.wait [#allocation14], 5072  }
  0x42   :  { %5224 = vsyncadd [#allocation14], 4294962224 }
  0x43   :  { %71 = sfence }
  0x44   :  { %s77_s9 = sld [smem:[#allocation0]]   ;;  %s5243_s10 = smov [#allocation3]  }
  0x45   :  { %s85_s11 = sshll.u32 %s5243_s10, 4  ;;  %s5244_s12 = smov 768   ;;  %s86_s11 = int_to_ptr.vmem [resolvable:$true] %s85_s11 }
  0x46   :  { %89 = sst [smem:[#allocation18]] %s5244_s12  ;;  %s5245_s13 = smov 6  }
  0x47   :  { %91 = sst [smem:[#allocation18 + $0x1]] %s5244_s12  ;;  %s5246_s14 = smov 64  }
  0x48   :  { %93 = sst [smem:[#allocation18 + $0x2]] %s5245_s13  ;;  %s5247_s18 = smov 2  }
  0x49   :  { %95 = sst [smem:[#allocation18 + $0x3]] %s5246_s14  ;;  %s5248_s19 = smov 384  }
  0x4a   :  { %s4509_s7 = sshll.u32 %s77_s9, 26  ;;  %97 = sst [smem:[#allocation18 + $0x4]] %s5240_s0 }
  0x4b   :  { %s5363_s16 = sadd.s32 134217728, %s4509_s7  ;;  %99 = sst [smem:[#allocation18 + $0x5]] %s5247_s18 }
  0x4c   :  { %103 = sst [smem:[#allocation18 + $0x7]] %s5246_s14  ;;  %s5249_s20 = smov 4  }
  0x4d   :  { %101 = sst [smem:[#allocation18 + $0x6]] %s5248_s19  ;;  %s5250_s21 = smov [#allocation7]  }
  0x4e   :  { %105 = sst [smem:[#allocation18 + $0x8]] %s5249_s20  ;;  %s5251_s22 = smov [#allocation17]  }
  0x4f   :  { %107 = dma.general %s6503_s3, 24576, %s86_s11, %s5250_s21, %s5251_s22, [#allocation18], %s5363_s16, 0  }
  0x50   :  { %124 = sst [smem:[#allocation20]] %s5244_s12  ;;  %s5252_s25 = smov [#allocation4]  }
  0x51   :  { %126 = sst [smem:[#allocation20 + $0x1]] %s5244_s12  ;;  %s120_s26 = sshll.u32 %s5252_s25, 4  ;;  %s121_s26 = int_to_ptr.vmem [resolvable:$true] %s120_s26 }
  0x52   :  { %128 = sst [smem:[#allocation20 + $0x2]] %s5245_s13  ;;  %s5253_s27 = smov [#allocation7 + $0x1]  }
  0x53   :  { %130 = sst [smem:[#allocation20 + $0x3]] %s5246_s14  ;;  %s5254_s29 = smov [#allocation19]  }
  0x54   :  { %132 = sst [smem:[#allocation20 + $0x4]] %s5240_s0 }
  0x55   :  { %134 = sst [smem:[#allocation20 + $0x5]] %s5247_s18 }
  0x56   :  { %136 = sst [smem:[#allocation20 + $0x6]] %s5248_s19 }
  0x57   :  { %138 = sst [smem:[#allocation20 + $0x7]] %s5246_s14 }
  0x58   :  { %140 = sst [smem:[#allocation20 + $0x8]] %s5249_s20 }
  0x59   :  { %142 = dma.general %s6504_s4, 36864, %s121_s26, %s5253_s27, %s5254_s29, [#allocation20], %s5363_s16, 0  }
  0x5a   :  { %s4528_s1 = sld [smem:[#allocation8 + $0x10]]  ;;  %s4529_s28 = sld [smem:[#allocation8 + $0x11]]  ;;  %v4835_v40 = vld [vmem:[#allocation13 + $0x4] ss:$16 sps:$4 sm:$0xff]   ;;  %v4837_v41 = vld [vmem:[#allocation13 + $0xc] ss:$16 sps:$4 sm:$0xff]  }
  0x5b   :  { %s4530_s30 = sld [smem:[#allocation8 + $0x12]]  ;;  %s4531_s9 = sld [smem:[#allocation8 + $0x13]]  ;;  %v4839_v42 = vld [vmem:[#allocation13] ss:$16 sps:$4 sm:$0xff]   ;;  %v4840_v43 = vld [vmem:[#allocation13 + $0x8] ss:$16 sps:$4 sm:$0xff]   ;;  %545 = vmatprep.subr.bf16.mxu0 %v4835_v40  ;;  %598 = vmatprep.subr.bf16.mxu1 %v4837_v41 }
  0x5c   :  { %s4532_s10 = sld [smem:[#allocation8 + $0x14]]  ;;  %s4533_s11 = sld [smem:[#allocation8 + $0x15]]  ;;  %546 = vmatpush1.bf16.msra.mxu0 %v4839_v42  ;;  %599 = vmatpush1.bf16.msra.mxu1 %v4840_v43  ;;  %v4841_v44 = vld [vmem:[#allocation13 + $0x24] ss:$16 sps:$4 sm:$0xff]   ;;  %v4843_v45 = vld [vmem:[#allocation13 + $0x2c] ss:$16 sps:$4 sm:$0xff]  }
  0x5d   :  { %s4534_s12 = sld [smem:[#allocation8 + $0x16]]  ;;  %s4535_s13 = sld [smem:[#allocation8 + $0x17]]  ;;  %v4845_v46 = vld [vmem:[#allocation13 + $0x20] ss:$16 sps:$4 sm:$0xff]   ;;  %v4846_v47 = vld [vmem:[#allocation13 + $0x28] ss:$16 sps:$4 sm:$0xff]   ;;  %547 = vmatprep.subr.bf16.mxu0 %v4841_v44  ;;  %600 = vmatprep.subr.bf16.mxu1 %v4843_v45 }
  0x5e   :  { %s5381_s7 = sld [smem:[#allocation8]]  ;;  %s5383_s19 = sld [smem:[#allocation8 + $0x1]]  ;;  %v4847_v48 = vld [vmem:[#allocation13 + $0x44] ss:$16 sps:$4 sm:$0xff]   ;;  %v4849_v49 = vld [vmem:[#allocation13 + $0x4c] ss:$16 sps:$4 sm:$0xff]  }
  0x5f   :  { %s5385_s21 = sld [smem:[#allocation8 + $0x2]]  ;;  %s5387_s22 = sld [smem:[#allocation8 + $0x3]]  ;;  %v4851_v50 = vld [vmem:[#allocation13 + $0x40] ss:$16 sps:$4 sm:$0xff]   ;;  %v4852_v51 = vld [vmem:[#allocation13 + $0x48] ss:$16 sps:$4 sm:$0xff]  }
  0x60   :  { %s208_s23 = scalar_lea.vmem [#allocation12], %s4528_s1  ;;  %s212_s24 = scalar_lea.vmem [#allocation12], %s4529_s28  ;;  %548 = vmatpush1.bf16.msra.mxu0 %v4845_v46  ;;  %601 = vmatpush1.bf16.msra.mxu1 %v4846_v47  ;;  %v4853_v52 = vld [vmem:[#allocation13 + $0x64] ss:$16 sps:$4 sm:$0xff]   ;;  %v4855_v53 = vld [vmem:[#allocation13 + $0x6c] ss:$16 sps:$4 sm:$0xff]  }
  0x61   :  { %v209_v0 = vld [vmem:[%s208_s23] sm:$0x1]  ;;  %s216_s4 = scalar_lea.vmem [#allocation12], %s4530_s30  ;;  %s220_s25 = scalar_lea.vmem [#allocation12], %s4531_s9  ;;  %549 = vmatprep.subr.bf16.mxu0 %v4847_v48  ;;  %602 = vmatprep.subr.bf16.mxu1 %v4849_v49  ;;  %v4858_v55 = vld [vmem:[#allocation13 + $0x68] ss:$16 sps:$4 sm:$0xff]  }
  0x62   :  { %v213_v1 = vld [vmem:[%s212_s24] sm:$0x1]  ;;  %210 = vst [vmem:[#allocation2 + $0x10] sm:$0x1] %v209_v0  ;;  %s224_s26 = scalar_lea.vmem [#allocation12], %s4532_s10  ;;  %s228_s27 = scalar_lea.vmem [#allocation12], %s4533_s11 }
  0x63   :  { %214 = vst [vmem:[#allocation2 + $0x11] sm:$0x1] %v213_v1  ;;  %v217_v2 = vld [vmem:[%s216_s4] sm:$0x1]  ;;  %s232_s29 = scalar_lea.vmem [#allocation12], %s4534_s12  ;;  %s236_s3 = scalar_lea.vmem [#allocation12], %s4535_s13 }
  0x64   :  { %v221_v3 = vld [vmem:[%s220_s25] sm:$0x1]  ;;  %218 = vst [vmem:[#allocation2 + $0x12] sm:$0x1] %v217_v2  ;;  %s144_s2 = scalar_lea.vmem [#allocation12], %s5381_s7  ;;  %s148_s1 = scalar_lea.vmem [#allocation12], %s5383_s19  ;;  %550 = vmatpush1.bf16.msra.mxu0 %v4851_v50  ;;  %603 = vmatpush1.bf16.msra.mxu1 %v4852_v51  ;;  %v365_v51 = vlaneseq }
  0x65   :  { %222 = vst [vmem:[#allocation2 + $0x13] sm:$0x1] %v221_v3  ;;  %v225_v4 = vld [vmem:[%s224_s26] sm:$0x1]  ;;  %s152_s28 = scalar_lea.vmem [#allocation12], %s5385_s21  ;;  %s156_s30 = scalar_lea.vmem [#allocation12], %s5387_s22  ;;  %551 = vmatprep.subr.bf16.mxu0 %v4853_v52  ;;  %604 = vmatprep.subr.bf16.mxu1 %v4855_v53 }
  0x66   :  { %v229_v5 = vld [vmem:[%s228_s27] sm:$0x1]  ;;  %226 = vst [vmem:[#allocation2 + $0x14] sm:$0x1] %v225_v4  ;;  %s4516_s9 = sld [smem:[#allocation8 + $0x4]]  ;;  %s4517_s10 = sld [smem:[#allocation8 + $0x5]] }
  0x67   :  { %230 = vst [vmem:[#allocation2 + $0x15] sm:$0x1] %v229_v5  ;;  %v233_v6 = vld [vmem:[%s232_s29] sm:$0x1]  ;;  %s4518_s11 = sld [smem:[#allocation8 + $0x6]]  ;;  %s4519_s12 = sld [smem:[#allocation8 + $0x7]] }
  0x68   :  { %v237_v7 = vld [vmem:[%s236_s3] sm:$0x1]  ;;  %234 = vst [vmem:[#allocation2 + $0x16] sm:$0x1] %v233_v6  ;;  %s4536_s13 = sld [smem:[#allocation8 + $0x18]]  ;;  %s4537_s23 = sld [smem:[#allocation8 + $0x19]]  ;;  %605 = vmatpush1.bf16.msra.mxu1 %v4858_v55 }
  0x69   :  { %238 = vst [vmem:[#allocation2 + $0x17] sm:$0x1] %v237_v7  ;;  %v145_v8 = vld [vmem:[%s144_s2] sm:$0x1]  ;;  %s4538_s24 = sld [smem:[#allocation8 + $0x1a]]  ;;  %s5393_s4 = sld [smem:[#allocation8 + $0x1b]] }
  0x6a   :  { %v149_v9 = vld [vmem:[%s148_s1] sm:$0x1]  ;;  %146 = vst [vmem:[#allocation2] sm:$0x1] %v145_v8  ;;  %s5395_s7 = sld [smem:[#allocation8 + $0x1c]]  ;;  %s5397_s19 = sld [smem:[#allocation8 + $0x1d]] }
  0x6b   :  { %150 = vst [vmem:[#allocation2 + $0x1] sm:$0x1] %v149_v9  ;;  %v153_v10 = vld [vmem:[%s152_s28] sm:$0x1]  ;;  %s5399_s25 = sld [smem:[#allocation8 + $0x1e]]  ;;  %s5403_s21 = sld [smem:[#allocation8 + $0x1f]] }
  0x6c   :  { %v157_v11 = vld [vmem:[%s156_s30] sm:$0x1]  ;;  %154 = vst [vmem:[#allocation2 + $0x2] sm:$0x1] %v153_v10  ;;  %s160_s22 = scalar_lea.vmem [#allocation12], %s4516_s9  ;;  %s164_s26 = scalar_lea.vmem [#allocation12], %s4517_s10 }
  0x6d   :  { %158 = vst [vmem:[#allocation2 + $0x3] sm:$0x1] %v157_v11  ;;  %v161_v14 = vld [vmem:[%s160_s22] sm:$0x1]  ;;  %s168_s27 = scalar_lea.vmem [#allocation12], %s4518_s11  ;;  %s172_s29 = scalar_lea.vmem [#allocation12], %s4519_s12 }
  0x6e   :  { %162 = vst [vmem:[#allocation2 + $0x4] sm:$0x1] %v161_v14  ;;  %v165_v15 = vld [vmem:[%s164_s26] sm:$0x1]  ;;  %s240_s3 = scalar_lea.vmem [#allocation12], %s4536_s13  ;;  %s244_s2 = scalar_lea.vmem [#allocation12], %s4537_s23 }
  0x6f   :  { %v169_v16 = vld [vmem:[%s168_s27] sm:$0x1]  ;;  %166 = vst [vmem:[#allocation2 + $0x5] sm:$0x1] %v165_v15  ;;  %s248_s1 = scalar_lea.vmem [#allocation12], %s4538_s24  ;;  %s252_s28 = scalar_lea.vmem [#allocation12], %s5393_s4 }
  0x70   :  { %v5401_v12 = vld [vmem:[#allocation2 + $0x10] sm:$0xff]  ;;  %170 = vst [vmem:[#allocation2 + $0x6] sm:$0x1] %v169_v16  ;;  %v173_v17 = vld [vmem:[%s172_s29] sm:$0x1]  ;;  %s256_s30 = scalar_lea.vmem [#allocation12], %s5395_s7 }
  0x71   :  { %v277_v13 = vmul.f32 %v5401_v12, %v5401_v12  ;;  %v241_v18 = vld [vmem:[%s240_s3] sm:$0x1]  ;;  %174 = vst [vmem:[#allocation2 + $0x7] sm:$0x1] %v173_v17  ;;  %s260_s9 = scalar_lea.vmem [#allocation12], %s5397_s19  ;;  %s264_s10 = scalar_lea.vmem [#allocation12], %s5399_s25 }
  0x72   :  { %242 = vst [vmem:[#allocation2 + $0x18] sm:$0x1] %v241_v18  ;;  %v245_v19 = vld [vmem:[%s244_s2] sm:$0x1]  ;;  %s268_s11 = scalar_lea.vmem [#allocation12], %s5403_s21  ;;  %s4520_s12 = sld [smem:[#allocation8 + $0x8]] }
  0x73   :  { %283 = vadd.xlane.f32.xlu1 %v277_v13  ;;  %v249_v20 = vld [vmem:[%s248_s1] sm:$0x1]  ;;  %246 = vst [vmem:[#allocation2 + $0x19] sm:$0x1] %v245_v19  ;;  %s4521_s13 = sld [smem:[#allocation8 + $0x9]]  ;;  %s4522_s23 = sld [smem:[#allocation8 + $0xa]] }
  0x74   :  { %250 = vst [vmem:[#allocation2 + $0x1a] sm:$0x1] %v249_v20  ;;  %v253_v21 = vld [vmem:[%s252_s28] sm:$0x1]  ;;  %s4523_s24 = sld [smem:[#allocation8 + $0xb]]  ;;  %s4524_s22 = sld [smem:[#allocation8 + $0xc]] }
  0x75   :  { %v257_v22 = vld [vmem:[%s256_s30] sm:$0x1]  ;;  %254 = vst [vmem:[#allocation2 + $0x1b] sm:$0x1] %v253_v21  ;;  %s4525_s4 = sld [smem:[#allocation8 + $0xd]]  ;;  %s4526_s26 = sld [smem:[#allocation8 + $0xe]] }
  0x76   :  { %258 = vst [vmem:[#allocation2 + $0x1c] sm:$0x1] %v257_v22  ;;  %v261_v23 = vld [vmem:[%s260_s9] sm:$0x1]  ;;  %s5412_s7 = sld [smem:[#allocation8 + $0xf]]  ;;  %v5255_v6 = vmov 0  }
  0x77   :  { %v265_v24 = vld [vmem:[%s264_s10] sm:$0x1]  ;;  %262 = vst [vmem:[#allocation2 + $0x1d] sm:$0x1] %v261_v23  ;;  %v4859_v56 = vld [vmem:[#allocation13 + $0x84] ss:$16 sps:$4 sm:$0xff]   ;;  %577 = vmatprep.mubr.bf16.mxu0 %v5255_v6  ;;  %630 = vmatprep.mubr.bf16.mxu1 %v5255_v6 }
  0x78   :  { %266 = vst [vmem:[#allocation2 + $0x1e] sm:$0x1] %v265_v24  ;;  %v269_v25 = vld [vmem:[%s268_s11] sm:$0x1]  ;;  %s176_s19 = scalar_lea.vmem [#allocation12], %s4520_s12 }
  0x79   :  { %270 = vst [vmem:[#allocation2 + $0x1f] sm:$0x1] %v269_v25  ;;  %v5414_v26 = vld [vmem:[#allocation2] sm:$0xff]  ;;  %s180_s25 = scalar_lea.vmem [#allocation12], %s4521_s13  ;;  %s184_s21 = scalar_lea.vmem [#allocation12], %s4522_s23 }
  0x7a   :  { %v275_v27 = vmul.f32 %v5414_v26, %v5414_v26  ;;  %v177_v28 = vld [vmem:[%s176_s19] sm:$0x1]  ;;  %s188_s27 = scalar_lea.vmem [#allocation12], %s4523_s24  ;;  %s192_s29 = scalar_lea.vmem [#allocation12], %s4524_s22  ;;  %v4861_v57 = vld [vmem:[#allocation13 + $0x8c] ss:$16 sps:$4 sm:$0xff]  }
  0x7b   :  { %v181_v29 = vld [vmem:[%s180_s25] sm:$0x1]  ;;  %178 = vst [vmem:[#allocation2 + $0x8] sm:$0x1] %v177_v28  ;;  %s196_s3 = scalar_lea.vmem [#allocation12], %s4525_s4  ;;  %s200_s2 = scalar_lea.vmem [#allocation12], %s4526_s26  ;;  %606 = vmatprep.subr.bf16.mxu1 %v4861_v57 }
  0x7c   :  { %279 = vadd.xlane.f32.xlu0 %v275_v27  ;;  %182 = vst [vmem:[#allocation2 + $0x9] sm:$0x1] %v181_v29  ;;  %v185_v31 = vld [vmem:[%s184_s21] sm:$0x1]  ;;  %s204_s1 = scalar_lea.vmem [#allocation12], %s5412_s7 }
  0x7d   :  { %v189_v32 = vld [vmem:[%s188_s27] sm:$0x1]  ;;  %186 = vst [vmem:[#allocation2 + $0xa] sm:$0x1] %v185_v31  ;;  %v4864_v59 = vld [vmem:[#allocation13 + $0x88] ss:$16 sps:$4 sm:$0xff]  }
  0x7e   :  { %190 = vst [vmem:[#allocation2 + $0xb] sm:$0x1] %v189_v32  ;;  %v193_v34 = vld [vmem:[%s192_s29] sm:$0x1]  ;;  %v4865_v60 = vld [vmem:[#allocation13 + $0xa4] ss:$16 sps:$4 sm:$0xff]   ;;  %607 = vmatpush1.bf16.msra.mxu1 %v4864_v59 }
  0x7f   :  { %194 = vst [vmem:[#allocation2 + $0xc] sm:$0x1] %v193_v34  ;;  %v197_v35 = vld [vmem:[%s196_s3] sm:$0x1]  ;;  %v4867_v61 = vld [vmem:[#allocation13 + $0xac] ss:$16 sps:$4 sm:$0xff]  }
  0x80   :  { %v5418_v30 = vld [vmem:[#allocation2 + $0x18] sm:$0xff]  ;;  %v201_v36 = vld [vmem:[%s200_s2] sm:$0x1]  ;;  %198 = vst [vmem:[#allocation2 + $0xd] sm:$0x1] %v197_v35  ;;  %608 = vmatprep.subr.bf16.mxu1 %v4867_v61 }
  0x81   :  { %v278_v33 = vmul.f32 %v5418_v30, %v5418_v30  ;;  %202 = vst [vmem:[#allocation2 + $0xe] sm:$0x1] %v201_v36  ;;  %v205_v37 = vld [vmem:[%s204_s1] sm:$0x1]  ;;  %v4870_v63 = vld [vmem:[#allocation13 + $0xa8] ss:$16 sps:$4 sm:$0xff]  }
  0x82   :  { %206 = vst [vmem:[#allocation2 + $0xf] sm:$0x1] %v205_v37  ;;  %v4857_v54 = vld [vmem:[#allocation13 + $0x60] ss:$16 sps:$4 sm:$0xff]   ;;  %v4871_v0 = vld [vmem:[#allocation13 + $0xc4] ss:$16 sps:$4 sm:$0xff]   ;;  %609 = vmatpush1.bf16.msra.mxu1 %v4870_v63 }
  0x83   :  { %285 = vadd.xlane.f32.xlu1 %v278_v33  ;;  %552 = vmatpush1.bf16.msra.mxu0 %v4857_v54  ;;  %v4863_v58 = vld [vmem:[#allocation13 + $0x80] ss:$16 sps:$4 sm:$0xff]   ;;  %v4873_v1 = vld [vmem:[#allocation13 + $0xcc] ss:$16 sps:$4 sm:$0xff]   ;;  %v4876_v3 = vld [vmem:[#allocation13 + $0xc8] ss:$16 sps:$4 sm:$0xff]  }
  0x84   :  { %553 = vmatprep.subr.bf16.mxu0 %v4859_v56  ;;  %v4869_v62 = vld [vmem:[#allocation13 + $0xa0] ss:$16 sps:$4 sm:$0xff]   ;;  %610 = vmatprep.subr.bf16.mxu1 %v4873_v1  ;;  %v4877_v4 = vld [vmem:[#allocation13 + $0xe4] ss:$16 sps:$4 sm:$0xff]   ;;  %v4879_v5 = vld [vmem:[#allocation13 + $0xec] ss:$16 sps:$4 sm:$0xff]  }
  0x85   :  { %v4875_v2 = vld [vmem:[#allocation13 + $0xc0] ss:$16 sps:$4 sm:$0xff]   ;;  %v4882_v8 = vld [vmem:[#allocation13 + $0xe8] ss:$16 sps:$4 sm:$0xff]  }
  0x86   :  { %611 = vmatpush1.bf16.msra.mxu1 %v4876_v3  ;;  %v4881_v7 = vld [vmem:[#allocation13 + $0xe0] ss:$16 sps:$4 sm:$0xff]  }
  0x87   :  { %554 = vmatpush1.bf16.msra.mxu0 %v4863_v58  ;;  %612 = vmatprep.subr.bf16.mxu1 %v4879_v5  ;;  %v359_v53 = vld [vmem:[#allocation15] sm:$0xf] }
  0x88   :  { %555 = vmatprep.subr.bf16.mxu0 %v4865_v60 }
  0x89   :  { %v5423_v38 = vld [vmem:[#allocation2 + $0x8] sm:$0xff] }
  0x8a   :  { %v276_v39 = vmul.f32 %v5423_v38, %v5423_v38  ;;  %613 = vmatpush1.bf16.msra.mxu1 %v4882_v8 }
  0x8b   :  { %556 = vmatpush1.bf16.msra.mxu0 %v4869_v62 }
  0x8c   :  { %281 = vadd.xlane.f32.xlu0 %v276_v39  ;;  %557 = vmatprep.subr.bf16.mxu0 %v4871_v0 }
  0x8f   :  { %558 = vmatpush1.bf16.msra.mxu0 %v4875_v2 }
  0x90   :  { %559 = vmatprep.subr.bf16.mxu0 %v4877_v4 }
  0x93   :  { %560 = vmatpush1.bf16.msra.mxu0 %v4881_v7 }
 0x100   :  { %v284_v9 = vpop.xlane.xlu1 %283 }
 0x101   :  { %vm303_vm3 = vcmp.eq.f32.partialorder %v284_v9, inf  ;;  %v306_v33 = vand.u32 2147483648, %v284_v9  ;;  %vm305_vm7 = vcmp.eq.f32.partialorder %v284_v9, 0.0 }
 0x109   :  { %v280_v10 = vpop.xlane.xlu0 %279 }
 0x10a   :  { %4883 = vrsqrt.f32 %v280_v10  ;;  %vm289_vm0 = vcmp.eq.f32.partialorder %v280_v10, inf  ;;  %v292_v19 = vand.u32 2147483648, %v280_v10  ;;  %vm291_vm1 = vcmp.eq.f32.partialorder %v280_v10, 0.0 }
 0x110   :  { %v286_v11 = vpop.xlane.xlu1 %285 }
 0x111   :  { %4885 = vrsqrt.f32 %v286_v11  ;;  %vm310_vm2 = vcmp.eq.f32.partialorder %v286_v11, inf  ;;  %v313_v28 = vand.u32 2147483648, %v286_v11  ;;  %vm312_vm5 = vcmp.eq.f32.partialorder %v286_v11, 0.0 }
 0x112   :  { %4887 = vrsqrt.f32 %v284_v9 }
 0x114   :  { %v4884_v13 = vpop.eup %4883 }
 0x115   :  { %v288_v15 = vmul.f32 %v4884_v13, %v280_v10 }
 0x117   :  { %v290_v17 = vsel %vm289_vm0, %v280_v10, %v288_v15 }
 0x118   :  { %v293_v21 = vsel %vm291_vm1, %v292_v19, %v290_v17 }
 0x119   :  { %v282_v14 = vpop.xlane.xlu0 %281  ;;  %v315_v24 = vmax.f32 %v293_v21, 1e-12 }
 0x11a   :  { %4889 = vrsqrt.f32 %v282_v14  ;;  %vm296_vm4 = vcmp.eq.f32.partialorder %v282_v14, inf  ;;  %v299_v29 = vand.u32 2147483648, %v282_v14  ;;  %vm298_vm6 = vcmp.eq.f32.partialorder %v282_v14, 0.0 }
 0x11b   :  { %v4886_v16 = vpop.eup %4885  ;;  %4891 = vrcp.f32 %v315_v24 }
 0x11c   :  { %v4888_v18 = vpop.eup %4887  ;;  %v309_v20 = vmul.f32 %v4886_v16, %v286_v11 }
 0x11d   :  { %v302_v22 = vmul.f32 %v4888_v18, %v284_v9 }
 0x11e   :  { %v311_v25 = vsel %vm310_vm2, %v286_v11, %v309_v20 }
 0x11f   :  { %v304_v31 = vsel %vm303_vm3, %v284_v9, %v302_v22  ;;  %v314_v34 = vsel %vm312_vm5, %v313_v28, %v311_v25 }
 0x120   :  { %v307_v37 = vsel %vm305_vm7, %v306_v33, %v304_v31  ;;  %v318_v39 = vmax.f32 %v314_v34, 1e-12 }
 0x121   :  { %v317_v40 = vmax.f32 %v307_v37, 1e-12 }
 0x124   :  { %v4890_v23 = vpop.eup %4889 }
 0x125   :  { %v295_v27 = vmul.f32 %v4890_v23, %v282_v14  ;;  %v4892_v41 = vpop.eup %4891 }
 0x126   :  { %v320_v43 = vmul.f32 %v4892_v41, %v5414_v26  ;;  %v5435_v26 = vshrl.u32 %v365_v51, 7 }
 0x127   :  { %v297_v32 = vsel %vm296_vm4, %v282_v14, %v295_v27 }
 0x128   :  { %v300_v35 = vsel %vm298_vm6, %v299_v29, %v297_v32  ;;  %v5441_v52 = vsub.s32 2, %v5435_v26  ;;  %v5444_v54 = vsub.s32 1, %v5435_v26 }
 0x129   :  { %v316_v36 = vmax.f32 %v300_v35, 1e-12 }
 0x12a   :  { %v376_v55 = vrot.slane %v359_v53, %v5441_v52  ;;  %v372_v56 = vrot.slane %v359_v53, %v5444_v54 }
 0x12b   :  { %4893 = vrcp.f32 %v316_v36 }
 0x12c   :  { %4895 = vrcp.f32 %v318_v39 }
 0x12d   :  { %4897 = vrcp.f32 %v317_v40 }
 0x135   :  { %v4894_v42 = vpop.eup %4893 }
 0x136   :  { %v322_v44 = vmul.f32 %v4894_v42, %v5423_v38  ;;  %v4896_v46 = vpop.eup %4895  ;;  %v5438_v38 = vsub.s32 0, %v5435_v26 }
 0x137   :  { %v4898_v47 = vpop.eup %4897  ;;  %v326_v48 = vmul.f32 %v4896_v46, %v5418_v30  ;;  %v5447_v30 = vsub.s32 3, %v5435_v26 }
 0x138   :  { %v362_v45 = vpack.c.bf16 %v322_v44, %v320_v43  ;;  %v324_v49 = vmul.f32 %v4898_v47, %v5401_v12  ;;  %v368_v12 = vrot.slane %v359_v53, %v5438_v38 }
 0x139   :  { %v5453_v57 = vrot.slane %v359_v53, %v5447_v30 }
 0x13a   :  { %578 = vmatmul.mubr.bf16.vlgmr.msra.gmra.mrb[0].mxu0 %v362_v45  ;;  %631 = vmatmul.mubr.bf16.vlgmr.msra.gmra.mrb[0].mxu1 %v362_v45  ;;  %v363_v50 = vpack.c.bf16 %v326_v48, %v324_v49 }
 0x13b   :  { %587 = vmatprep.mubr.bf16.mxu0 %v5255_v6  ;;  %640 = vmatprep.mubr.bf16.mxu1 %v5255_v6 }
 0x142   :  { %588 = vmatmul.mubr.bf16.gmra.mrb[4].mxu0 %v363_v50  ;;  %641 = vmatmul.mubr.bf16.gmra.mrb[4].mxu1 %v363_v50 }
 0x20d   :  { %v579_v58 = vpop.f32.mrb[0].mxu0  ;;  %v632_v59 = vpop.f32.mrb[0].mxu1 }
 0x20e   :  { %v580_v60 = vadd.f32 %v579_v58, %v368_v12  ;;  %v633_v61 = vadd.f32 %v632_v59, %v376_v55  ;;  %v581_v62 = vpop.f32.mrb[1].mxu0  ;;  %v634_v63 = vpop.f32.mrb[1].mxu1 }
 0x20f   :  { %v582_v0 = vadd.f32 %v581_v62, %v372_v56  ;;  %v635_v1 = vadd.f32 %v634_v63, %v5453_v57  ;;  %v583_v2 = vpop.f32.mrb[2].mxu0  ;;  %v636_v3 = vpop.f32.mrb[2].mxu1 }
 0x210   :  { %v667_v4 = vmul.f32 0.70710677, %v580_v60  ;;  %v669_v5 = vmul.f32 0.70710677, %v633_v61  ;;  %v584_v8 = vadd.f32 %v583_v2, %v368_v12  ;;  %v637_v9 = vadd.f32 %v636_v3, %v376_v55  ;;  %v585_v10 = vpop.f32.mrb[3].mxu0  ;;  %v638_v11 = vpop.f32.mrb[3].mxu1 }
 0x211   :  { %v668_v6 = vmul.f32 0.70710677, %v582_v0  ;;  %v670_v7 = vmul.f32 0.70710677, %v635_v1  ;;  %v586_v13 = vadd.f32 %v585_v10, %v372_v56  ;;  %v639_v14 = vadd.f32 %v638_v11, %v5453_v57 }
 0x212   :  { %4899 = verf.f32 %v667_v4  ;;  %v671_v15 = vmul.f32 0.70710677, %v584_v8  ;;  %v651_v16 = vmul.f32 0.5, %v580_v60  ;;  %v673_v17 = vmul.f32 0.70710677, %v637_v9 }
 0x213   :  { %4901 = verf.f32 %v669_v5  ;;  %v672_v18 = vmul.f32 0.70710677, %v586_v13  ;;  %v653_v20 = vmul.f32 0.5, %v633_v61  ;;  %v674_v21 = vmul.f32 0.70710677, %v639_v14 }
 0x214   :  { %4903 = verf.f32 %v668_v6  ;;  %v652_v25 = vmul.f32 0.5, %v582_v0  ;;  %v654_v32 = vmul.f32 0.5, %v635_v1  ;;  %v655_v37 = vmul.f32 0.5, %v584_v8 }
 0x215   :  { %4905 = verf.f32 %v670_v7  ;;  %v589_v19 = vpop.f32.mrb[4].mxu0  ;;  %v642_v23 = vpop.f32.mrb[4].mxu1  ;;  %v657_v39 = vmul.f32 0.5, %v637_v9  ;;  %v656_v42 = vmul.f32 0.5, %v586_v13  ;;  %v658_v49 = vmul.f32 0.5, %v639_v14 }
 0x216   :  { %4907 = verf.f32 %v671_v15  ;;  %v590_v22 = vadd.f32 %v589_v19, %v368_v12  ;;  %v591_v24 = vpop.f32.mrb[5].mxu0  ;;  %v643_v27 = vadd.f32 %v642_v23, %v376_v55  ;;  %v644_v29 = vpop.f32.mrb[5].mxu1 }
 0x217   :  { %4909 = verf.f32 %v673_v17  ;;  %v592_v28 = vadd.f32 %v591_v24, %v372_v56  ;;  %v593_v31 = vpop.f32.mrb[6].mxu0  ;;  %v645_v34 = vadd.f32 %v644_v29, %v5453_v57  ;;  %v646_v35 = vpop.f32.mrb[6].mxu1 }
 0x218   :  { %4911 = verf.f32 %v672_v18  ;;  %v675_v33 = vmul.f32 0.70710677, %v590_v22  ;;  %v595_v36 = vpop.f32.mrb[7].mxu0  ;;  %v677_v40 = vmul.f32 0.70710677, %v643_v27  ;;  %v648_v41 = vpop.f32.mrb[7].mxu1  ;;  %v594_v45 = vadd.f32 %v593_v31, %v368_v12 }
 0x219   :  { %4913 = verf.f32 %v674_v21  ;;  %v676_v43 = vmul.f32 0.70710677, %v592_v28  ;;  %v678_v44 = vmul.f32 0.70710677, %v645_v34  ;;  %v647_v46 = vadd.f32 %v646_v35, %v376_v55 }
 0x21a   :  { %4915 = verf.f32 %v675_v33  ;;  %v5458_v47 = vadd.f32 %v595_v36, %v372_v56  ;;  %v659_v50 = vmul.f32 0.5, %v590_v22  ;;  %v661_v51 = vmul.f32 0.5, %v643_v27 }
 0x21b   :  { %4917 = verf.f32 %v677_v40  ;;  %v5460_v59 = vmul.f32 0.5, %v592_v28  ;;  %v679_v60 = vmul.f32 0.70710677, %v594_v45  ;;  %v5462_v63 = vmul.f32 0.5, %v645_v34 }
 0x21c   :  { %v4900_v48 = vpop.eup %4899  ;;  %4919 = verf.f32 %v676_v43  ;;  %v681_v0 = vmul.f32 0.70710677, %v647_v46  ;;  %v5465_v12 = vadd.f32 %v648_v41, %v5453_v57  ;;  %v680_v2 = vmul.f32 0.70710677, %v5458_v47 }
 0x21d   :  { %v4902_v53 = vpop.eup %4901  ;;  %v699_v58 = vadd.f32 1.0, %v4900_v48  ;;  %4921 = verf.f32 %v678_v44  ;;  %v663_v6 = vmul.f32 0.5, %v594_v45  ;;  %v665_v10 = vmul.f32 0.5, %v647_v46 }
 0x21e   :  { %v4904_v61 = vpop.eup %4903  ;;  %v701_v62 = vadd.f32 1.0, %v4902_v53  ;;  %4923 = verf.f32 %v679_v60  ;;  %v682_v15 = vmul.f32 0.70710677, %v5465_v12 }
 0x21f   :  { %v4906_v55 = vpop.eup %4905  ;;  %v5467_v56 = vmul.f32 %v699_v58, %v651_v16  ;;  %v700_v1 = vadd.f32 1.0, %v4904_v61  ;;  %4925 = verf.f32 %v681_v0 }
 0x220   :  { %v4908_v3 = vpop.eup %4907  ;;  %v5470_v4 = vmul.f32 %v701_v62, %v653_v20  ;;  %v702_v5 = vadd.f32 1.0, %v4906_v55  ;;  %4927 = verf.f32 %v680_v2 }
 0x221   :  { %v4910_v7 = vpop.eup %4909  ;;  %v5472_v8 = vmul.f32 %v700_v1, %v652_v25  ;;  %v703_v9 = vadd.f32 1.0, %v4908_v3  ;;  %v772_v11 = vmul.f32 %v5467_v56, %v5467_v56  ;;  %4929 = verf.f32 %v682_v15 }
 0x222   :  { %v4912_v57 = vpop.eup %4911  ;;  %v5476_v13 = vmul.f32 %v702_v5, %v654_v32  ;;  %v705_v14 = vadd.f32 1.0, %v4910_v7  ;;  %v774_v17 = vmul.f32 %v5470_v4, %v5470_v4 }
 0x223   :  { %v4914_v16 = vpop.eup %4913  ;;  %v773_v18 = vmul.f32 %v5472_v8, %v5472_v8  ;;  %v5483_v19 = vmul.f32 %v703_v9, %v655_v37  ;;  %v704_v20 = vadd.f32 1.0, %v4912_v57  ;;  %v664_v57 = vmul.f32 0.5, %v5458_v47 }
 0x224   :  { %v4916_v21 = vpop.eup %4915  ;;  %v775_v22 = vmul.f32 %v5476_v13, %v5476_v13  ;;  %v5487_v23 = vmul.f32 %v705_v14, %v657_v39  ;;  %v706_v24 = vadd.f32 1.0, %v4914_v16  ;;  %v666_v47 = vmul.f32 0.5, %v5465_v12 }
 0x225   :  { %v4918_v25 = vpop.eup %4917  ;;  %v731_v27 = vadd.f32 %v5483_v19, %v5467_v56  ;;  %v776_v28 = vmul.f32 %v5483_v19, %v5483_v19  ;;  %v5493_v29 = vmul.f32 %v704_v20, %v656_v42  ;;  %v707_v31 = vadd.f32 1.0, %v4916_v21 }
 0x226   :  { %v4920_v32 = vpop.eup %4919  ;;  %v749_v33 = vadd.f32 %v5487_v23, %v5470_v4  ;;  %v778_v34 = vmul.f32 %v5487_v23, %v5487_v23  ;;  %v5499_v35 = vmul.f32 %v706_v24, %v658_v49  ;;  %v709_v36 = vadd.f32 1.0, %v4918_v25 }
 0x227   :  { %v4922_v37 = vpop.eup %4921  ;;  %v788_v39 = vadd.f32 %v776_v28, %v772_v11  ;;  %v740_v40 = vadd.f32 %v5493_v29, %v5472_v8  ;;  %v777_v41 = vmul.f32 %v5493_v29, %v5493_v29  ;;  %v5505_v42 = vmul.f32 %v707_v31, %v659_v50 }
 0x228   :  { %v806_v43 = vadd.f32 %v778_v34, %v774_v17  ;;  %v758_v44 = vadd.f32 %v5499_v35, %v5476_v13  ;;  %v779_v45 = vmul.f32 %v5499_v35, %v5499_v35  ;;  %v5511_v46 = vmul.f32 %v709_v36, %v661_v51  ;;  %v4924_v48 = vpop.eup %4923 }
 0x229   :  { %v797_v49 = vadd.f32 %v777_v41, %v773_v18  ;;  %v732_v53 = vadd.f32 %v731_v27, %v5505_v42  ;;  %v780_v58 = vmul.f32 %v5505_v42, %v5505_v42  ;;  %v708_v60 = vadd.f32 1.0, %v4920_v32  ;;  %v4926_v61 = vpop.eup %4925 }
 0x22a   :  { %v815_v50 = vadd.f32 %v779_v45, %v775_v22  ;;  %v750_v62 = vadd.f32 %v749_v33, %v5511_v46  ;;  %v782_v0 = vmul.f32 %v5511_v46, %v5511_v46  ;;  %v710_v55 = vadd.f32 1.0, %v4922_v37  ;;  %v4928_v1 = vpop.eup %4927 }
 0x22b   :  { %v789_v2 = vadd.f32 %v788_v39, %v780_v58  ;;  %v5520_v51 = vmul.f32 %v708_v60, %v5460_v59  ;;  %v711_v3 = vadd.f32 1.0, %v4924_v48  ;;  %v713_v5 = vadd.f32 1.0, %v4926_v61  ;;  %v4930_v59 = vpop.eup %4929 }
 0x22c   :  { %v807_v7 = vadd.f32 %v806_v43, %v782_v0  ;;  %v5523_v9 = vmul.f32 %v710_v55, %v5462_v63  ;;  %v712_v11 = vadd.f32 1.0, %v4928_v1  ;;  %v714_v33 = vadd.f32 1.0, %v4930_v59 }
 0x22d   :  { %v741_v14 = vadd.f32 %v740_v40, %v5520_v51  ;;  %v781_v15 = vmul.f32 %v5520_v51, %v5520_v51  ;;  %v5529_v16 = vmul.f32 %v711_v3, %v663_v6  ;;  %v5531_v17 = vmul.f32 %v713_v5, %v665_v10 }
 0x22e   :  { %v759_v18 = vadd.f32 %v758_v44, %v5523_v9  ;;  %v783_v20 = vmul.f32 %v5523_v9, %v5523_v9  ;;  %v5536_v63 = vmul.f32 %v712_v11, %v664_v57  ;;  %v5548_v43 = vmul.f32 %v714_v33, %v666_v47 }
 0x22f   :  { %v798_v21 = vadd.f32 %v797_v49, %v781_v15  ;;  %v733_v22 = vadd.f32 %v732_v53, %v5529_v16  ;;  %v784_v24 = vmul.f32 %v5529_v16, %v5529_v16  ;;  %v751_v6 = vadd.f32 %v750_v62, %v5531_v17 }
 0x230   :  { %v816_v10 = vadd.f32 %v815_v50, %v783_v20  ;;  %v786_v25 = vmul.f32 %v5531_v17, %v5531_v17  ;;  %v742_v27 = vadd.f32 %v741_v14, %v5536_v63  ;;  %v785_v28 = vmul.f32 %v5536_v63, %v5536_v63 }
 0x231   :  { %v734_v31 = vrot.slane %v733_v22, 4  ;;  %v790_v32 = vadd.f32 %v789_v2, %v784_v24  ;;  %v752_v12 = vrot.slane %v751_v6, 4  ;;  %v760_v60 = vadd.f32 %v759_v18, %v5548_v43 }
 0x232   :  { %v808_v34 = vadd.f32 %v807_v7, %v786_v25  ;;  %v743_v36 = vrot.slane %v742_v27, 4  ;;  %v799_v37 = vadd.f32 %v798_v21, %v785_v28  ;;  %v787_v0 = vmul.f32 %v5548_v43, %v5548_v43 }
 0x233   :  { %v735_v39 = vadd.f32 %v734_v31, %v733_v22  ;;  %v791_v40 = vrot.slane %v790_v32, 4  ;;  %v753_v41 = vadd.f32 %v752_v12, %v751_v6  ;;  %v761_v3 = vrot.slane %v760_v60, 4 }
 0x234   :  { %v809_v44 = vrot.slane %v808_v34, 4  ;;  %v744_v45 = vadd.f32 %v743_v36, %v742_v27  ;;  %v800_v48 = vrot.slane %v799_v37, 4  ;;  %v817_v11 = vadd.f32 %v816_v10, %v787_v0 }
 0x235   :  { %v736_v49 = vrot.slane %v735_v39, 2  ;;  %v792_v53 = vadd.f32 %v791_v40, %v790_v32  ;;  %v754_v58 = vrot.slane %v753_v41, 2  ;;  %v762_v20 = vadd.f32 %v761_v3, %v760_v60 }
 0x236   :  { %v810_v61 = vadd.f32 %v809_v44, %v808_v34  ;;  %v745_v50 = vrot.slane %v744_v45, 2  ;;  %v801_v62 = vadd.f32 %v800_v48, %v799_v37  ;;  %v818_v22 = vrot.slane %v817_v11, 4 }
 0x237   :  { %v737_v55 = vadd.f32 %v736_v49, %v735_v39  ;;  %v793_v1 = vrot.slane %v792_v53, 2  ;;  %v755_v2 = vadd.f32 %v754_v58, %v753_v41  ;;  %v763_v27 = vrot.slane %v762_v20, 2 }
 0x238   :  { %v811_v5 = vrot.slane %v810_v61, 2  ;;  %v746_v7 = vadd.f32 %v745_v50, %v744_v45  ;;  %v802_v57 = vrot.slane %v801_v62, 2  ;;  %v819_v12 = vadd.f32 %v818_v22, %v817_v11 }
 0x239   :  { %v738_v14 = vrot.slane %v737_v55, 1  ;;  %v794_v15 = vadd.f32 %v793_v1, %v792_v53  ;;  %v756_v59 = vrot.slane %v755_v2, 1  ;;  %v764_v10 = vadd.f32 %v763_v27, %v762_v20 }
 0x23a   :  { %v812_v47 = vadd.f32 %v811_v5, %v810_v61  ;;  %v747_v18 = vrot.slane %v746_v7, 1  ;;  %v803_v21 = vadd.f32 %v802_v57, %v801_v62  ;;  %v820_v41 = vrot.slane %v819_v12, 2 }
 0x23b   :  { %v739_v24 = vadd.f32 %v738_v14, %v737_v55  ;;  %v795_v6 = vrot.slane %v794_v15, 1  ;;  %v757_v25 = vadd.f32 %v756_v59, %v755_v2  ;;  %v765_v49 = vrot.slane %v764_v10, 1 }
 0x23c   :  { %v813_v28 = vrot.slane %v812_v47, 1  ;;  %v748_v31 = vadd.f32 %v747_v18, %v746_v7  ;;  %v804_v32 = vrot.slane %v803_v21, 1  ;;  %v821_v61 = vadd.f32 %v820_v41, %v819_v12 }
 0x23d   :  { %v768_v33 = vmul.f32 0.03125, %v739_v24  ;;  %v796_v34 = vadd.f32 %v795_v6, %v794_v15  ;;  %v770_v36 = vmul.f32 0.03125, %v757_v25  ;;  %v766_v62 = vadd.f32 %v765_v49, %v764_v10 }
 0x23e   :  { %v814_v37 = vadd.f32 %v813_v28, %v812_v47  ;;  %v769_v39 = vmul.f32 0.03125, %v748_v31  ;;  %v805_v40 = vadd.f32 %v804_v32, %v803_v21  ;;  %v822_v1 = vrot.slane %v821_v61, 1 }
 0x23f   :  { %v824_v44 = vmul.f32 0.03125, %v796_v34  ;;  %v828_v45 = vmul.f32 %v768_v33, %v768_v33  ;;  %v830_v48 = vmul.f32 %v770_v36, %v770_v36  ;;  %v771_v3 = vmul.f32 0.03125, %v766_v62  ;;  %v360_v34 = vld [vmem:[#allocation15 + $0x15] sm:$0xf] }
 0x240   :  { %v826_v53 = vmul.f32 0.03125, %v814_v37  ;;  %v825_v58 = vmul.f32 0.03125, %v805_v40  ;;  %v829_v60 = vmul.f32 %v769_v39, %v769_v39  ;;  %v823_v7 = vadd.f32 %v822_v1, %v821_v61 }
 0x241   :  { %v832_v50 = vsub.f32 %v824_v44, %v828_v45  ;;  %v831_v57 = vmul.f32 %v771_v3, %v771_v3  ;;  %v5256_v20 = vmov 1966171168  }
 0x242   :  { %v834_v0 = vsub.f32 %v826_v53, %v830_v48  ;;  %v833_v55 = vsub.f32 %v825_v58, %v829_v60  ;;  %v827_v14 = vmul.f32 0.03125, %v823_v7  ;;  %v851_v47 = vunpack.c.l.s4 %v5256_v20 }
 0x243   :  { %v836_v2 = vadd.f32 1e-05, %v832_v50 }
 0x244   :  { %v837_v5 = vadd.f32 1e-05, %v833_v55  ;;  %v838_v11 = vadd.f32 1e-05, %v834_v0  ;;  %v835_v15 = vsub.f32 %v827_v14, %v831_v57  ;;  %v852_v21 = vunpack.c.0.s8 %v851_v47 }
 0x245   :  { %4931 = vrsqrt.f32 %v836_v2 }
 0x246   :  { %4933 = vrsqrt.f32 %v837_v5  ;;  %v839_v59 = vadd.f32 1e-05, %v835_v15  ;;  %v5554_v6 = vsub.s32 %v852_v21, %v5435_v26 }
 0x247   :  { %4935 = vrsqrt.f32 %v838_v11 }
 0x248   :  { %4937 = vrsqrt.f32 %v839_v59 }
 0x24f   :  { %v4932_v18 = vpop.eup %4931 }
 0x250   :  { %v4934_v22 = vpop.eup %4933 }
 0x251   :  { %v848_v24 = vcombine.low %v4932_v18, %v4934_v22  ;;  %v4936_v25 = vpop.eup %4935 }
 0x252   :  { %v4938_v27 = vpop.eup %4937 }
 0x253   :  { %v856_v28 = vrot.slane %v848_v24, %v5554_v6  ;;  %v849_v31 = vcombine.low %v4936_v25, %v4938_v27 }
 0x255   :  { %v863_v32 = vrot.slane %v849_v31, %v5554_v6 }
 0x257   :  { %v864_v12 = vcombine.low %v856_v28, %v863_v32 }
 0x259   :  { %v871_v10 = vrot.slane %v864_v12, %v5554_v6 }
 0x25b   :  { %v873_v37 = vmul.f32 %v871_v10, %v360_v34 }
 0x25d   :  { %v878_v40 = vrot.slane %v873_v37, %v5438_v38  ;;  %v882_v41 = vrot.slane %v873_v37, %v5444_v54  ;;  %v886_v44 = vrot.slane %v873_v37, %v5441_v52  ;;  %v890_v45 = vrot.slane %v873_v37, %v5447_v30 }
 0x25f   :  { %v895_v48 = vmul.f32 %v878_v40, %v768_v33  ;;  %v896_v49 = vmul.f32 %v882_v41, %v769_v39  ;;  %v897_v53 = vmul.f32 %v886_v44, %v770_v36  ;;  %v898_v58 = vmul.f32 %v890_v45, %v771_v3 }
 0x260   :  { %v929_v60 = vmul.f32 %v878_v40, %v5467_v56  ;;  %v930_v61 = vmul.f32 %v882_v41, %v5472_v8  ;;  %v931_v50 = vmul.f32 %v886_v44, %v5470_v4  ;;  %v932_v62 = vmul.f32 %v890_v45, %v5476_v13 }
 0x261   :  { %v903_v0 = vcombine.low %v895_v48, %v896_v49  ;;  %v904_v55 = vcombine.low %v897_v53, %v898_v58  ;;  %v933_v1 = vmul.f32 %v878_v40, %v5483_v19  ;;  %v934_v2 = vmul.f32 %v882_v41, %v5493_v29 }
 0x262   :  { %v935_v5 = vmul.f32 %v886_v44, %v5487_v23  ;;  %v936_v33 = vmul.f32 %v890_v45, %v5499_v35  ;;  %v937_v36 = vmul.f32 %v878_v40, %v5505_v42  ;;  %v938_v56 = vmul.f32 %v882_v41, %v5520_v51  ;;  %v361_v42 = vld [vmem:[#allocation15 + $0x19] sm:$0xf] }
 0x263   :  { %v911_v8 = vrot.slane %v903_v0, %v5554_v6  ;;  %v918_v4 = vrot.slane %v904_v55, %v5554_v6  ;;  %v939_v13 = vmul.f32 %v886_v44, %v5511_v46  ;;  %v940_v39 = vmul.f32 %v890_v45, %v5523_v9 }
 0x264   :  { %v941_v19 = vmul.f32 %v878_v40, %v5529_v16  ;;  %v942_v29 = vmul.f32 %v882_v41, %v5536_v63  ;;  %v943_v23 = vmul.f32 %v886_v44, %v5531_v17  ;;  %v944_v35 = vmul.f32 %v890_v45, %v5548_v43 }
 0x265   :  { %v919_v3 = vcombine.low %v911_v8, %v918_v4 }
 0x267   :  { %v926_v51 = vrot.slane %v919_v3, %v5554_v6 }
 0x269   :  { %v928_v7 = vsub.f32 %v361_v42, %v926_v51 }
 0x26b   :  { %v949_v57 = vrot.slane %v928_v7, %v5438_v38  ;;  %v953_v11 = vrot.slane %v928_v7, %v5444_v54  ;;  %v957_v46 = vrot.slane %v928_v7, %v5441_v52  ;;  %v961_v9 = vrot.slane %v928_v7, %v5447_v30 }
 0x26d   :  { %v5586_v16 = vadd.f32 %v949_v57, %v929_v60  ;;  %v967_v63 = vadd.f32 %v953_v11, %v930_v61  ;;  %v5588_v14 = vadd.f32 %v957_v46, %v931_v50  ;;  %v5590_v17 = vadd.f32 %v961_v9, %v932_v62 }
 0x26e   :  { %v5592_v43 = vadd.f32 %v949_v57, %v933_v1  ;;  %v971_v15 = vadd.f32 %v953_v11, %v934_v2  ;;  %v5594_v59 = vadd.f32 %v957_v46, %v935_v5  ;;  %v5596_v20 = vadd.f32 %v961_v9, %v936_v33 }
 0x26f   :  { %v5598_v47 = vadd.f32 %v949_v57, %v937_v36  ;;  %v5600_v18 = vadd.f32 %v953_v11, %v938_v56  ;;  %v5602_v21 = vadd.f32 %v957_v46, %v939_v13  ;;  %v5604_v22 = vadd.f32 %v961_v9, %v940_v39 }
 0x270   :  { %v5606_v24 = vadd.f32 %v949_v57, %v941_v19  ;;  %v5608_v25 = vadd.f32 %v953_v11, %v942_v29  ;;  %v5610_v27 = vadd.f32 %v957_v46, %v943_v23  ;;  %v5612_v28 = vadd.f32 %v961_v9, %v944_v35 }
 0x271   :  { %5225 = dma.done.wait [#allocation7], 24576 }
 0x272   :  { %5226 = vsyncadd [#allocation7], 4294942720  ;;  %v5614_v31 = vpack.c.bf16 %v971_v15, %v967_v63  ;;  %s5257_s28 = smov 512   ;;  %s5258_s30 = smov [#allocation5]  }
 0x273   :  { %1002 = sst [smem:[#allocation22]] %s5257_s28  ;;  %s998_s9 = sshll.u32 %s5258_s30, 4  ;;  %s999_s9 = int_to_ptr.vmem [resolvable:$true] %s998_s9 }
 0x274   :  { %1004 = sst [smem:[#allocation22 + $0x1]] %s5257_s28  ;;  %1287 = vmatprep.mubr.bf16.mxu0 %v5614_v31  ;;  %1393 = vmatprep.mubr.bf16.mxu1 %v5614_v31  ;;  %s5259_s10 = smov [#allocation7 + $0x2]  }
 0x275   :  { %1006 = sst [smem:[#allocation22 + $0x2]] %s5249_s20  ;;  %s5260_s11 = smov [#allocation21]  }
 0x276   :  { %1008 = sst [smem:[#allocation22 + $0x3]] %s5246_s14 }
 0x277   :  { %1010 = sst [smem:[#allocation22 + $0x4]] %s5240_s0 }
 0x278   :  { %1012 = sst [smem:[#allocation22 + $0x5]] %s5247_s18 }
 0x279   :  { %1014 = sst [smem:[#allocation22 + $0x6]] %s5236_s15 }
 0x27a   :  { %1016 = sst [smem:[#allocation22 + $0x7]] %s5246_s14 }
 0x27b   :  { %1018 = sst [smem:[#allocation22 + $0x8]] %s5249_s20 }
 0x27c   :  { %1020 = dma.general %s6505_s5, 24576, %s999_s9, %s5259_s10, %s5260_s11, [#allocation22], %s5363_s16, 0  }
 0x27d   :  { %v1022_v32 = vld [vmem:[#allocation3 + $0x8] sm:$0xff]  ;;  %v1024_v12 = vld [vmem:[#allocation3 + $0x18] sm:$0xff]  ;;  %v1021_v34 = vld [vmem:[#allocation3] sm:$0xff] }
 0x27e   :  { %1255 = vmatprep.subr.bf16.mxu0 %v1022_v32  ;;  %1361 = vmatprep.subr.bf16.mxu1 %v1024_v12  ;;  %v1023_v10 = vld [vmem:[#allocation3 + $0x10] sm:$0xff]  ;;  %v1028_v37 = vld [vmem:[#allocation3 + $0x38] sm:$0xff]  ;;  %v1030_v40 = vld [vmem:[#allocation3 + $0x48] sm:$0xff] }
 0x27f   :  { %1256 = vmatpush1.bf16.msra.mxu0 %v1021_v34  ;;  %1362 = vmatpush1.bf16.msra.mxu1 %v1023_v10  ;;  %v1027_v41 = vld [vmem:[#allocation3 + $0x30] sm:$0xff]  ;;  %v1029_v44 = vld [vmem:[#allocation3 + $0x40] sm:$0xff]  ;;  %v1034_v45 = vld [vmem:[#allocation3 + $0x68] sm:$0xff] }
 0x280   :  { %1257 = vmatprep.subr.bf16.mxu0 %v1028_v37  ;;  %1363 = vmatprep.subr.bf16.mxu1 %v1030_v40  ;;  %v1036_v48 = vld [vmem:[#allocation3 + $0x78] sm:$0xff]  ;;  %v1033_v49 = vld [vmem:[#allocation3 + $0x60] sm:$0xff]  ;;  %v1035_v53 = vld [vmem:[#allocation3 + $0x70] sm:$0xff] }
 0x281   :  { %v1040_v58 = vld [vmem:[#allocation3 + $0x98] sm:$0xff]  ;;  %v1042_v60 = vld [vmem:[#allocation3 + $0xa8] sm:$0xff]  ;;  %v1039_v61 = vld [vmem:[#allocation3 + $0x90] sm:$0xff] }
 0x282   :  { %v1041_v50 = vld [vmem:[#allocation3 + $0xa0] sm:$0xff]  ;;  %v1046_v62 = vld [vmem:[#allocation3 + $0xc8] sm:$0xff]  ;;  %v1048_v0 = vld [vmem:[#allocation3 + $0xd8] sm:$0xff] }
 0x283   :  { %1258 = vmatpush1.bf16.msra.mxu0 %v1027_v41  ;;  %1364 = vmatpush1.bf16.msra.mxu1 %v1029_v44  ;;  %v1045_v55 = vld [vmem:[#allocation3 + $0xc0] sm:$0xff]  ;;  %v1047_v1 = vld [vmem:[#allocation3 + $0xd0] sm:$0xff]  ;;  %v1052_v2 = vld [vmem:[#allocation3 + $0xf8] sm:$0xff] }
 0x284   :  { %1259 = vmatprep.subr.bf16.mxu0 %v1034_v45  ;;  %1365 = vmatprep.subr.bf16.mxu1 %v1036_v48  ;;  %v1054_v5 = vld [vmem:[#allocation3 + $0x108] sm:$0xff]  ;;  %v1051_v33 = vld [vmem:[#allocation3 + $0xf0] sm:$0xff]  ;;  %v1053_v36 = vld [vmem:[#allocation3 + $0x100] sm:$0xff] }
 0x285   :  { %v1058_v56 = vld [vmem:[#allocation3 + $0x128] sm:$0xff]  ;;  %v1060_v8 = vld [vmem:[#allocation3 + $0x138] sm:$0xff]  ;;  %v1057_v4 = vld [vmem:[#allocation3 + $0x120] sm:$0xff] }
 0x286   :  { %v1059_v13 = vld [vmem:[#allocation3 + $0x130] sm:$0xff]  ;;  %v1064_v39 = vld [vmem:[#allocation3 + $0x158] sm:$0xff]  ;;  %v1066_v19 = vld [vmem:[#allocation3 + $0x168] sm:$0xff] }
 0x287   :  { %1260 = vmatpush1.bf16.msra.mxu0 %v1033_v49  ;;  %1366 = vmatpush1.bf16.msra.mxu1 %v1035_v53  ;;  %v1063_v29 = vld [vmem:[#allocation3 + $0x150] sm:$0xff]  ;;  %v1065_v23 = vld [vmem:[#allocation3 + $0x160] sm:$0xff]  ;;  %v1070_v35 = vld [vmem:[#allocation3 + $0x188] sm:$0xff] }
 0x288   :  { %1261 = vmatprep.subr.bf16.mxu0 %v1040_v58  ;;  %1367 = vmatprep.subr.bf16.mxu1 %v1042_v60  ;;  %v1072_v3 = vld [vmem:[#allocation3 + $0x198] sm:$0xff]  ;;  %v1069_v42 = vld [vmem:[#allocation3 + $0x180] sm:$0xff]  ;;  %v1071_v51 = vld [vmem:[#allocation3 + $0x190] sm:$0xff] }
 0x289   :  { %v1076_v7 = vld [vmem:[#allocation3 + $0x1b8] sm:$0xff]  ;;  %v1078_v57 = vld [vmem:[#allocation3 + $0x1c8] sm:$0xff]  ;;  %v1075_v11 = vld [vmem:[#allocation3 + $0x1b0] sm:$0xff] }
 0x28a   :  { %v1077_v46 = vld [vmem:[#allocation3 + $0x1c0] sm:$0xff]  ;;  %v1082_v9 = vld [vmem:[#allocation3 + $0x1e8] sm:$0xff]  ;;  %v1084_v63 = vld [vmem:[#allocation3 + $0x1f8] sm:$0xff] }
 0x28b   :  { %1262 = vmatpush1.bf16.msra.mxu0 %v1039_v61  ;;  %1368 = vmatpush1.bf16.msra.mxu1 %v1041_v50  ;;  %v1081_v15 = vld [vmem:[#allocation3 + $0x1e0] sm:$0xff]  ;;  %v1083_v32 = vld [vmem:[#allocation3 + $0x1f0] sm:$0xff]  ;;  %v1088_v12 = vld [vmem:[#allocation3 + $0x218] sm:$0xff] }
 0x28c   :  { %1263 = vmatprep.subr.bf16.mxu0 %v1046_v62  ;;  %1369 = vmatprep.subr.bf16.mxu1 %v1048_v0  ;;  %v1090_v34 = vld [vmem:[#allocation3 + $0x228] sm:$0xff]  ;;  %v1087_v10 = vld [vmem:[#allocation3 + $0x210] sm:$0xff]  ;;  %v1089_v37 = vld [vmem:[#allocation3 + $0x220] sm:$0xff] }
 0x28d   :  { %v1094_v40 = vld [vmem:[#allocation3 + $0x248] sm:$0xff]  ;;  %v1096_v41 = vld [vmem:[#allocation3 + $0x258] sm:$0xff]  ;;  %v1093_v44 = vld [vmem:[#allocation3 + $0x240] sm:$0xff] }
 0x28e   :  { %v1095_v45 = vld [vmem:[#allocation3 + $0x250] sm:$0xff]  ;;  %v1100_v48 = vld [vmem:[#allocation3 + $0x278] sm:$0xff]  ;;  %v1102_v49 = vld [vmem:[#allocation3 + $0x288] sm:$0xff] }
 0x28f   :  { %1264 = vmatpush1.bf16.msra.mxu0 %v1045_v55  ;;  %1370 = vmatpush1.bf16.msra.mxu1 %v1047_v1  ;;  %v1099_v53 = vld [vmem:[#allocation3 + $0x270] sm:$0xff]  ;;  %v1101_v58 = vld [vmem:[#allocation3 + $0x280] sm:$0xff]  ;;  %v1106_v60 = vld [vmem:[#allocation3 + $0x2a8] sm:$0xff] }
 0x290   :  { %1265 = vmatprep.subr.bf16.mxu0 %v1052_v2  ;;  %1371 = vmatprep.subr.bf16.mxu1 %v1054_v5  ;;  %v1108_v61 = vld [vmem:[#allocation3 + $0x2b8] sm:$0xff]  ;;  %v1105_v50 = vld [vmem:[#allocation3 + $0x2a0] sm:$0xff]  ;;  %v1107_v62 = vld [vmem:[#allocation3 + $0x2b0] sm:$0xff] }
 0x291   :  { %v1112_v0 = vld [vmem:[#allocation3 + $0x2d8] sm:$0xff]  ;;  %v1114_v55 = vld [vmem:[#allocation3 + $0x2e8] sm:$0xff]  ;;  %v1111_v1 = vld [vmem:[#allocation3 + $0x2d0] sm:$0xff] }
 0x292   :  { %v1113_v2 = vld [vmem:[#allocation3 + $0x2e0] sm:$0xff]  ;;  %v1118_v5 = vld [vmem:[#allocation3 + $0x308] sm:$0xff] }
 0x293   :  { %1266 = vmatpush1.bf16.msra.mxu0 %v1051_v33  ;;  %1372 = vmatpush1.bf16.msra.mxu1 %v1053_v36  ;;  %v1120_v33 = vld [vmem:[#allocation3 + $0x318] sm:$0xff]  ;;  %v5631_v36 = vpack.c.bf16 %v5592_v43, %v5586_v16  ;;  %v1123_v16 = vld [vmem:[#allocation3 + $0x330] sm:$0xff]  ;;  %v1125_v43 = vld [vmem:[#allocation3 + $0x340] sm:$0xff] }
 0x294   :  { %1267 = vmatprep.subr.bf16.mxu0 %v1058_v56  ;;  %1373 = vmatprep.subr.bf16.mxu1 %v1060_v8  ;;  %v1117_v56 = vld [vmem:[#allocation3 + $0x300] sm:$0xff]  ;;  %v1119_v8 = vld [vmem:[#allocation3 + $0x310] sm:$0xff] }
 0x297   :  { %1268 = vmatpush1.bf16.msra.mxu0 %v1057_v4  ;;  %1374 = vmatpush1.bf16.msra.mxu1 %v1059_v13  ;;  %v1124_v4 = vld [vmem:[#allocation3 + $0x338] sm:$0xff]  ;;  %v1126_v13 = vld [vmem:[#allocation3 + $0x348] sm:$0xff] }
 0x298   :  { %1269 = vmatprep.subr.bf16.mxu0 %v1064_v39  ;;  %1375 = vmatprep.subr.bf16.mxu1 %v1066_v19  ;;  %v5635_v39 = vpack.c.bf16 %v5608_v25, %v5600_v18  ;;  %v1130_v19 = vld [vmem:[#allocation3 + $0x368] sm:$0xff]  ;;  %v5643_v18 = vpack.c.bf16 %v5606_v24, %v5598_v47  ;;  %v1129_v25 = vld [vmem:[#allocation3 + $0x360] sm:$0xff]  ;;  %v1135_v47 = vld [vmem:[#allocation3 + $0x390] sm:$0xff] }
 0x299   :  { %v1137_v24 = vld [vmem:[#allocation3 + $0x3a0] sm:$0xff] }
 0x29b   :  { %1270 = vmatpush1.bf16.msra.mxu0 %v1063_v29  ;;  %1376 = vmatpush1.bf16.msra.mxu1 %v1065_v23  ;;  %v1132_v29 = vld [vmem:[#allocation3 + $0x378] sm:$0xff]  ;;  %v1131_v23 = vld [vmem:[#allocation3 + $0x370] sm:$0xff] }
 0x29c   :  { %1271 = vmatprep.subr.bf16.mxu0 %v1070_v35  ;;  %1377 = vmatprep.subr.bf16.mxu1 %v1072_v3  ;;  %v1136_v35 = vld [vmem:[#allocation3 + $0x398] sm:$0xff]  ;;  %v1138_v3 = vld [vmem:[#allocation3 + $0x3a8] sm:$0xff] }
 0x29f   :  { %1272 = vmatpush1.bf16.msra.mxu0 %v1069_v42  ;;  %1378 = vmatpush1.bf16.msra.mxu1 %v1071_v51  ;;  %v5647_v42 = vpack.c.bf16 %v5596_v20, %v5590_v17  ;;  %v1142_v51 = vld [vmem:[#allocation3 + $0x3c8] sm:$0xff]  ;;  %v1141_v17 = vld [vmem:[#allocation3 + $0x3c0] sm:$0xff]  ;;  %v1143_v20 = vld [vmem:[#allocation3 + $0x3d0] sm:$0xff] }
 0x2a0   :  { %1273 = vmatprep.subr.bf16.mxu0 %v1076_v7  ;;  %1379 = vmatprep.subr.bf16.mxu1 %v1078_v57  ;;  %v1144_v7 = vld [vmem:[#allocation3 + $0x3d8] sm:$0xff] }
 0x2a1   :  { %v1148_v57 = vld [vmem:[#allocation3 + $0x3f8] sm:$0xff] }
 0x2a3   :  { %1274 = vmatpush1.bf16.msra.mxu0 %v1075_v11  ;;  %1380 = vmatpush1.bf16.msra.mxu1 %v1077_v46  ;;  %v1150_v11 = vld [vmem:[#allocation3 + $0x408] sm:$0xff]  ;;  %v1147_v46 = vld [vmem:[#allocation3 + $0x3f0] sm:$0xff] }
 0x2a4   :  { %1275 = vmatprep.subr.bf16.mxu0 %v1082_v9  ;;  %1381 = vmatprep.subr.bf16.mxu1 %v1084_v63  ;;  %v1149_v9 = vld [vmem:[#allocation3 + $0x400] sm:$0xff]  ;;  %v1154_v63 = vld [vmem:[#allocation3 + $0x428] sm:$0xff] }
 0x2a7   :  { %1276 = vmatpush1.bf16.msra.mxu0 %v1081_v15  ;;  %1382 = vmatpush1.bf16.msra.mxu1 %v1083_v32  ;;  %v1156_v15 = vld [vmem:[#allocation3 + $0x438] sm:$0xff]  ;;  %v1153_v32 = vld [vmem:[#allocation3 + $0x420] sm:$0xff] }
 0x2a8   :  { %1277 = vmatprep.subr.bf16.mxu0 %v1088_v12  ;;  %1383 = vmatprep.subr.bf16.mxu1 %v1090_v34  ;;  %v1155_v12 = vld [vmem:[#allocation3 + $0x430] sm:$0xff]  ;;  %v1160_v34 = vld [vmem:[#allocation3 + $0x458] sm:$0xff] }
 0x2ab   :  { %1278 = vmatpush1.bf16.msra.mxu0 %v1087_v10  ;;  %1384 = vmatpush1.bf16.msra.mxu1 %v1089_v37  ;;  %v1162_v10 = vld [vmem:[#allocation3 + $0x468] sm:$0xff]  ;;  %v1159_v37 = vld [vmem:[#allocation3 + $0x450] sm:$0xff] }
 0x2ac   :  { %1279 = vmatprep.subr.bf16.mxu0 %v1094_v40  ;;  %1385 = vmatprep.subr.bf16.mxu1 %v1096_v41  ;;  %v1161_v40 = vld [vmem:[#allocation3 + $0x460] sm:$0xff]  ;;  %v1166_v41 = vld [vmem:[#allocation3 + $0x488] sm:$0xff] }
 0x2af   :  { %1280 = vmatpush1.bf16.msra.mxu0 %v1093_v44  ;;  %1386 = vmatpush1.bf16.msra.mxu1 %v1095_v45  ;;  %v1168_v44 = vld [vmem:[#allocation3 + $0x498] sm:$0xff]  ;;  %v1165_v45 = vld [vmem:[#allocation3 + $0x480] sm:$0xff] }
 0x2b0   :  { %1281 = vmatprep.subr.bf16.mxu0 %v1100_v48  ;;  %1387 = vmatprep.subr.bf16.mxu1 %v1102_v49  ;;  %v1167_v48 = vld [vmem:[#allocation3 + $0x490] sm:$0xff]  ;;  %v1172_v49 = vld [vmem:[#allocation3 + $0x4b8] sm:$0xff] }
 0x2b3   :  { %1282 = vmatpush1.bf16.msra.mxu0 %v1099_v53  ;;  %1388 = vmatpush1.bf16.msra.mxu1 %v1101_v58  ;;  %v1174_v53 = vld [vmem:[#allocation3 + $0x4c8] sm:$0xff]  ;;  %v1171_v58 = vld [vmem:[#allocation3 + $0x4b0] sm:$0xff] }
 0x2b4   :  { %1283 = vmatprep.subr.bf16.mxu0 %v1106_v60  ;;  %1389 = vmatprep.subr.bf16.mxu1 %v1108_v61  ;;  %v1173_v60 = vld [vmem:[#allocation3 + $0x4c0] sm:$0xff]  ;;  %v1178_v61 = vld [vmem:[#allocation3 + $0x4e8] sm:$0xff] }
 0x2b7   :  { %1284 = vmatpush1.bf16.msra.mxu0 %v1105_v50  ;;  %1390 = vmatpush1.bf16.msra.mxu1 %v1107_v62  ;;  %v1180_v50 = vld [vmem:[#allocation3 + $0x4f8] sm:$0xff]  ;;  %v1177_v62 = vld [vmem:[#allocation3 + $0x4e0] sm:$0xff] }
 0x2b8   :  { %1285 = vmatprep.subr.bf16.mxu0 %v1112_v0  ;;  %1391 = vmatprep.subr.bf16.mxu1 %v1114_v55  ;;  %v1179_v0 = vld [vmem:[#allocation3 + $0x4f0] sm:$0xff]  ;;  %v1184_v55 = vld [vmem:[#allocation3 + $0x518] sm:$0xff] }
 0x2bb   :  { %1286 = vmatpush1.bf16.msra.mxu0 %v1111_v1  ;;  %1392 = vmatpush1.bf16.msra.mxu1 %v1113_v2  ;;  %v1186_v1 = vld [vmem:[#allocation3 + $0x528] sm:$0xff]  ;;  %v1183_v2 = vld [vmem:[#allocation3 + $0x510] sm:$0xff] }
 0x2bc   :  { %1308 = vmatprep.subr.bf16.mxu0 %v1118_v5  ;;  %1414 = vmatprep.subr.bf16.mxu1 %v1120_v33  ;;  %v1185_v5 = vld [vmem:[#allocation3 + $0x520] sm:$0xff]  ;;  %v1190_v33 = vld [vmem:[#allocation3 + $0x548] sm:$0xff] }
 0x2be   :  { %1288 = vmatmul.mubr.bf16.vlgmr.msra.gmra.mrb[8].mxu0 %v5631_v36  ;;  %1394 = vmatmul.mubr.bf16.vlgmr.msra.gmra.mrb[8].mxu1 %v5631_v36 }
 0x2bf   :  { %1309 = vmatpush1.bf16.msra.mxu0 %v1117_v56  ;;  %1415 = vmatpush1.bf16.msra.mxu1 %v1119_v8  ;;  %v1192_v56 = vld [vmem:[#allocation3 + $0x558] sm:$0xff]  ;;  %v1189_v8 = vld [vmem:[#allocation3 + $0x540] sm:$0xff] }
 0x2c0   :  { %1310 = vmatprep.subr.bf16.mxu0 %v1124_v4  ;;  %1416 = vmatprep.subr.bf16.mxu1 %v1126_v13  ;;  %v1191_v4 = vld [vmem:[#allocation3 + $0x550] sm:$0xff]  ;;  %v1196_v13 = vld [vmem:[#allocation3 + $0x578] sm:$0xff] }
 0x2c1   :  { %1297 = vmatprep.mubr.bf16.mxu0 %v5635_v39  ;;  %1403 = vmatprep.mubr.bf16.mxu1 %v5635_v39 }
 0x2c3   :  { %1311 = vmatpush1.bf16.msra.mxu0 %v1123_v16  ;;  %1417 = vmatpush1.bf16.msra.mxu1 %v1125_v43  ;;  %v1198_v16 = vld [vmem:[#allocation3 + $0x588] sm:$0xff]  ;;  %v1195_v43 = vld [vmem:[#allocation3 + $0x570] sm:$0xff] }
 0x2c4   :  { %1312 = vmatprep.subr.bf16.mxu0 %v1130_v19  ;;  %1418 = vmatprep.subr.bf16.mxu1 %v1132_v29  ;;  %v1197_v19 = vld [vmem:[#allocation3 + $0x580] sm:$0xff]  ;;  %v1202_v29 = vld [vmem:[#allocation3 + $0x5a8] sm:$0xff] }
 0x2c6   :  { %1298 = vmatmul.mubr.bf16.gmra.mrb[12].mxu0 %v5643_v18  ;;  %1404 = vmatmul.mubr.bf16.gmra.mrb[12].mxu1 %v5643_v18 }
 0x2c7   :  { %1313 = vmatpush1.bf16.msra.mxu0 %v1129_v25  ;;  %1419 = vmatpush1.bf16.msra.mxu1 %v1131_v23  ;;  %v1204_v25 = vld [vmem:[#allocation3 + $0x5b8] sm:$0xff]  ;;  %v1201_v23 = vld [vmem:[#allocation3 + $0x5a0] sm:$0xff] }
 0x2c8   :  { %1314 = vmatprep.subr.bf16.mxu0 %v1136_v35  ;;  %1420 = vmatprep.subr.bf16.mxu1 %v1138_v3  ;;  %v1203_v35 = vld [vmem:[#allocation3 + $0x5b0] sm:$0xff]  ;;  %v1208_v3 = vld [vmem:[#allocation3 + $0x5d8] sm:$0xff] }
 0x2c9   :  { %1340 = vmatprep.mubr.bf16.mxu0 %v5647_v42  ;;  %1446 = vmatprep.mubr.bf16.mxu1 %v5647_v42 }
 0x2cb   :  { %1315 = vmatpush1.bf16.msra.mxu0 %v1135_v47  ;;  %1421 = vmatpush1.bf16.msra.mxu1 %v1137_v24  ;;  %v1210_v47 = vld [vmem:[#allocation3 + $0x5e8] sm:$0xff]  ;;  %v1207_v24 = vld [vmem:[#allocation3 + $0x5d0] sm:$0xff] }
 0x2cc   :  { %1316 = vmatprep.subr.bf16.mxu0 %v1142_v51  ;;  %1422 = vmatprep.subr.bf16.mxu1 %v1144_v7  ;;  %v1209_v51 = vld [vmem:[#allocation3 + $0x5e0] sm:$0xff]  ;;  %v1026_v7 = vld [vmem:[#allocation3 + $0x28] sm:$0xff] }
 0x2cf   :  { %1317 = vmatpush1.bf16.msra.mxu0 %v1141_v17  ;;  %1423 = vmatpush1.bf16.msra.mxu1 %v1143_v20  ;;  %v5655_v17 = vpack.c.bf16 %v5594_v59, %v5588_v14  ;;  %v5659_v20 = vpack.c.bf16 %v5612_v28, %v5604_v22  ;;  %v1038_v14 = vld [vmem:[#allocation3 + $0x88] sm:$0xff]  ;;  %v5667_v59 = vpack.c.bf16 %v5610_v27, %v5602_v21  ;;  %v1037_v22 = vld [vmem:[#allocation3 + $0x80] sm:$0xff]  ;;  %v1044_v28 = vld [vmem:[#allocation3 + $0xb8] sm:$0xff] }
 0x2d0   :  { %1318 = vmatprep.subr.bf16.mxu0 %v1148_v57  ;;  %1424 = vmatprep.subr.bf16.mxu1 %v1150_v11  ;;  %v1025_v57 = vld [vmem:[#allocation3 + $0x20] sm:$0xff]  ;;  %v1032_v11 = vld [vmem:[#allocation3 + $0x58] sm:$0xff]  ;;  %v1055_v21 = vld [vmem:[#allocation3 + $0x110] sm:$0xff] }
 0x2d1   :  { %v1062_v27 = vld [vmem:[#allocation3 + $0x148] sm:$0xff] }
 0x2d3   :  { %1319 = vmatpush1.bf16.msra.mxu0 %v1147_v46  ;;  %1425 = vmatpush1.bf16.msra.mxu1 %v1149_v9  ;;  %v1031_v46 = vld [vmem:[#allocation3 + $0x50] sm:$0xff] }
 0x2d4   :  { %1320 = vmatprep.subr.bf16.mxu0 %v1154_v63  ;;  %1426 = vmatprep.subr.bf16.mxu1 %v1156_v15  ;;  %v1043_v9 = vld [vmem:[#allocation3 + $0xb0] sm:$0xff]  ;;  %v1050_v63 = vld [vmem:[#allocation3 + $0xe8] sm:$0xff]  ;;  %v1049_v15 = vld [vmem:[#allocation3 + $0xe0] sm:$0xff] }
 0x2d7   :  { %1321 = vmatpush1.bf16.msra.mxu0 %v1153_v32  ;;  %1427 = vmatpush1.bf16.msra.mxu1 %v1155_v12  ;;  %v1056_v32 = vld [vmem:[#allocation3 + $0x118] sm:$0xff]  ;;  %v1061_v12 = vld [vmem:[#allocation3 + $0x140] sm:$0xff] }
 0x2d8   :  { %1322 = vmatprep.subr.bf16.mxu0 %v1160_v34  ;;  %1428 = vmatprep.subr.bf16.mxu1 %v1162_v10  ;;  %v1068_v34 = vld [vmem:[#allocation3 + $0x178] sm:$0xff]  ;;  %v1067_v10 = vld [vmem:[#allocation3 + $0x170] sm:$0xff] }
 0x2db   :  { %1323 = vmatpush1.bf16.msra.mxu0 %v1159_v37  ;;  %1429 = vmatpush1.bf16.msra.mxu1 %v1161_v40  ;;  %v1074_v37 = vld [vmem:[#allocation3 + $0x1a8] sm:$0xff]  ;;  %v1080_v40 = vld [vmem:[#allocation3 + $0x1d8] sm:$0xff] }
 0x2dc   :  { %1324 = vmatprep.subr.bf16.mxu0 %v1166_v41  ;;  %1430 = vmatprep.subr.bf16.mxu1 %v1168_v44  ;;  %v1079_v41 = vld [vmem:[#allocation3 + $0x1d0] sm:$0xff]  ;;  %v1086_v44 = vld [vmem:[#allocation3 + $0x208] sm:$0xff] }
 0x2df   :  { %1325 = vmatpush1.bf16.msra.mxu0 %v1165_v45  ;;  %1431 = vmatpush1.bf16.msra.mxu1 %v1167_v48  ;;  %v1085_v45 = vld [vmem:[#allocation3 + $0x200] sm:$0xff]  ;;  %v1092_v48 = vld [vmem:[#allocation3 + $0x238] sm:$0xff] }
 0x2e0   :  { %1326 = vmatprep.subr.bf16.mxu0 %v1172_v49  ;;  %1432 = vmatprep.subr.bf16.mxu1 %v1174_v53  ;;  %v1091_v49 = vld [vmem:[#allocation3 + $0x230] sm:$0xff]  ;;  %v1098_v53 = vld [vmem:[#allocation3 + $0x268] sm:$0xff] }
 0x2e3   :  { %1327 = vmatpush1.bf16.msra.mxu0 %v1171_v58  ;;  %1433 = vmatpush1.bf16.msra.mxu1 %v1173_v60  ;;  %v1097_v58 = vld [vmem:[#allocation3 + $0x260] sm:$0xff]  ;;  %v1104_v60 = vld [vmem:[#allocation3 + $0x298] sm:$0xff] }
 0x2e4   :  { %1328 = vmatprep.subr.bf16.mxu0 %v1178_v61  ;;  %1434 = vmatprep.subr.bf16.mxu1 %v1180_v50  ;;  %v1103_v61 = vld [vmem:[#allocation3 + $0x290] sm:$0xff]  ;;  %v1110_v50 = vld [vmem:[#allocation3 + $0x2c8] sm:$0xff] }
 0x2e7   :  { %1329 = vmatpush1.bf16.msra.mxu0 %v1177_v62  ;;  %1435 = vmatpush1.bf16.msra.mxu1 %v1179_v0  ;;  %v1109_v62 = vld [vmem:[#allocation3 + $0x2c0] sm:$0xff]  ;;  %v1116_v0 = vld [vmem:[#allocation3 + $0x2f8] sm:$0xff] }
 0x2e8   :  { %1330 = vmatprep.subr.bf16.mxu0 %v1184_v55  ;;  %1436 = vmatprep.subr.bf16.mxu1 %v1186_v1  ;;  %v1115_v55 = vld [vmem:[#allocation3 + $0x2f0] sm:$0xff]  ;;  %v1122_v1 = vld [vmem:[#allocation3 + $0x328] sm:$0xff] }
 0x2eb   :  { %1331 = vmatpush1.bf16.msra.mxu0 %v1183_v2  ;;  %1437 = vmatpush1.bf16.msra.mxu1 %v1185_v5  ;;  %v1121_v2 = vld [vmem:[#allocation3 + $0x320] sm:$0xff]  ;;  %v1128_v5 = vld [vmem:[#allocation3 + $0x358] sm:$0xff] }
 0x2ec   :  { %1332 = vmatprep.subr.bf16.mxu0 %v1190_v33  ;;  %1438 = vmatprep.subr.bf16.mxu1 %v1192_v56  ;;  %v1127_v33 = vld [vmem:[#allocation3 + $0x350] sm:$0xff]  ;;  %v1134_v56 = vld [vmem:[#allocation3 + $0x388] sm:$0xff] }
 0x2ef   :  { %1333 = vmatpush1.bf16.msra.mxu0 %v1189_v8  ;;  %1439 = vmatpush1.bf16.msra.mxu1 %v1191_v4  ;;  %v1133_v8 = vld [vmem:[#allocation3 + $0x380] sm:$0xff]  ;;  %v1140_v4 = vld [vmem:[#allocation3 + $0x3b8] sm:$0xff] }
 0x2f0   :  { %1334 = vmatprep.subr.bf16.mxu0 %v1196_v13  ;;  %1440 = vmatprep.subr.bf16.mxu1 %v1198_v16  ;;  %v1139_v13 = vld [vmem:[#allocation3 + $0x3b0] sm:$0xff]  ;;  %v1146_v16 = vld [vmem:[#allocation3 + $0x3e8] sm:$0xff] }
 0x2f3   :  { %1335 = vmatpush1.bf16.msra.mxu0 %v1195_v43  ;;  %1441 = vmatpush1.bf16.msra.mxu1 %v1197_v19  ;;  %v1152_v43 = vld [vmem:[#allocation3 + $0x418] sm:$0xff]  ;;  %v1158_v19 = vld [vmem:[#allocation3 + $0x448] sm:$0xff] }
 0x2f4   :  { %1336 = vmatprep.subr.bf16.mxu0 %v1202_v29  ;;  %1442 = vmatprep.subr.bf16.mxu1 %v1204_v25  ;;  %v1157_v29 = vld [vmem:[#allocation3 + $0x440] sm:$0xff]  ;;  %v1164_v25 = vld [vmem:[#allocation3 + $0x478] sm:$0xff] }
 0x2f7   :  { %1337 = vmatpush1.bf16.msra.mxu0 %v1201_v23  ;;  %1443 = vmatpush1.bf16.msra.mxu1 %v1203_v35  ;;  %v1170_v23 = vld [vmem:[#allocation3 + $0x4a8] sm:$0xff]  ;;  %v1176_v35 = vld [vmem:[#allocation3 + $0x4d8] sm:$0xff] }
 0x2f8   :  { %1338 = vmatprep.subr.bf16.mxu0 %v1208_v3  ;;  %1444 = vmatprep.subr.bf16.mxu1 %v1210_v47  ;;  %v1175_v3 = vld [vmem:[#allocation3 + $0x4d0] sm:$0xff]  ;;  %v1182_v47 = vld [vmem:[#allocation3 + $0x508] sm:$0xff] }
 0x2fb   :  { %1339 = vmatpush1.bf16.msra.mxu0 %v1207_v24  ;;  %1445 = vmatpush1.bf16.msra.mxu1 %v1209_v51  ;;  %v1181_v24 = vld [vmem:[#allocation3 + $0x500] sm:$0xff]  ;;  %v1188_v51 = vld [vmem:[#allocation3 + $0x538] sm:$0xff] }
 0x2fc   :  { %1467 = vmatprep.subr.bf16.mxu0 %v1026_v7  ;;  %v1187_v7 = vld [vmem:[#allocation3 + $0x530] sm:$0xff] }
 0x2fe   :  { %1341 = vmatmul.mubr.bf16.vlgmr.msra.gmra.mrb[8].mxu0 %v5655_v17  ;;  %1447 = vmatmul.mubr.bf16.vlgmr.msra.gmra.mrb[8].mxu1 %v5655_v17 }
 0x2ff   :  { %1468 = vmatpush1.bf16.msra.mxu0 %v1025_v57  ;;  %1350 = vmatprep.mubr.bf16.mxu0 %v5659_v20  ;;  %v1194_v57 = vld [vmem:[#allocation3 + $0x568] sm:$0xff] }
 0x300   :  { %1469 = vmatprep.subr.bf16.mxu0 %v1032_v11  ;;  %1456 = vmatprep.mubr.bf16.mxu1 %v5659_v20  ;;  %v1193_v11 = vld [vmem:[#allocation3 + $0x560] sm:$0xff] }
 0x303   :  { %1470 = vmatpush1.bf16.msra.mxu0 %v1031_v46  ;;  %v1200_v46 = vld [vmem:[#allocation3 + $0x598] sm:$0xff] }
 0x304   :  { %1471 = vmatprep.subr.bf16.mxu0 %v1038_v14  ;;  %v1199_v14 = vld [vmem:[#allocation3 + $0x590] sm:$0xff] }
 0x306   :  { %1351 = vmatmul.mubr.bf16.gmra.mrb[12].mxu0 %v5667_v59  ;;  %1457 = vmatmul.mubr.bf16.gmra.mrb[12].mxu1 %v5667_v59 }
 0x307   :  { %1472 = vmatpush1.bf16.msra.mxu0 %v1037_v22  ;;  %1499 = vmatprep.mubr.bf16.mxu0 %v5614_v31  ;;  %v1073_v31 = vld [vmem:[#allocation3 + $0x1a0] sm:$0xff]  ;;  %v1206_v22 = vld [vmem:[#allocation3 + $0x5c8] sm:$0xff] }
 0x308   :  { %1473 = vmatprep.subr.bf16.mxu0 %v1044_v28  ;;  %v1205_v28 = vld [vmem:[#allocation3 + $0x5c0] sm:$0xff] }
 0x30b   :  { %1474 = vmatpush1.bf16.msra.mxu0 %v1043_v9  ;;  %v1212_v9 = vld [vmem:[#allocation3 + $0x5f8] sm:$0xff] }
 0x30c   :  { %1475 = vmatprep.subr.bf16.mxu0 %v1050_v63  ;;  %v1211_v63 = vld [vmem:[#allocation3 + $0x5f0] sm:$0xff] }
 0x30f   :  { %1476 = vmatpush1.bf16.msra.mxu0 %v1049_v15  ;;  %v5679_v15 = vld [vmem:[#allocation15 + $0x4] sm:$0x3f] }
 0x310   :  { %1477 = vmatprep.subr.bf16.mxu0 %v1056_v32  ;;  %v1228_v32 = vrot.slane %v5679_v15, %v5438_v38 }
 0x313   :  { %1478 = vmatpush1.bf16.msra.mxu0 %v1055_v21  ;;  %v1236_v21 = vrot.slane %v5679_v15, %v5441_v52 }
 0x314   :  { %1479 = vmatprep.subr.bf16.mxu0 %v1062_v27  ;;  %v1232_v27 = vrot.slane %v5679_v15, %v5444_v54 }
 0x317   :  { %1480 = vmatpush1.bf16.msra.mxu0 %v1061_v12  ;;  %v5689_v12 = vrot.slane %v5679_v15, %v5447_v30 }
 0x318   :  { %1481 = vmatprep.subr.bf16.mxu0 %v1068_v34 }
 0x31b   :  { %1482 = vmatpush1.bf16.msra.mxu0 %v1067_v10 }
 0x31c   :  { %1483 = vmatprep.subr.bf16.mxu0 %v1074_v37 }
 0x31f   :  { %1484 = vmatpush1.bf16.msra.mxu0 %v1073_v31 }
 0x320   :  { %1485 = vmatprep.subr.bf16.mxu0 %v1080_v40 }
 0x323   :  { %1486 = vmatpush1.bf16.msra.mxu0 %v1079_v41 }
 0x324   :  { %1487 = vmatprep.subr.bf16.mxu0 %v1086_v44 }
 0x327   :  { %1488 = vmatpush1.bf16.msra.mxu0 %v1085_v45 }
 0x328   :  { %1489 = vmatprep.subr.bf16.mxu0 %v1092_v48 }
 0x32b   :  { %1490 = vmatpush1.bf16.msra.mxu0 %v1091_v49 }
 0x32c   :  { %1491 = vmatprep.subr.bf16.mxu0 %v1098_v53 }
 0x32f   :  { %1492 = vmatpush1.bf16.msra.mxu0 %v1097_v58 }
 0x330   :  { %1493 = vmatprep.subr.bf16.mxu0 %v1104_v60 }
 0x333   :  { %1494 = vmatpush1.bf16.msra.mxu0 %v1103_v61 }
 0x334   :  { %1495 = vmatprep.subr.bf16.mxu0 %v1110_v50 }
 0x337   :  { %1496 = vmatpush1.bf16.msra.mxu0 %v1109_v62 }
 0x338   :  { %1497 = vmatprep.subr.bf16.mxu0 %v1116_v0 }
 0x33b   :  { %1498 = vmatpush1.bf16.msra.mxu0 %v1115_v55 }
 0x33c   :  { %1520 = vmatprep.subr.bf16.mxu0 %v1122_v1 }
 0x33e   :  { %1500 = vmatmul.mubr.bf16.vlgmr.msra.gmra.mrb[16].mxu0 %v5631_v36  ;;  %v1145_v36 = vld [vmem:[#allocation3 + $0x3e0] sm:$0xff] }
 0x33f   :  { %1521 = vmatpush1.bf16.msra.mxu0 %v1121_v2  ;;  %1509 = vmatprep.mubr.bf16.mxu0 %v5635_v39  ;;  %v1151_v39 = vld [vmem:[#allocation3 + $0x410] sm:$0xff] }
 0x340   :  { %1522 = vmatprep.subr.bf16.mxu0 %v1128_v5 }
 0x343   :  { %1523 = vmatpush1.bf16.msra.mxu0 %v1127_v33 }
 0x344   :  { %1524 = vmatprep.subr.bf16.mxu0 %v1134_v56 }
 0x346   :  { %1510 = vmatmul.mubr.bf16.gmra.mrb[20].mxu0 %v5643_v18  ;;  %v1163_v18 = vld [vmem:[#allocation3 + $0x470] sm:$0xff] }
 0x347   :  { %1525 = vmatpush1.bf16.msra.mxu0 %v1133_v8  ;;  %1552 = vmatprep.mubr.bf16.mxu0 %v5647_v42  ;;  %v1169_v42 = vld [vmem:[#allocation3 + $0x4a0] sm:$0xff] }
 0x348   :  { %1526 = vmatprep.subr.bf16.mxu0 %v1140_v4 }
 0x34b   :  { %1527 = vmatpush1.bf16.msra.mxu0 %v1139_v13 }
 0x34c   :  { %1528 = vmatprep.subr.bf16.mxu0 %v1146_v16 }
 0x34f   :  { %1529 = vmatpush1.bf16.msra.mxu0 %v1145_v36 }
 0x350   :  { %1530 = vmatprep.subr.bf16.mxu0 %v1152_v43 }
 0x353   :  { %1531 = vmatpush1.bf16.msra.mxu0 %v1151_v39 }
 0x354   :  { %1532 = vmatprep.subr.bf16.mxu0 %v1158_v19 }
 0x357   :  { %1533 = vmatpush1.bf16.msra.mxu0 %v1157_v29 }
 0x358   :  { %1534 = vmatprep.subr.bf16.mxu0 %v1164_v25 }
 0x35b   :  { %1535 = vmatpush1.bf16.msra.mxu0 %v1163_v18 }
 0x35c   :  { %1536 = vmatprep.subr.bf16.mxu0 %v1170_v23 }
 0x35f   :  { %1537 = vmatpush1.bf16.msra.mxu0 %v1169_v42 }
 0x360   :  { %1538 = vmatprep.subr.bf16.mxu0 %v1176_v35 }
 0x363   :  { %1539 = vmatpush1.bf16.msra.mxu0 %v1175_v3 }
 0x364   :  { %1540 = vmatprep.subr.bf16.mxu0 %v1182_v47 }
 0x367   :  { %1541 = vmatpush1.bf16.msra.mxu0 %v1181_v24 }
 0x368   :  { %1542 = vmatprep.subr.bf16.mxu0 %v1188_v51 }
 0x36b   :  { %1543 = vmatpush1.bf16.msra.mxu0 %v1187_v7 }
 0x36c   :  { %1544 = vmatprep.subr.bf16.mxu0 %v1194_v57 }
 0x36f   :  { %1545 = vmatpush1.bf16.msra.mxu0 %v1193_v11 }
 0x370   :  { %1546 = vmatprep.subr.bf16.mxu0 %v1200_v46 }
 0x373   :  { %1547 = vmatpush1.bf16.msra.mxu0 %v1199_v14 }
 0x374   :  { %1548 = vmatprep.subr.bf16.mxu0 %v1206_v22 }
 0x377   :  { %1549 = vmatpush1.bf16.msra.mxu0 %v1205_v28 }
 0x378   :  { %1550 = vmatprep.subr.bf16.mxu0 %v1212_v9 }
 0x37b   :  { %1551 = vmatpush1.bf16.msra.mxu0 %v1211_v63 }
 0x37e   :  { %1553 = vmatmul.mubr.bf16.vlgmr.msra.gmra.mrb[16].mxu0 %v5655_v17 }
 0x37f   :  { %1562 = vmatprep.mubr.bf16.mxu0 %v5659_v20 }
 0x386   :  { %1563 = vmatmul.mubr.bf16.gmra.mrb[20].mxu0 %v5667_v59 }
 0x3d1   :  { %v1342_v17 = vpop.f32.mrb[8].mxu0  ;;  %v1448_v34 = vpop.f32.mrb[8].mxu1 }
 0x3d2   :  { %v4639_v20 = vadd.f32 %v1342_v17, %v1228_v32  ;;  %v1344_v10 = vpop.f32.mrb[9].mxu0  ;;  %v4647_v59 = vadd.f32 %v1448_v34, %v1236_v21  ;;  %v1450_v37 = vpop.f32.mrb[9].mxu1 }
 0x3d3   :  { %v4640_v31 = vadd.f32 %v1344_v10, %v1232_v27  ;;  %v1346_v40 = vpop.f32.mrb[10].mxu0  ;;  %v4648_v41 = vadd.f32 %v1450_v37, %v5689_v12  ;;  %v1452_v44 = vpop.f32.mrb[10].mxu1 }
 0x3d4   :  { %v1597_v45 = vmul.f32 0.70710677, %v4639_v20  ;;  %v4641_v48 = vadd.f32 %v1346_v40, %v1228_v32  ;;  %v1348_v49 = vpop.f32.mrb[11].mxu0  ;;  %v1454_v53 = vpop.f32.mrb[11].mxu1  ;;  %v1599_v50 = vmul.f32 0.70710677, %v4647_v59  ;;  %v4649_v55 = vadd.f32 %v1452_v44, %v1236_v21 }
 0x3d5   :  { %v1598_v58 = vmul.f32 0.70710677, %v4640_v31  ;;  %v4642_v60 = vadd.f32 %v1348_v49, %v1232_v27  ;;  %v1600_v0 = vmul.f32 0.70710677, %v4648_v41  ;;  %v4650_v1 = vadd.f32 %v1454_v53, %v5689_v12 }
 0x3d6   :  { %4939 = verf.f32 %v1597_v45  ;;  %v1603_v61 = vmul.f32 0.70710677, %v4641_v48  ;;  %v1605_v33 = vmul.f32 0.70710677, %v4649_v55  ;;  %v1573_v42 = vmul.f32 0.5, %v4639_v20 }
 0x3d7   :  { %4941 = verf.f32 %v1598_v58  ;;  %v1604_v62 = vmul.f32 0.70710677, %v4642_v60  ;;  %v1606_v4 = vmul.f32 0.70710677, %v4650_v1  ;;  %v1575_v35 = vmul.f32 0.5, %v4647_v59 }
 0x3d8   :  { %4943 = verf.f32 %v1603_v61  ;;  %v1574_v24 = vmul.f32 0.5, %v4640_v31  ;;  %v1579_v11 = vmul.f32 0.5, %v4641_v48  ;;  %v1580_v9 = vmul.f32 0.5, %v4642_v60 }
 0x3d9   :  { %4945 = verf.f32 %v1604_v62  ;;  %v1352_v2 = vpop.f32.mrb[12].mxu0  ;;  %v1458_v5 = vpop.f32.mrb[12].mxu1  ;;  %v1576_v63 = vmul.f32 0.5, %v4648_v41  ;;  %v1581_v34 = vmul.f32 0.5, %v4649_v55  ;;  %v1582_v37 = vmul.f32 0.5, %v4650_v1 }
 0x3da   :  { %4947 = verf.f32 %v1599_v50  ;;  %v1354_v56 = vpop.f32.mrb[13].mxu0  ;;  %v1460_v8 = vpop.f32.mrb[13].mxu1  ;;  %v4643_v13 = vadd.f32 %v1352_v2, %v1228_v32  ;;  %v4651_v16 = vadd.f32 %v1458_v5, %v1236_v21 }
 0x3db   :  { %4949 = verf.f32 %v1600_v0  ;;  %v1356_v36 = vpop.f32.mrb[14].mxu0  ;;  %v1462_v43 = vpop.f32.mrb[14].mxu1  ;;  %v4644_v39 = vadd.f32 %v1354_v56, %v1232_v27  ;;  %v4652_v19 = vadd.f32 %v1460_v8, %v5689_v12 }
 0x3dc   :  { %4951 = verf.f32 %v1605_v33  ;;  %v4645_v29 = vadd.f32 %v1356_v36, %v1228_v32  ;;  %v1358_v25 = vpop.f32.mrb[15].mxu0  ;;  %v1464_v18 = vpop.f32.mrb[15].mxu1  ;;  %v1609_v23 = vmul.f32 0.70710677, %v4643_v13  ;;  %v1611_v3 = vmul.f32 0.70710677, %v4651_v16 }
 0x3dd   :  { %4953 = verf.f32 %v1606_v4  ;;  %v1610_v47 = vmul.f32 0.70710677, %v4644_v39  ;;  %v1612_v51 = vmul.f32 0.70710677, %v4652_v19  ;;  %v4653_v46 = vadd.f32 %v1462_v43, %v1236_v21 }
 0x3de   :  { %4955 = verf.f32 %v1609_v23  ;;  %v1615_v7 = vmul.f32 0.70710677, %v4645_v29  ;;  %v4646_v14 = vadd.f32 %v1358_v25, %v1232_v27  ;;  %v1585_v31 = vmul.f32 0.5, %v4643_v13 }
 0x3df   :  { %4957 = verf.f32 %v1611_v3  ;;  %v1617_v20 = vmul.f32 0.70710677, %v4653_v46  ;;  %v1587_v49 = vmul.f32 0.5, %v4651_v16  ;;  %v5699_v53 = vadd.f32 %v1464_v18, %v5689_v12 }
 0x3e0   :  { %v4940_v57 = vpop.eup %4939  ;;  %4959 = verf.f32 %v1610_v47  ;;  %v1616_v27 = vmul.f32 0.70710677, %v4646_v14  ;;  %v1586_v61 = vmul.f32 0.5, %v4644_v39  ;;  %v1588_v50 = vmul.f32 0.5, %v4652_v19 }
 0x3e1   :  { %v4942_v22 = vpop.eup %4941  ;;  %v1645_v28 = vadd.f32 1.0, %v4940_v57  ;;  %4961 = verf.f32 %v1612_v51  ;;  %v1591_v2 = vmul.f32 0.5, %v4645_v29  ;;  %v1593_v56 = vmul.f32 0.5, %v4653_v46 }
 0x3e2   :  { %v4944_v32 = vpop.eup %4943  ;;  %v1646_v17 = vadd.f32 1.0, %v4942_v22  ;;  %4963 = verf.f32 %v1615_v7  ;;  %v1592_v12 = vmul.f32 0.5, %v4646_v14  ;;  %v1618_v36 = vmul.f32 0.70710677, %v5699_v53 }
 0x3e3   :  { %v4946_v10 = vpop.eup %4945  ;;  %v1651_v59 = vadd.f32 1.0, %v4944_v32  ;;  %v5694_v44 = vmul.f32 %v1645_v28, %v1573_v42  ;;  %4965 = verf.f32 %v1617_v20 }
 0x3e4   :  { %v4948_v40 = vpop.eup %4947  ;;  %v1652_v21 = vadd.f32 1.0, %v4946_v10  ;;  %v5696_v48 = vmul.f32 %v1646_v17, %v1574_v24  ;;  %4967 = verf.f32 %v1616_v27 }
 0x3e5   :  { %v4950_v45 = vpop.eup %4949  ;;  %v1647_v41 = vadd.f32 1.0, %v4948_v40  ;;  %v5701_v60 = vmul.f32 %v1651_v59, %v1579_v11  ;;  %v1753_v5 = vmul.f32 %v5694_v44, %v5694_v44  ;;  %4969 = verf.f32 %v1618_v36 }
 0x3e6   :  { %v4952_v58 = vpop.eup %4951  ;;  %v5703_v0 = vmul.f32 %v1652_v21, %v1580_v9  ;;  %v1648_v33 = vadd.f32 1.0, %v4950_v45  ;;  %v1754_v4 = vmul.f32 %v5696_v48, %v5696_v48 }
 0x3e7   :  { %v4954_v62 = vpop.eup %4953  ;;  %v5705_v55 = vmul.f32 %v1647_v41, %v1575_v35  ;;  %v1653_v1 = vadd.f32 1.0, %v4952_v58  ;;  %v1693_v39 = vadd.f32 %v5701_v60, %v5694_v44  ;;  %v1759_v19 = vmul.f32 %v5701_v60, %v5701_v60 }
 0x3e8   :  { %v4956_v8 = vpop.eup %4955  ;;  %v1654_v16 = vadd.f32 1.0, %v4954_v62  ;;  %v1760_v23 = vmul.f32 %v5703_v0, %v5703_v0  ;;  %v5724_v47 = vmul.f32 %v1648_v33, %v1576_v63  ;;  %v1702_v11 = vadd.f32 %v5703_v0, %v5696_v48 }
 0x3e9   :  { %v5711_v13 = vmul.f32 %v1653_v1, %v1581_v34  ;;  %v4958_v43 = vpop.eup %4957  ;;  %v1755_v29 = vmul.f32 %v5705_v55, %v5705_v55  ;;  %v1657_v25 = vadd.f32 1.0, %v4956_v8  ;;  %v1777_v9 = vadd.f32 %v1759_v19, %v1753_v5 }
 0x3ea   :  { %v4960_v18 = vpop.eup %4959  ;;  %v1659_v35 = vadd.f32 1.0, %v4958_v43  ;;  %v5732_v46 = vmul.f32 %v1654_v16, %v1582_v37  ;;  %v1786_v34 = vadd.f32 %v1760_v23, %v1754_v4  ;;  %v1594_v16 = vmul.f32 0.5, %v5699_v53 }
 0x3eb   :  { %v1761_v42 = vmul.f32 %v5711_v13, %v5711_v13  ;;  %v4962_v3 = vpop.eup %4961  ;;  %v1711_v24 = vadd.f32 %v5711_v13, %v5705_v55  ;;  %v5728_v51 = vmul.f32 %v1657_v25, %v1585_v31  ;;  %v1658_v7 = vadd.f32 1.0, %v4960_v18 }
 0x3ec   :  { %v4964_v57 = vpop.eup %4963  ;;  %v5734_v14 = vmul.f32 %v1659_v35, %v1587_v49  ;;  %v1660_v22 = vadd.f32 1.0, %v4962_v3  ;;  %v1756_v31 = vmul.f32 %v5724_v47, %v5724_v47  ;;  %v1762_v45 = vmul.f32 %v5732_v46, %v5732_v46 }
 0x3ed   :  { %v4966_v28 = vpop.eup %4965  ;;  %v1795_v32 = vadd.f32 %v1761_v42, %v1755_v29  ;;  %v1765_v63 = vmul.f32 %v5728_v51, %v5728_v51  ;;  %v5738_v17 = vmul.f32 %v1658_v7, %v1586_v61  ;;  %v1694_v20 = vadd.f32 %v1693_v39, %v5728_v51 }
 0x3ee   :  { %v1767_v10 = vmul.f32 %v5734_v14, %v5734_v14  ;;  %v1663_v59 = vadd.f32 1.0, %v4964_v57  ;;  %v4968_v37 = vpop.eup %4967  ;;  %v1712_v40 = vadd.f32 %v1711_v24, %v5734_v14  ;;  %v1665_v27 = vadd.f32 1.0, %v4966_v28 }
 0x3ef   :  { %v1766_v21 = vmul.f32 %v5738_v17, %v5738_v17  ;;  %v1778_v41 = vadd.f32 %v1777_v9, %v1765_v63  ;;  %v5750_v49 = vmul.f32 %v1660_v22, %v1588_v50  ;;  %v1703_v62 = vadd.f32 %v1702_v11, %v5738_v17 }
 0x3f0   :  { %v5752_v58 = vmul.f32 %v1663_v59, %v1591_v2  ;;  %v1796_v61 = vadd.f32 %v1795_v32, %v1767_v10  ;;  %v5755_v1 = vmul.f32 %v1665_v27, %v1593_v56  ;;  %v1664_v5 = vadd.f32 1.0, %v4968_v37  ;;  %v4970_v56 = vpop.eup %4969 }
 0x3f1   :  { %v1720_v33 = vadd.f32 %v5732_v46, %v5724_v47  ;;  %v1787_v50 = vadd.f32 %v1786_v34, %v1766_v21  ;;  %v1804_v39 = vadd.f32 %v1762_v45, %v1756_v31  ;;  %v1768_v19 = vmul.f32 %v5750_v49, %v5750_v49 }
 0x3f2   :  { %v1695_v8 = vadd.f32 %v1694_v20, %v5752_v58  ;;  %v1771_v4 = vmul.f32 %v5752_v58, %v5752_v58  ;;  %v1713_v2 = vadd.f32 %v1712_v40, %v5755_v1  ;;  %v1773_v36 = vmul.f32 %v5755_v1, %v5755_v1 }
 0x3f3   :  { %v5766_v43 = vmul.f32 %v1664_v5, %v1592_v12  ;;  %v1721_v35 = vadd.f32 %v1720_v33, %v5750_v49  ;;  %v1666_v12 = vadd.f32 1.0, %v4970_v56  ;;  %v1805_v28 = vadd.f32 %v1804_v39, %v1768_v19 }
 0x3f4   :  { %v1696_v29 = vrot.slane %v1695_v8, 4  ;;  %v1779_v25 = vadd.f32 %v1778_v41, %v1771_v4  ;;  %v1714_v18 = vrot.slane %v1713_v2, 4  ;;  %v1797_v23 = vadd.f32 %v1796_v61, %v1773_v36 }
 0x3f5   :  { %v1704_v42 = vadd.f32 %v1703_v62, %v5766_v43  ;;  %v1772_v53 = vmul.f32 %v5766_v43, %v5766_v43  ;;  %v5774_v63 = vmul.f32 %v1666_v12, %v1594_v16 }
 0x3f6   :  { %v1697_v3 = vadd.f32 %v1696_v29, %v1695_v8  ;;  %v1780_v24 = vrot.slane %v1779_v25, 4  ;;  %v1715_v7 = vadd.f32 %v1714_v18, %v1713_v2  ;;  %v1798_v57 = vrot.slane %v1797_v23, 4 }
 0x3f7   :  { %v1705_v11 = vrot.slane %v1704_v42, 4  ;;  %v1788_v22 = vadd.f32 %v1787_v50, %v1772_v53  ;;  %v1722_v40 = vadd.f32 %v1721_v35, %v5774_v63  ;;  %v1774_v21 = vmul.f32 %v5774_v63, %v5774_v63 }
 0x3f8   :  { %v1698_v9 = vrot.slane %v1697_v3, 2  ;;  %v1781_v32 = vadd.f32 %v1780_v24, %v1779_v25  ;;  %v1716_v34 = vrot.slane %v1715_v7, 2  ;;  %v1799_v20 = vadd.f32 %v1798_v57, %v1797_v23 }
 0x3f9   :  { %v1706_v10 = vadd.f32 %v1705_v11, %v1704_v42  ;;  %v1789_v59 = vrot.slane %v1788_v22, 4  ;;  %v1723_v33 = vrot.slane %v1722_v40, 4  ;;  %v1806_v8 = vadd.f32 %v1805_v28, %v1774_v21 }
 0x3fa   :  { %v1699_v37 = vadd.f32 %v1698_v9, %v1697_v3  ;;  %v1782_v31 = vrot.slane %v1781_v32, 2  ;;  %v1717_v27 = vadd.f32 %v1716_v34, %v1715_v7  ;;  %v1800_v45 = vrot.slane %v1799_v20, 2 }
 0x3fb   :  { %v1707_v41 = vrot.slane %v1706_v10, 2  ;;  %v1790_v61 = vadd.f32 %v1789_v59, %v1788_v22  ;;  %v1724_v39 = vadd.f32 %v1723_v33, %v1722_v40  ;;  %v1807_v19 = vrot.slane %v1806_v8, 4 }
 0x3fc   :  { %v1700_v62 = vrot.slane %v1699_v37, 1  ;;  %v1783_v5 = vadd.f32 %v1782_v31, %v1781_v32  ;;  %v1718_v4 = vrot.slane %v1717_v27, 1  ;;  %v1801_v16 = vadd.f32 %v1800_v45, %v1799_v20 }
 0x3fd   :  { %v1708_v50 = vadd.f32 %v1707_v41, %v1706_v10  ;;  %v1791_v2 = vrot.slane %v1790_v61, 2  ;;  %v1725_v35 = vrot.slane %v1724_v39, 2  ;;  %v1808_v3 = vadd.f32 %v1807_v19, %v1806_v8 }
 0x3fe   :  { %v1701_v36 = vadd.f32 %v1700_v62, %v1699_v37  ;;  %v1784_v56 = vrot.slane %v1783_v5, 1  ;;  %v1719_v29 = vadd.f32 %v1718_v4, %v1717_v27  ;;  %v1802_v25 = vrot.slane %v1801_v16, 1 }
 0x3ff   :  { %v1709_v18 = vrot.slane %v1708_v50, 1  ;;  %v1792_v23 = vadd.f32 %v1791_v2, %v1790_v61  ;;  %v1726_v28 = vadd.f32 %v1725_v35, %v1724_v39  ;;  %v1809_v9 = vrot.slane %v1808_v3, 2 }
 0x400   :  { %v5779_v42 = vmul.f32 0.03125, %v1701_v36  ;;  %v1785_v53 = vadd.f32 %v1784_v56, %v1783_v5  ;;  %v5781_v24 = vmul.f32 0.03125, %v1719_v29  ;;  %v1803_v12 = vadd.f32 %v1802_v25, %v1801_v16 }
 0x401   :  { %v1710_v7 = vadd.f32 %v1709_v18, %v1708_v50  ;;  %v1793_v57 = vrot.slane %v1792_v23, 1  ;;  %v1727_v37 = vrot.slane %v1726_v28, 1  ;;  %v1810_v31 = vadd.f32 %v1809_v9, %v1808_v3 }
 0x402   :  { %v1831_v11 = vmul.f32 0.03125, %v1785_v53  ;;  %v1837_v22 = vmul.f32 %v5779_v42, %v5779_v42  ;;  %v1833_v32 = vmul.f32 0.03125, %v1803_v12  ;;  %v1839_v34 = vmul.f32 %v5781_v24, %v5781_v24 }
 0x403   :  { %v5787_v20 = vmul.f32 0.03125, %v1710_v7  ;;  %v1794_v10 = vadd.f32 %v1793_v57, %v1792_v23  ;;  %v1728_v41 = vadd.f32 %v1727_v37, %v1726_v28  ;;  %v1811_v61 = vrot.slane %v1810_v31, 1 }
 0x404   :  { %v1843_v59 = vsub.f32 %v1831_v11, %v1837_v22  ;;  %v1845_v40 = vsub.f32 %v1833_v32, %v1839_v34  ;;  %v5804_v3 = vsub.s32 4, %v5435_v26  ;;  %v5807_v12 = vsub.s32 5, %v5435_v26 }
 0x405   :  { %v1832_v21 = vmul.f32 0.03125, %v1794_v10  ;;  %v1838_v27 = vmul.f32 %v5787_v20, %v5787_v20  ;;  %v5791_v5 = vmul.f32 0.03125, %v1728_v41  ;;  %v1812_v33 = vadd.f32 %v1811_v61, %v1810_v31 }
 0x406   :  { %v1849_v45 = vadd.f32 1e-05, %v1843_v59  ;;  %v1851_v4 = vadd.f32 1e-05, %v1845_v40  ;;  %v1244_v7 = vrot.slane %v5679_v15, %v5804_v3  ;;  %v1248_v57 = vrot.slane %v5679_v15, %v5807_v12 }
 0x407   :  { %v1844_v62 = vsub.f32 %v1832_v21, %v1838_v27  ;;  %v1834_v16 = vmul.f32 0.03125, %v1812_v33  ;;  %v1840_v50 = vmul.f32 %v5791_v5, %v5791_v5 }
 0x408   :  { %4971 = vrsqrt.f32 %v1849_v45 }
 0x409   :  { %v1850_v8 = vadd.f32 1e-05, %v1844_v62  ;;  %v1846_v2 = vsub.f32 %v1834_v16, %v1840_v50 }
 0x40b   :  { %4973 = vrsqrt.f32 %v1850_v8  ;;  %v1852_v36 = vadd.f32 1e-05, %v1846_v2 }
 0x40c   :  { %4975 = vrsqrt.f32 %v1851_v4 }
 0x40d   :  { %4977 = vrsqrt.f32 %v1852_v36 }
 0x412   :  { %v4972_v56 = vpop.eup %4971 }
 0x415   :  { %v4974_v39 = vpop.eup %4973 }
 0x416   :  { %v1867_v19 = vcombine.low %v4972_v56, %v4974_v39  ;;  %v4976_v29 = vpop.eup %4975 }
 0x417   :  { %v4978_v25 = vpop.eup %4977 }
 0x418   :  { %v5796_v18 = vrot.slane %v1867_v19, %v5554_v6  ;;  %v1868_v23 = vcombine.low %v4976_v29, %v4978_v25 }
 0x41a   :  { %v5799_v53 = vrot.slane %v1868_v23, %v5554_v6 }
 0x451   :  { %v1554_v11 = vpop.f32.mrb[16].mxu0 }
 0x452   :  { %v4655_v22 = vadd.f32 %v1554_v11, %v1244_v7  ;;  %v1556_v28 = vpop.f32.mrb[17].mxu0 }
 0x453   :  { %v4656_v9 = vadd.f32 %v1556_v28, %v1248_v57  ;;  %v1558_v32 = vpop.f32.mrb[18].mxu0 }
 0x454   :  { %v1601_v34 = vmul.f32 0.70710677, %v4655_v22  ;;  %v4657_v10 = vadd.f32 %v1558_v32, %v1244_v7  ;;  %v1560_v59 = vpop.f32.mrb[19].mxu0  ;;  %v1577_v56 = vmul.f32 0.5, %v4655_v22 }
 0x455   :  { %v1602_v37 = vmul.f32 0.70710677, %v4656_v9  ;;  %v4658_v31 = vadd.f32 %v1560_v59, %v1248_v57  ;;  %v1578_v29 = vmul.f32 0.5, %v4656_v9 }
 0x456   :  { %4979 = verf.f32 %v1601_v34  ;;  %v1607_v40 = vmul.f32 0.70710677, %v4657_v10 }
 0x457   :  { %4981 = verf.f32 %v1602_v37  ;;  %v1608_v26 = vmul.f32 0.70710677, %v4658_v31 }
 0x458   :  { %4983 = verf.f32 %v1607_v40 }
 0x459   :  { %4985 = verf.f32 %v1608_v26  ;;  %v1564_v21 = vpop.f32.mrb[20].mxu0 }
 0x45a   :  { %v4659_v27 = vadd.f32 %v1564_v21, %v1244_v7  ;;  %v1566_v45 = vpop.f32.mrb[21].mxu0 }
 0x45b   :  { %v4660_v15 = vadd.f32 %v1566_v45, %v1248_v57  ;;  %v1568_v41 = vpop.f32.mrb[22].mxu0 }
 0x45c   :  { %v1613_v61 = vmul.f32 0.70710677, %v4659_v27  ;;  %v4661_v62 = vadd.f32 %v1568_v41, %v1244_v7  ;;  %v1570_v33 = vpop.f32.mrb[23].mxu0  ;;  %v1583_v7 = vmul.f32 0.5, %v4657_v10 }
 0x45d   :  { %v1614_v8 = vmul.f32 0.70710677, %v4660_v15  ;;  %v4662_v4 = vadd.f32 %v1570_v33, %v1248_v57  ;;  %v1584_v57 = vmul.f32 0.5, %v4658_v31 }
 0x45e   :  { %4987 = verf.f32 %v1613_v61  ;;  %v1619_v16 = vmul.f32 0.70710677, %v4661_v62  ;;  %v1589_v61 = vmul.f32 0.5, %v4659_v27 }
 0x45f   :  { %4989 = verf.f32 %v1614_v8  ;;  %v1620_v50 = vmul.f32 0.70710677, %v4662_v4 }
 0x460   :  { %v4980_v2 = vpop.eup %4979  ;;  %4991 = verf.f32 %v1619_v16 }
 0x461   :  { %v4982_v36 = vpop.eup %4981  ;;  %v1649_v39 = vadd.f32 1.0, %v4980_v2  ;;  %4993 = verf.f32 %v1620_v50  ;;  %v1590_v50 = vmul.f32 0.5, %v4660_v15 }
 0x462   :  { %v4984_v19 = vpop.eup %4983  ;;  %v1650_v25 = vadd.f32 1.0, %v4982_v36 }
 0x463   :  { %v4986_v23 = vpop.eup %4985  ;;  %v5813_v11 = vmul.f32 %v1649_v39, %v1577_v56  ;;  %v1655_v28 = vadd.f32 1.0, %v4984_v19  ;;  %v1595_v39 = vmul.f32 0.5, %v4661_v62 }
 0x464   :  { %v5815_v32 = vmul.f32 %v1650_v25, %v1578_v29  ;;  %v1656_v34 = vadd.f32 1.0, %v4986_v23  ;;  %v1596_v25 = vmul.f32 0.5, %v4662_v4 }
 0x465   :  { %v5817_v59 = vmul.f32 %v1655_v28, %v1583_v7  ;;  %v1757_v22 = vmul.f32 %v5813_v11, %v5813_v11 }
 0x466   :  { %v5819_v37 = vmul.f32 %v1656_v34, %v1584_v57  ;;  %v1758_v10 = vmul.f32 %v5815_v32, %v5815_v32 }
 0x467   :  { %v1729_v9 = vadd.f32 %v5817_v59, %v5813_v11  ;;  %v1763_v40 = vmul.f32 %v5817_v59, %v5817_v59 }
 0x468   :  { %v4988_v26 = vpop.eup %4987  ;;  %v1738_v31 = vadd.f32 %v5819_v37, %v5815_v32  ;;  %v1764_v21 = vmul.f32 %v5819_v37, %v5819_v37 }
 0x469   :  { %v4990_v45 = vpop.eup %4989  ;;  %v1813_v41 = vadd.f32 %v1763_v40, %v1757_v22  ;;  %v1661_v33 = vadd.f32 1.0, %v4988_v26 }
 0x46a   :  { %v4992_v8 = vpop.eup %4991  ;;  %v1822_v16 = vadd.f32 %v1764_v21, %v1758_v10  ;;  %v1662_v2 = vadd.f32 1.0, %v4990_v45 }
 0x46b   :  { %v4994_v36 = vpop.eup %4993  ;;  %v5833_v56 = vmul.f32 %v1661_v33, %v1589_v61  ;;  %v1667_v19 = vadd.f32 1.0, %v4992_v8 }
 0x46c   :  { %v5835_v29 = vmul.f32 %v1662_v2, %v1590_v50  ;;  %v1668_v23 = vadd.f32 1.0, %v4994_v36 }
 0x46d   :  { %v1730_v7 = vadd.f32 %v1729_v9, %v5833_v56  ;;  %v1769_v28 = vmul.f32 %v5833_v56, %v5833_v56  ;;  %v5840_v27 = vmul.f32 %v1667_v19, %v1595_v39 }
 0x46e   :  { %v1739_v57 = vadd.f32 %v1738_v31, %v5835_v29  ;;  %v1770_v15 = vmul.f32 %v5835_v29, %v5835_v29  ;;  %v5845_v34 = vmul.f32 %v1668_v23, %v1596_v25 }
 0x46f   :  { %v1814_v62 = vadd.f32 %v1813_v41, %v1769_v28  ;;  %v1731_v22 = vadd.f32 %v1730_v7, %v5840_v27  ;;  %v1775_v4 = vmul.f32 %v5840_v27, %v5840_v27 }
 0x470   :  { %v1823_v40 = vadd.f32 %v1822_v16, %v1770_v15  ;;  %v1740_v9 = vadd.f32 %v1739_v57, %v5845_v34  ;;  %v1776_v26 = vmul.f32 %v5845_v34, %v5845_v34 }
 0x471   :  { %v1732_v10 = vrot.slane %v1731_v22, 4  ;;  %v1815_v21 = vadd.f32 %v1814_v62, %v1775_v4 }
 0x472   :  { %v1741_v31 = vrot.slane %v1740_v9, 4  ;;  %v1824_v45 = vadd.f32 %v1823_v40, %v1776_v26 }
 0x473   :  { %v1733_v61 = vadd.f32 %v1732_v10, %v1731_v22  ;;  %v1816_v33 = vrot.slane %v1815_v21, 4 }
 0x474   :  { %v1742_v8 = vadd.f32 %v1741_v31, %v1740_v9  ;;  %v1825_v50 = vrot.slane %v1824_v45, 4 }
 0x475   :  { %v1734_v41 = vrot.slane %v1733_v61, 2  ;;  %v1817_v2 = vadd.f32 %v1816_v33, %v1815_v21 }
 0x476   :  { %v1743_v36 = vrot.slane %v1742_v8, 2  ;;  %v1826_v39 = vadd.f32 %v1825_v50, %v1824_v45 }
 0x477   :  { %v1735_v19 = vadd.f32 %v1734_v41, %v1733_v61  ;;  %v1818_v25 = vrot.slane %v1817_v2, 2 }
 0x478   :  { %v1744_v16 = vadd.f32 %v1743_v36, %v1742_v8  ;;  %v1827_v23 = vrot.slane %v1826_v39, 2 }
 0x479   :  { %v1736_v7 = vrot.slane %v1735_v19, 1  ;;  %v1819_v28 = vadd.f32 %v1818_v25, %v1817_v2 }
 0x47a   :  { %v1745_v57 = vrot.slane %v1744_v16, 1  ;;  %v1828_v15 = vadd.f32 %v1827_v23, %v1826_v39  ;;  %v1214_v23 = vld [vmem:[#allocation15 + $0x1d] sm:$0x3f] }
 0x47b   :  { %v1737_v35 = vadd.f32 %v1736_v7, %v1735_v19  ;;  %v1820_v62 = vrot.slane %v1819_v28, 1 }
 0x47c   :  { %v1746_v4 = vadd.f32 %v1745_v57, %v1744_v16  ;;  %v1829_v40 = vrot.slane %v1828_v15, 1 }
 0x47d   :  { %v1751_v22 = vmul.f32 0.03125, %v1737_v35  ;;  %v1821_v26 = vadd.f32 %v1820_v62, %v1819_v28  ;;  %v6509_v35 = vcombine.low %v5796_v18, %v5799_v53 }
 0x47e   :  { %v1752_v9 = vmul.f32 0.03125, %v1746_v4  ;;  %v1830_v10 = vadd.f32 %v1829_v40, %v1828_v15 }
 0x47f   :  { %v1835_v31 = vmul.f32 0.03125, %v1821_v26  ;;  %v1841_v21 = vmul.f32 %v1751_v22, %v1751_v22  ;;  %v1898_v25 = vrot.slane %v6509_v35, %v5554_v6 }
 0x480   :  { %v1836_v33 = vmul.f32 0.03125, %v1830_v10  ;;  %v1842_v45 = vmul.f32 %v1752_v9, %v1752_v9 }
 0x481   :  { %v1847_v61 = vsub.f32 %v1835_v31, %v1841_v21 }
 0x482   :  { %v1848_v50 = vsub.f32 %v1836_v33, %v1842_v45 }
 0x483   :  { %v1853_v8 = vadd.f32 1e-05, %v1847_v61 }
 0x484   :  { %v1854_v41 = vadd.f32 1e-05, %v1848_v50 }
 0x485   :  { %4995 = vrsqrt.f32 %v1853_v8 }
 0x486   :  { %4997 = vrsqrt.f32 %v1854_v41 }
 0x48f   :  { %v4996_v2 = vpop.eup %4995 }
 0x490   :  { %v4998_v36 = vpop.eup %4997 }
 0x491   :  { %v1869_v39 = vcombine.low %v4996_v2, %v4998_v36 }
 0x493   :  { %v1890_v19 = vrot.slane %v1869_v39, %v5554_v6 }
 0x495   :  { %v1905_v16 = vrot.slane %v1890_v19, %v5554_v6 }
 0x497   :  { %v1906_v7 = vcombine.low %v1898_v25, %v1905_v16  ;;  %v1215_v16 = vld [vmem:[#allocation15 + $0x23] sm:$0x3f] }
 0x499   :  { %v1908_v28 = vmul.f32 %v1906_v7, %v1214_v23 }
 0x49b   :  { %v1913_v57 = vrot.slane %v1908_v28, %v5438_v38  ;;  %v1917_v15 = vrot.slane %v1908_v28, %v5444_v54  ;;  %v1921_v62 = vrot.slane %v1908_v28, %v5441_v52  ;;  %v1925_v4 = vrot.slane %v1908_v28, %v5447_v30 }
 0x49c   :  { %v1929_v40 = vrot.slane %v1908_v28, %v5804_v3  ;;  %v1933_v26 = vrot.slane %v1908_v28, %v5807_v12 }
 0x49d   :  { %v1940_v18 = vmul.f32 %v1913_v57, %v5779_v42  ;;  %v1941_v53 = vmul.f32 %v1917_v15, %v5787_v20  ;;  %v1942_v10 = vmul.f32 %v1921_v62, %v5781_v24  ;;  %v1943_v31 = vmul.f32 %v1925_v4, %v5791_v5 }
 0x49e   :  { %v1944_v21 = vmul.f32 %v1929_v40, %v1751_v22  ;;  %v1945_v33 = vmul.f32 %v1933_v26, %v1752_v9  ;;  %v1998_v8 = vmul.f32 %v1929_v40, %v5813_v11  ;;  %v1999_v41 = vmul.f32 %v1933_v26, %v5815_v32 }
 0x49f   :  { %v1952_v45 = vcombine.low %v1940_v18, %v1941_v53  ;;  %v1953_v61 = vcombine.low %v1942_v10, %v1943_v31  ;;  %v2004_v20 = vmul.f32 %v1929_v40, %v5817_v59  ;;  %v2005_v24 = vmul.f32 %v1933_v26, %v5819_v37 }
 0x4a0   :  { %v1954_v50 = vcombine.low %v1944_v21, %v1945_v33  ;;  %v2006_v22 = vmul.f32 %v1913_v57, %v5728_v51  ;;  %v2007_v9 = vmul.f32 %v1917_v15, %v5738_v17  ;;  %v2008_v39 = vmul.f32 %v1921_v62, %v5734_v14 }
 0x4a1   :  { %v1961_v2 = vrot.slane %v1952_v45, %v5554_v6  ;;  %v1968_v36 = vrot.slane %v1953_v61, %v5554_v6  ;;  %v2009_v32 = vmul.f32 %v1925_v4, %v5750_v49  ;;  %v2010_v19 = vmul.f32 %v1929_v40, %v5833_v56 }
 0x4a2   :  { %v1975_v42 = vrot.slane %v1954_v50, %v5554_v6  ;;  %v2011_v35 = vmul.f32 %v1933_v26, %v5835_v29  ;;  %v2012_v59 = vmul.f32 %v1913_v57, %v5752_v58  ;;  %v2013_v37 = vmul.f32 %v1917_v15, %v5766_v43 }
 0x4a3   :  { %v1976_v5 = vcombine.low %v1961_v2, %v1968_v36  ;;  %v2014_v51 = vmul.f32 %v1921_v62, %v5755_v1  ;;  %v2015_v17 = vmul.f32 %v1925_v4, %v5774_v63  ;;  %v2016_v14 = vmul.f32 %v1929_v40, %v5840_v27 }
 0x4a4   :  { %v1990_v11 = vrot.slane %v1975_v42, %v5554_v6  ;;  %v2017_v23 = vmul.f32 %v1933_v26, %v5845_v34  ;;  %v1994_v56 = vmul.f32 %v1913_v57, %v5694_v44  ;;  %v1995_v29 = vmul.f32 %v1917_v15, %v5696_v48 }
 0x4a5   :  { %v1983_v25 = vrot.slane %v1976_v5, %v5554_v6  ;;  %v1996_v28 = vmul.f32 %v1921_v62, %v5705_v55  ;;  %v1997_v58 = vmul.f32 %v1925_v4, %v5724_v47  ;;  %v2000_v43 = vmul.f32 %v1913_v57, %v5701_v60 }
 0x4a6   :  { %v2001_v1 = vmul.f32 %v1917_v15, %v5703_v0  ;;  %v2002_v44 = vmul.f32 %v1921_v62, %v5711_v13  ;;  %v2003_v48 = vmul.f32 %v1925_v4, %v5732_v46 }
 0x4a7   :  { %v1991_v49 = vcombine.low %v1983_v25, %v1990_v11 }
 0x4a9   :  { %v1993_v7 = vsub.f32 %v1215_v16, %v1991_v49 }
 0x4ab   :  { %v2022_v63 = vrot.slane %v1993_v7, %v5438_v38  ;;  %v2026_v27 = vrot.slane %v1993_v7, %v5444_v54  ;;  %v2030_v34 = vrot.slane %v1993_v7, %v5441_v52  ;;  %v2034_v40 = vrot.slane %v1993_v7, %v5447_v30 }
 0x4ac   :  { %v2038_v55 = vrot.slane %v1993_v7, %v5804_v3  ;;  %v2042_v47 = vrot.slane %v1993_v7, %v5807_v12 }
 0x4ad   :  { %v5904_v26 = vadd.f32 %v2022_v63, %v1994_v56  ;;  %v2050_v60 = vadd.f32 %v2026_v27, %v1995_v29  ;;  %v5906_v0 = vadd.f32 %v2030_v34, %v1996_v28  ;;  %v5908_v57 = vadd.f32 %v2034_v40, %v1997_v58 }
 0x4ae   :  { %v5910_v15 = vadd.f32 %v2038_v55, %v1998_v8  ;;  %v5912_v18 = vadd.f32 %v2042_v47, %v1999_v41  ;;  %v5914_v53 = vadd.f32 %v2022_v63, %v2000_v43  ;;  %v2056_v13 = vadd.f32 %v2026_v27, %v2001_v1 }
 0x4af   :  { %v5916_v62 = vadd.f32 %v2030_v34, %v2002_v44  ;;  %v5918_v46 = vadd.f32 %v2034_v40, %v2003_v48  ;;  %v5920_v4 = vadd.f32 %v2038_v55, %v2004_v20  ;;  %v5922_v10 = vadd.f32 %v2042_v47, %v2005_v24 }
 0x4b0   :  { %v5924_v31 = vadd.f32 %v2022_v63, %v2006_v22  ;;  %v5926_v21 = vadd.f32 %v2026_v27, %v2007_v9  ;;  %v5928_v33 = vadd.f32 %v2030_v34, %v2008_v39  ;;  %v5930_v45 = vadd.f32 %v2034_v40, %v2009_v32 }
 0x4b1   :  { %v5932_v61 = vadd.f32 %v2038_v55, %v2010_v19  ;;  %v5934_v50 = vadd.f32 %v2042_v47, %v2011_v35  ;;  %v5936_v8 = vadd.f32 %v2022_v63, %v2012_v59  ;;  %v5938_v41 = vadd.f32 %v2026_v27, %v2013_v37 }
 0x4b2   :  { %v5940_v2 = vadd.f32 %v2030_v34, %v2014_v51  ;;  %v5942_v36 = vadd.f32 %v2034_v40, %v2015_v17  ;;  %v5944_v42 = vadd.f32 %v2038_v55, %v2016_v14  ;;  %v5946_v20 = vadd.f32 %v2042_v47, %v2017_v23 }
 0x4b3   :  { %5227 = dma.done.wait [#allocation7 + $0x1], 36864 }
 0x4b4   :  { %5228 = vsyncadd [#allocation7 + $0x1], 4294930432  ;;  %v5948_v24 = vpack.c.bf16 %v2056_v13, %v2050_v60  ;;  %v2090_v5 = vld [vmem:[#allocation4 + $0x8] sm:$0xff]  ;;  %v2092_v22 = vld [vmem:[#allocation4 + $0x18] sm:$0xff]  ;;  %s5261_s5 = smov [#allocation6]   ;;  %s5175_s18 = scalar_lea.hbm %s6506_s6, 4096 }
 0x4b5   :  { %v2089_v9 = vld [vmem:[#allocation4] sm:$0xff]  ;;  %2423 = vmatprep.subr.bf16.mxu1 %v2090_v5  ;;  %2582 = vmatprep.subr.bf16.mxu0 %v2092_v22  ;;  %v2091_v39 = vld [vmem:[#allocation4 + $0x10] sm:$0xff]  ;;  %v2096_v11 = vld [vmem:[#allocation4 + $0x38] sm:$0xff]  ;;  %s2085_s15 = sshll.u32 %s5261_s5, 4  ;;  %p5176_p13 = scmp.ne.s32.totalorder %s6506_s6, %s5175_s18  ;;  %s2086_s15 = int_to_ptr.vmem [resolvable:$true] %s2085_s15 }
 0x4b6   :  { %2455 = vmatprep.mubr.bf16.mxu1 %v5948_v24  ;;  %2614 = vmatprep.mubr.bf16.mxu0 %v5948_v24  ;;  %v2098_v32 = vld [vmem:[#allocation4 + $0x48] sm:$0xff]  ;;  %v2095_v19 = vld [vmem:[#allocation4 + $0x30] sm:$0xff]  ;;  %v2097_v35 = vld [vmem:[#allocation4 + $0x40] sm:$0xff]  ;;  %p5179_p0 = scmp.lt.u32.totalorder %s5175_s18, %s6506_s6 }
 0x4b7   :  { %2424 = vmatpush1.bf16.msra.mxu1 %v2089_v9  ;;  %2583 = vmatpush1.bf16.msra.mxu0 %v2091_v39  ;;  %v2102_v25 = vld [vmem:[#allocation4 + $0x68] sm:$0xff]  ;;  %v2104_v59 = vld [vmem:[#allocation4 + $0x78] sm:$0xff]  ;;  %v2101_v37 = vld [vmem:[#allocation4 + $0x60] sm:$0xff] }
 0x4b8   :  { %2425 = vmatprep.subr.bf16.mxu1 %v2096_v11  ;;  %2584 = vmatprep.subr.bf16.mxu0 %v2098_v32  ;;  %v2103_v51 = vld [vmem:[#allocation4 + $0x70] sm:$0xff]  ;;  %v2108_v16 = vld [vmem:[#allocation4 + $0x98] sm:$0xff]  ;;  %v2110_v17 = vld [vmem:[#allocation4 + $0xa8] sm:$0xff]  ;;  %p5181_p1 = pnand %p5179_p0, %p5176_p13 }
 0x4b9   :  { %v2107_v14 = vld [vmem:[#allocation4 + $0x90] sm:$0xff]  ;;  %v2109_v23 = vld [vmem:[#allocation4 + $0xa0] sm:$0xff]  ;;  %v2114_v49 = vld [vmem:[#allocation4 + $0xc8] sm:$0xff] }
 0x4ba   :  { %v2116_v7 = vld [vmem:[#allocation4 + $0xd8] sm:$0xff]  ;;  %v2113_v56 = vld [vmem:[#allocation4 + $0xc0] sm:$0xff]  ;;  %v2115_v29 = vld [vmem:[#allocation4 + $0xd0] sm:$0xff] }
 0x4bb   :  { %2426 = vmatpush1.bf16.msra.mxu1 %v2095_v19  ;;  %2585 = vmatpush1.bf16.msra.mxu0 %v2097_v35  ;;  %v2120_v28 = vld [vmem:[#allocation4 + $0xf8] sm:$0xff]  ;;  %v2122_v58 = vld [vmem:[#allocation4 + $0x108] sm:$0xff]  ;;  %v2119_v43 = vld [vmem:[#allocation4 + $0xf0] sm:$0xff] }
 0x4bc   :  { %2427 = vmatprep.subr.bf16.mxu1 %v2102_v25  ;;  %2586 = vmatprep.subr.bf16.mxu0 %v2104_v59  ;;  %v2121_v1 = vld [vmem:[#allocation4 + $0x100] sm:$0xff]  ;;  %v2126_v63 = vld [vmem:[#allocation4 + $0x128] sm:$0xff]  ;;  %v2128_v27 = vld [vmem:[#allocation4 + $0x138] sm:$0xff] }
 0x4bd   :  { %v2125_v34 = vld [vmem:[#allocation4 + $0x120] sm:$0xff]  ;;  %v2127_v40 = vld [vmem:[#allocation4 + $0x130] sm:$0xff]  ;;  %v2132_v44 = vld [vmem:[#allocation4 + $0x158] sm:$0xff] }
 0x4be   :  { %v2134_v48 = vld [vmem:[#allocation4 + $0x168] sm:$0xff]  ;;  %v2131_v55 = vld [vmem:[#allocation4 + $0x150] sm:$0xff]  ;;  %v2133_v47 = vld [vmem:[#allocation4 + $0x160] sm:$0xff] }
 0x4bf   :  { %2428 = vmatpush1.bf16.msra.mxu1 %v2101_v37  ;;  %2587 = vmatpush1.bf16.msra.mxu0 %v2103_v51  ;;  %v2138_v60 = vld [vmem:[#allocation4 + $0x188] sm:$0xff]  ;;  %v2140_v13 = vld [vmem:[#allocation4 + $0x198] sm:$0xff]  ;;  %v2137_v5 = vld [vmem:[#allocation4 + $0x180] sm:$0xff] }
 0x4c0   :  { %2429 = vmatprep.subr.bf16.mxu1 %v2108_v16  ;;  %2588 = vmatprep.subr.bf16.mxu0 %v2110_v17  ;;  %v2139_v22 = vld [vmem:[#allocation4 + $0x190] sm:$0xff]  ;;  %v2144_v9 = vld [vmem:[#allocation4 + $0x1b8] sm:$0xff]  ;;  %v2146_v39 = vld [vmem:[#allocation4 + $0x1c8] sm:$0xff] }
 0x4c1   :  { %v2143_v11 = vld [vmem:[#allocation4 + $0x1b0] sm:$0xff]  ;;  %v2145_v32 = vld [vmem:[#allocation4 + $0x1c0] sm:$0xff]  ;;  %v2150_v19 = vld [vmem:[#allocation4 + $0x1e8] sm:$0xff] }
 0x4c2   :  { %v2152_v35 = vld [vmem:[#allocation4 + $0x1f8] sm:$0xff]  ;;  %v2149_v25 = vld [vmem:[#allocation4 + $0x1e0] sm:$0xff]  ;;  %v2151_v59 = vld [vmem:[#allocation4 + $0x1f0] sm:$0xff] }
 0x4c3   :  { %2430 = vmatpush1.bf16.msra.mxu1 %v2107_v14  ;;  %2589 = vmatpush1.bf16.msra.mxu0 %v2109_v23  ;;  %v2156_v37 = vld [vmem:[#allocation4 + $0x218] sm:$0xff]  ;;  %v2158_v51 = vld [vmem:[#allocation4 + $0x228] sm:$0xff]  ;;  %v2155_v16 = vld [vmem:[#allocation4 + $0x210] sm:$0xff] }
 0x4c4   :  { %2431 = vmatprep.subr.bf16.mxu1 %v2114_v49  ;;  %2590 = vmatprep.subr.bf16.mxu0 %v2116_v7  ;;  %v2157_v17 = vld [vmem:[#allocation4 + $0x220] sm:$0xff]  ;;  %v2162_v14 = vld [vmem:[#allocation4 + $0x248] sm:$0xff]  ;;  %v2164_v23 = vld [vmem:[#allocation4 + $0x258] sm:$0xff] }
 0x4c5   :  { %v2161_v49 = vld [vmem:[#allocation4 + $0x240] sm:$0xff]  ;;  %v2163_v7 = vld [vmem:[#allocation4 + $0x250] sm:$0xff] }
 0x4c7   :  { %2432 = vmatpush1.bf16.msra.mxu1 %v2113_v56  ;;  %2591 = vmatpush1.bf16.msra.mxu0 %v2115_v29  ;;  %v2168_v56 = vld [vmem:[#allocation4 + $0x278] sm:$0xff]  ;;  %v2170_v29 = vld [vmem:[#allocation4 + $0x288] sm:$0xff] }
 0x4c8   :  { %2433 = vmatprep.subr.bf16.mxu1 %v2120_v28  ;;  %2592 = vmatprep.subr.bf16.mxu0 %v2122_v58  ;;  %v2167_v28 = vld [vmem:[#allocation4 + $0x270] sm:$0xff]  ;;  %v2169_v58 = vld [vmem:[#allocation4 + $0x280] sm:$0xff] }
 0x4cb   :  { %2434 = vmatpush1.bf16.msra.mxu1 %v2119_v43  ;;  %2593 = vmatpush1.bf16.msra.mxu0 %v2121_v1  ;;  %v2174_v43 = vld [vmem:[#allocation4 + $0x2a8] sm:$0xff]  ;;  %v2176_v1 = vld [vmem:[#allocation4 + $0x2b8] sm:$0xff] }
 0x4cc   :  { %2435 = vmatprep.subr.bf16.mxu1 %v2126_v63  ;;  %2594 = vmatprep.subr.bf16.mxu0 %v2128_v27  ;;  %v2173_v63 = vld [vmem:[#allocation4 + $0x2a0] sm:$0xff]  ;;  %v2175_v27 = vld [vmem:[#allocation4 + $0x2b0] sm:$0xff] }
 0x4cf   :  { %2436 = vmatpush1.bf16.msra.mxu1 %v2125_v34  ;;  %2595 = vmatpush1.bf16.msra.mxu0 %v2127_v40  ;;  %v2180_v34 = vld [vmem:[#allocation4 + $0x2d8] sm:$0xff]  ;;  %v2182_v40 = vld [vmem:[#allocation4 + $0x2e8] sm:$0xff] }
 0x4d0   :  { %2437 = vmatprep.subr.bf16.mxu1 %v2132_v44  ;;  %2596 = vmatprep.subr.bf16.mxu0 %v2134_v48  ;;  %v2179_v44 = vld [vmem:[#allocation4 + $0x2d0] sm:$0xff]  ;;  %v2181_v48 = vld [vmem:[#allocation4 + $0x2e0] sm:$0xff] }
 0x4d3   :  { %2438 = vmatpush1.bf16.msra.mxu1 %v2131_v55  ;;  %2597 = vmatpush1.bf16.msra.mxu0 %v2133_v47  ;;  %v2186_v55 = vld [vmem:[#allocation4 + $0x308] sm:$0xff]  ;;  %v2188_v47 = vld [vmem:[#allocation4 + $0x318] sm:$0xff] }
 0x4d4   :  { %2439 = vmatprep.subr.bf16.mxu1 %v2138_v60  ;;  %2598 = vmatprep.subr.bf16.mxu0 %v2140_v13  ;;  %v5954_v60 = vpack.c.bf16 %v5914_v53, %v5904_v26  ;;  %v2185_v13 = vld [vmem:[#allocation4 + $0x300] sm:$0xff]  ;;  %v2191_v26 = vld [vmem:[#allocation4 + $0x330] sm:$0xff] }
 0x4d5   :  { %v2193_v53 = vld [vmem:[#allocation4 + $0x340] sm:$0xff] }
 0x4d7   :  { %2440 = vmatpush1.bf16.msra.mxu1 %v2137_v5  ;;  %2599 = vmatpush1.bf16.msra.mxu0 %v2139_v22  ;;  %v2187_v5 = vld [vmem:[#allocation4 + $0x310] sm:$0xff]  ;;  %v2192_v22 = vld [vmem:[#allocation4 + $0x338] sm:$0xff] }
 0x4d8   :  { %2441 = vmatprep.subr.bf16.mxu1 %v2144_v9  ;;  %2600 = vmatprep.subr.bf16.mxu0 %v2146_v39  ;;  %v2194_v9 = vld [vmem:[#allocation4 + $0x348] sm:$0xff]  ;;  %v5958_v39 = vpack.c.bf16 %v5938_v41, %v5926_v21  ;;  %v5966_v21 = vpack.c.bf16 %v5936_v8, %v5924_v31  ;;  %v2197_v41 = vld [vmem:[#allocation4 + $0x360] sm:$0xff]  ;;  %v2203_v31 = vld [vmem:[#allocation4 + $0x390] sm:$0xff] }
 0x4d9   :  { %v2205_v8 = vld [vmem:[#allocation4 + $0x3a0] sm:$0xff] }
 0x4db   :  { %2442 = vmatpush1.bf16.msra.mxu1 %v2143_v11  ;;  %2601 = vmatpush1.bf16.msra.mxu0 %v2145_v32  ;;  %v2198_v11 = vld [vmem:[#allocation4 + $0x368] sm:$0xff]  ;;  %v2200_v32 = vld [vmem:[#allocation4 + $0x378] sm:$0xff] }
 0x4dc   :  { %2443 = vmatprep.subr.bf16.mxu1 %v2150_v19  ;;  %2602 = vmatprep.subr.bf16.mxu0 %v2152_v35  ;;  %v2199_v19 = vld [vmem:[#allocation4 + $0x370] sm:$0xff]  ;;  %v2204_v35 = vld [vmem:[#allocation4 + $0x398] sm:$0xff] }
 0x4df   :  { %2444 = vmatpush1.bf16.msra.mxu1 %v2149_v25  ;;  %2603 = vmatpush1.bf16.msra.mxu0 %v2151_v59  ;;  %v2206_v25 = vld [vmem:[#allocation4 + $0x3a8] sm:$0xff]  ;;  %v5970_v59 = vpack.c.bf16 %v5918_v46, %v5908_v57  ;;  %v2209_v57 = vld [vmem:[#allocation4 + $0x3c0] sm:$0xff]  ;;  %v2211_v46 = vld [vmem:[#allocation4 + $0x3d0] sm:$0xff] }
 0x4e0   :  { %2445 = vmatprep.subr.bf16.mxu1 %v2156_v37  ;;  %2604 = vmatprep.subr.bf16.mxu0 %v2158_v51  ;;  %v2210_v37 = vld [vmem:[#allocation4 + $0x3c8] sm:$0xff]  ;;  %v2212_v51 = vld [vmem:[#allocation4 + $0x3d8] sm:$0xff] }
 0x4e3   :  { %2446 = vmatpush1.bf16.msra.mxu1 %v2155_v16  ;;  %2605 = vmatpush1.bf16.msra.mxu0 %v2157_v17  ;;  %v2216_v16 = vld [vmem:[#allocation4 + $0x3f8] sm:$0xff]  ;;  %v2218_v17 = vld [vmem:[#allocation4 + $0x408] sm:$0xff] }
 0x4e4   :  { %2447 = vmatprep.subr.bf16.mxu1 %v2162_v14  ;;  %2606 = vmatprep.subr.bf16.mxu0 %v2164_v23  ;;  %v2215_v14 = vld [vmem:[#allocation4 + $0x3f0] sm:$0xff]  ;;  %v2217_v23 = vld [vmem:[#allocation4 + $0x400] sm:$0xff] }
 0x4e7   :  { %2448 = vmatpush1.bf16.msra.mxu1 %v2161_v49  ;;  %2607 = vmatpush1.bf16.msra.mxu0 %v2163_v7  ;;  %v2222_v49 = vld [vmem:[#allocation4 + $0x428] sm:$0xff]  ;;  %v2224_v7 = vld [vmem:[#allocation4 + $0x438] sm:$0xff] }
 0x4e8   :  { %2449 = vmatprep.subr.bf16.mxu1 %v2168_v56  ;;  %2608 = vmatprep.subr.bf16.mxu0 %v2170_v29  ;;  %v2221_v56 = vld [vmem:[#allocation4 + $0x420] sm:$0xff]  ;;  %v2223_v29 = vld [vmem:[#allocation4 + $0x430] sm:$0xff] }
 0x4eb   :  { %2450 = vmatpush1.bf16.msra.mxu1 %v2167_v28  ;;  %2609 = vmatpush1.bf16.msra.mxu0 %v2169_v58  ;;  %v2228_v28 = vld [vmem:[#allocation4 + $0x458] sm:$0xff]  ;;  %v2230_v58 = vld [vmem:[#allocation4 + $0x468] sm:$0xff] }
 0x4ec   :  { %2451 = vmatprep.subr.bf16.mxu1 %v2174_v43  ;;  %2610 = vmatprep.subr.bf16.mxu0 %v2176_v1  ;;  %v2227_v43 = vld [vmem:[#allocation4 + $0x450] sm:$0xff]  ;;  %v2229_v1 = vld [vmem:[#allocation4 + $0x460] sm:$0xff] }
 0x4ef   :  { %2452 = vmatpush1.bf16.msra.mxu1 %v2173_v63  ;;  %2611 = vmatpush1.bf16.msra.mxu0 %v2175_v27  ;;  %v2234_v63 = vld [vmem:[#allocation4 + $0x488] sm:$0xff]  ;;  %v2236_v27 = vld [vmem:[#allocation4 + $0x498] sm:$0xff] }
 0x4f0   :  { %2453 = vmatprep.subr.bf16.mxu1 %v2180_v34  ;;  %2612 = vmatprep.subr.bf16.mxu0 %v2182_v40  ;;  %v2233_v34 = vld [vmem:[#allocation4 + $0x480] sm:$0xff]  ;;  %v2235_v40 = vld [vmem:[#allocation4 + $0x490] sm:$0xff] }
 0x4f3   :  { %2454 = vmatpush1.bf16.msra.mxu1 %v2179_v44  ;;  %2613 = vmatpush1.bf16.msra.mxu0 %v2181_v48  ;;  %v2240_v44 = vld [vmem:[#allocation4 + $0x4b8] sm:$0xff]  ;;  %v2242_v48 = vld [vmem:[#allocation4 + $0x4c8] sm:$0xff] }
 0x4f4   :  { %2476 = vmatprep.subr.bf16.mxu1 %v2186_v55  ;;  %2635 = vmatprep.subr.bf16.mxu0 %v2188_v47  ;;  %v2239_v55 = vld [vmem:[#allocation4 + $0x4b0] sm:$0xff]  ;;  %v2241_v47 = vld [vmem:[#allocation4 + $0x4c0] sm:$0xff] }
 0x4f6   :  { %2456 = vmatmul.mubr.bf16.vlgmr.msra.gmra.mrb[16].mxu1 %v5954_v60  ;;  %2615 = vmatmul.mubr.bf16.vlgmr.msra.gmra.mrb[24].mxu0 %v5954_v60 }
 0x4f7   :  { %2477 = vmatpush1.bf16.msra.mxu1 %v2185_v13  ;;  %2636 = vmatpush1.bf16.msra.mxu0 %v2187_v5  ;;  %v2246_v13 = vld [vmem:[#allocation4 + $0x4e8] sm:$0xff]  ;;  %v2248_v5 = vld [vmem:[#allocation4 + $0x4f8] sm:$0xff] }
 0x4f8   :  { %2478 = vmatprep.subr.bf16.mxu1 %v2192_v22  ;;  %2637 = vmatprep.subr.bf16.mxu0 %v2194_v9  ;;  %v2245_v22 = vld [vmem:[#allocation4 + $0x4e0] sm:$0xff]  ;;  %v2247_v9 = vld [vmem:[#allocation4 + $0x4f0] sm:$0xff] }
 0x4f9   :  { %2465 = vmatprep.mubr.bf16.mxu1 %v5958_v39  ;;  %2624 = vmatprep.mubr.bf16.mxu0 %v5958_v39 }
 0x4fb   :  { %2479 = vmatpush1.bf16.msra.mxu1 %v2191_v26  ;;  %2638 = vmatpush1.bf16.msra.mxu0 %v2193_v53  ;;  %v2252_v26 = vld [vmem:[#allocation4 + $0x518] sm:$0xff]  ;;  %v2254_v53 = vld [vmem:[#allocation4 + $0x528] sm:$0xff] }
 0x4fc   :  { %2480 = vmatprep.subr.bf16.mxu1 %v2198_v11  ;;  %2639 = vmatprep.subr.bf16.mxu0 %v2200_v32  ;;  %v2251_v11 = vld [vmem:[#allocation4 + $0x510] sm:$0xff]  ;;  %v2253_v32 = vld [vmem:[#allocation4 + $0x520] sm:$0xff] }
 0x4fe   :  { %2466 = vmatmul.mubr.bf16.gmra.mrb[20].mxu1 %v5966_v21  ;;  %2625 = vmatmul.mubr.bf16.gmra.mrb[28].mxu0 %v5966_v21 }
 0x4ff   :  { %2481 = vmatpush1.bf16.msra.mxu1 %v2197_v41  ;;  %2640 = vmatpush1.bf16.msra.mxu0 %v2199_v19  ;;  %v2258_v41 = vld [vmem:[#allocation4 + $0x548] sm:$0xff]  ;;  %v2260_v19 = vld [vmem:[#allocation4 + $0x558] sm:$0xff] }
 0x500   :  { %2482 = vmatprep.subr.bf16.mxu1 %v2204_v35  ;;  %2641 = vmatprep.subr.bf16.mxu0 %v2206_v25  ;;  %v2257_v35 = vld [vmem:[#allocation4 + $0x540] sm:$0xff]  ;;  %v2259_v25 = vld [vmem:[#allocation4 + $0x550] sm:$0xff] }
 0x501   :  { %2508 = vmatprep.mubr.bf16.mxu1 %v5970_v59  ;;  %2667 = vmatprep.mubr.bf16.mxu0 %v5970_v59 }
 0x503   :  { %2483 = vmatpush1.bf16.msra.mxu1 %v2203_v31  ;;  %2642 = vmatpush1.bf16.msra.mxu0 %v2205_v8  ;;  %v2264_v31 = vld [vmem:[#allocation4 + $0x578] sm:$0xff]  ;;  %v2266_v8 = vld [vmem:[#allocation4 + $0x588] sm:$0xff] }
 0x504   :  { %2484 = vmatprep.subr.bf16.mxu1 %v2210_v37  ;;  %2643 = vmatprep.subr.bf16.mxu0 %v2212_v51  ;;  %v2263_v37 = vld [vmem:[#allocation4 + $0x570] sm:$0xff]  ;;  %v2265_v51 = vld [vmem:[#allocation4 + $0x580] sm:$0xff] }
 0x507   :  { %2485 = vmatpush1.bf16.msra.mxu1 %v2209_v57  ;;  %2644 = vmatpush1.bf16.msra.mxu0 %v2211_v46  ;;  %v2270_v57 = vld [vmem:[#allocation4 + $0x5a8] sm:$0xff]  ;;  %v2272_v46 = vld [vmem:[#allocation4 + $0x5b8] sm:$0xff] }
 0x508   :  { %2486 = vmatprep.subr.bf16.mxu1 %v2216_v16  ;;  %2645 = vmatprep.subr.bf16.mxu0 %v2218_v17  ;;  %v2269_v16 = vld [vmem:[#allocation4 + $0x5a0] sm:$0xff]  ;;  %v2271_v17 = vld [vmem:[#allocation4 + $0x5b0] sm:$0xff] }
 0x50b   :  { %2487 = vmatpush1.bf16.msra.mxu1 %v2215_v14  ;;  %2646 = vmatpush1.bf16.msra.mxu0 %v2217_v23  ;;  %v2276_v14 = vld [vmem:[#allocation4 + $0x5d8] sm:$0xff]  ;;  %v2278_v23 = vld [vmem:[#allocation4 + $0x5e8] sm:$0xff] }
 0x50c   :  { %2488 = vmatprep.subr.bf16.mxu1 %v2222_v49  ;;  %2647 = vmatprep.subr.bf16.mxu0 %v2224_v7  ;;  %v2275_v49 = vld [vmem:[#allocation4 + $0x5d0] sm:$0xff]  ;;  %v2277_v7 = vld [vmem:[#allocation4 + $0x5e0] sm:$0xff] }
 0x50f   :  { %2489 = vmatpush1.bf16.msra.mxu1 %v2221_v56  ;;  %2648 = vmatpush1.bf16.msra.mxu0 %v2223_v29  ;;  %v2282_v56 = vld [vmem:[#allocation4 + $0x608] sm:$0xff]  ;;  %v2284_v29 = vld [vmem:[#allocation4 + $0x618] sm:$0xff] }
 0x510   :  { %2490 = vmatprep.subr.bf16.mxu1 %v2228_v28  ;;  %2649 = vmatprep.subr.bf16.mxu0 %v2230_v58  ;;  %v5978_v28 = vpack.c.bf16 %v5916_v62, %v5906_v0  ;;  %v2281_v58 = vld [vmem:[#allocation4 + $0x600] sm:$0xff]  ;;  %v2287_v0 = vld [vmem:[#allocation4 + $0x630] sm:$0xff] }
 0x511   :  { %v2289_v62 = vld [vmem:[#allocation4 + $0x640] sm:$0xff] }
 0x513   :  { %2491 = vmatpush1.bf16.msra.mxu1 %v2227_v43  ;;  %2650 = vmatpush1.bf16.msra.mxu0 %v2229_v1  ;;  %v2283_v43 = vld [vmem:[#allocation4 + $0x610] sm:$0xff]  ;;  %v2288_v1 = vld [vmem:[#allocation4 + $0x638] sm:$0xff] }
 0x514   :  { %2492 = vmatprep.subr.bf16.mxu1 %v2234_v63  ;;  %2651 = vmatprep.subr.bf16.mxu0 %v2236_v27  ;;  %v2290_v63 = vld [vmem:[#allocation4 + $0x648] sm:$0xff]  ;;  %v5982_v27 = vpack.c.bf16 %v5942_v36, %v5930_v45  ;;  %v5990_v45 = vpack.c.bf16 %v5940_v2, %v5928_v33  ;;  %v2293_v36 = vld [vmem:[#allocation4 + $0x660] sm:$0xff]  ;;  %v2299_v33 = vld [vmem:[#allocation4 + $0x690] sm:$0xff] }
 0x515   :  { %v2301_v2 = vld [vmem:[#allocation4 + $0x6a0] sm:$0xff] }
 0x517   :  { %2493 = vmatpush1.bf16.msra.mxu1 %v2233_v34  ;;  %2652 = vmatpush1.bf16.msra.mxu0 %v2235_v40  ;;  %v2294_v34 = vld [vmem:[#allocation4 + $0x668] sm:$0xff]  ;;  %v2296_v40 = vld [vmem:[#allocation4 + $0x678] sm:$0xff] }
 0x518   :  { %2494 = vmatprep.subr.bf16.mxu1 %v2240_v44  ;;  %2653 = vmatprep.subr.bf16.mxu0 %v2242_v48  ;;  %v2295_v44 = vld [vmem:[#allocation4 + $0x670] sm:$0xff]  ;;  %v2300_v48 = vld [vmem:[#allocation4 + $0x698] sm:$0xff] }
 0x51b   :  { %2495 = vmatpush1.bf16.msra.mxu1 %v2239_v55  ;;  %2654 = vmatpush1.bf16.msra.mxu0 %v2241_v47  ;;  %v2302_v55 = vld [vmem:[#allocation4 + $0x6a8] sm:$0xff]  ;;  %v5994_v47 = vpack.c.bf16 %v5922_v10, %v5912_v18  ;;  %v2305_v18 = vld [vmem:[#allocation4 + $0x6c0] sm:$0xff]  ;;  %v2307_v10 = vld [vmem:[#allocation4 + $0x6d0] sm:$0xff] }
 0x51c   :  { %2496 = vmatprep.subr.bf16.mxu1 %v2246_v13  ;;  %2655 = vmatprep.subr.bf16.mxu0 %v2248_v5  ;;  %v2306_v13 = vld [vmem:[#allocation4 + $0x6c8] sm:$0xff]  ;;  %v2308_v5 = vld [vmem:[#allocation4 + $0x6d8] sm:$0xff] }
 0x51f   :  { %2497 = vmatpush1.bf16.msra.mxu1 %v2245_v22  ;;  %2656 = vmatpush1.bf16.msra.mxu0 %v2247_v9  ;;  %v2312_v22 = vld [vmem:[#allocation4 + $0x6f8] sm:$0xff]  ;;  %v2314_v9 = vld [vmem:[#allocation4 + $0x708] sm:$0xff] }
 0x520   :  { %2498 = vmatprep.subr.bf16.mxu1 %v2252_v26  ;;  %2657 = vmatprep.subr.bf16.mxu0 %v2254_v53  ;;  %v2311_v26 = vld [vmem:[#allocation4 + $0x6f0] sm:$0xff]  ;;  %v2313_v53 = vld [vmem:[#allocation4 + $0x700] sm:$0xff] }
 0x523   :  { %2499 = vmatpush1.bf16.msra.mxu1 %v2251_v11  ;;  %2658 = vmatpush1.bf16.msra.mxu0 %v2253_v32  ;;  %v2318_v11 = vld [vmem:[#allocation4 + $0x728] sm:$0xff]  ;;  %v2320_v32 = vld [vmem:[#allocation4 + $0x738] sm:$0xff] }
 0x524   :  { %2500 = vmatprep.subr.bf16.mxu1 %v2258_v41  ;;  %2659 = vmatprep.subr.bf16.mxu0 %v2260_v19  ;;  %v2317_v41 = vld [vmem:[#allocation4 + $0x720] sm:$0xff]  ;;  %v2319_v19 = vld [vmem:[#allocation4 + $0x730] sm:$0xff] }
 0x527   :  { %2501 = vmatpush1.bf16.msra.mxu1 %v2257_v35  ;;  %2660 = vmatpush1.bf16.msra.mxu0 %v2259_v25  ;;  %v2324_v35 = vld [vmem:[#allocation4 + $0x758] sm:$0xff]  ;;  %v2326_v25 = vld [vmem:[#allocation4 + $0x768] sm:$0xff] }
 0x528   :  { %2502 = vmatprep.subr.bf16.mxu1 %v2264_v31  ;;  %2661 = vmatprep.subr.bf16.mxu0 %v2266_v8  ;;  %v2323_v31 = vld [vmem:[#allocation4 + $0x750] sm:$0xff]  ;;  %v2325_v8 = vld [vmem:[#allocation4 + $0x760] sm:$0xff] }
 0x52b   :  { %2503 = vmatpush1.bf16.msra.mxu1 %v2263_v37  ;;  %2662 = vmatpush1.bf16.msra.mxu0 %v2265_v51  ;;  %v2330_v37 = vld [vmem:[#allocation4 + $0x788] sm:$0xff]  ;;  %v2332_v51 = vld [vmem:[#allocation4 + $0x798] sm:$0xff] }
 0x52c   :  { %2504 = vmatprep.subr.bf16.mxu1 %v2270_v57  ;;  %2663 = vmatprep.subr.bf16.mxu0 %v2272_v46  ;;  %v2329_v57 = vld [vmem:[#allocation4 + $0x780] sm:$0xff]  ;;  %v2331_v46 = vld [vmem:[#allocation4 + $0x790] sm:$0xff] }
 0x52f   :  { %2505 = vmatpush1.bf16.msra.mxu1 %v2269_v16  ;;  %2664 = vmatpush1.bf16.msra.mxu0 %v2271_v17  ;;  %v2336_v16 = vld [vmem:[#allocation4 + $0x7b8] sm:$0xff]  ;;  %v2338_v17 = vld [vmem:[#allocation4 + $0x7c8] sm:$0xff] }
 0x530   :  { %2506 = vmatprep.subr.bf16.mxu1 %v2276_v14  ;;  %2665 = vmatprep.subr.bf16.mxu0 %v2278_v23  ;;  %v2335_v14 = vld [vmem:[#allocation4 + $0x7b0] sm:$0xff]  ;;  %v2337_v23 = vld [vmem:[#allocation4 + $0x7c0] sm:$0xff] }
 0x533   :  { %2507 = vmatpush1.bf16.msra.mxu1 %v2275_v49  ;;  %2666 = vmatpush1.bf16.msra.mxu0 %v2277_v7  ;;  %v2342_v49 = vld [vmem:[#allocation4 + $0x7e8] sm:$0xff]  ;;  %v2344_v7 = vld [vmem:[#allocation4 + $0x7f8] sm:$0xff] }
 0x534   :  { %2529 = vmatprep.subr.bf16.mxu1 %v2282_v56  ;;  %2688 = vmatprep.subr.bf16.mxu0 %v2284_v29  ;;  %v2341_v56 = vld [vmem:[#allocation4 + $0x7e0] sm:$0xff]  ;;  %v2343_v29 = vld [vmem:[#allocation4 + $0x7f0] sm:$0xff] }
 0x536   :  { %2509 = vmatmul.mubr.bf16.vlgmr.msra.gmra.mrb[16].mxu1 %v5978_v28  ;;  %2668 = vmatmul.mubr.bf16.vlgmr.msra.gmra.mrb[24].mxu0 %v5978_v28 }
 0x537   :  { %2530 = vmatpush1.bf16.msra.mxu1 %v2281_v58  ;;  %2689 = vmatpush1.bf16.msra.mxu0 %v2283_v43  ;;  %v2348_v58 = vld [vmem:[#allocation4 + $0x818] sm:$0xff]  ;;  %v2350_v43 = vld [vmem:[#allocation4 + $0x828] sm:$0xff] }
 0x538   :  { %2531 = vmatprep.subr.bf16.mxu1 %v2288_v1  ;;  %2690 = vmatprep.subr.bf16.mxu0 %v2290_v63  ;;  %v2347_v1 = vld [vmem:[#allocation4 + $0x810] sm:$0xff]  ;;  %v2349_v63 = vld [vmem:[#allocation4 + $0x820] sm:$0xff] }
 0x539   :  { %2518 = vmatprep.mubr.bf16.mxu1 %v5982_v27  ;;  %2677 = vmatprep.mubr.bf16.mxu0 %v5982_v27 }
 0x53b   :  { %2532 = vmatpush1.bf16.msra.mxu1 %v2287_v0  ;;  %2691 = vmatpush1.bf16.msra.mxu0 %v2289_v62  ;;  %v2354_v0 = vld [vmem:[#allocation4 + $0x848] sm:$0xff]  ;;  %v2356_v62 = vld [vmem:[#allocation4 + $0x858] sm:$0xff] }
 0x53c   :  { %2533 = vmatprep.subr.bf16.mxu1 %v2294_v34  ;;  %2692 = vmatprep.subr.bf16.mxu0 %v2296_v40  ;;  %v2353_v34 = vld [vmem:[#allocation4 + $0x840] sm:$0xff]  ;;  %v2355_v40 = vld [vmem:[#allocation4 + $0x850] sm:$0xff] }
 0x53e   :  { %2519 = vmatmul.mubr.bf16.gmra.mrb[20].mxu1 %v5990_v45  ;;  %2678 = vmatmul.mubr.bf16.gmra.mrb[28].mxu0 %v5990_v45 }
 0x53f   :  { %2534 = vmatpush1.bf16.msra.mxu1 %v2293_v36  ;;  %2693 = vmatpush1.bf16.msra.mxu0 %v2295_v44  ;;  %v2360_v36 = vld [vmem:[#allocation4 + $0x878] sm:$0xff]  ;;  %v2362_v44 = vld [vmem:[#allocation4 + $0x888] sm:$0xff] }
 0x540   :  { %2535 = vmatprep.subr.bf16.mxu1 %v2300_v48  ;;  %2694 = vmatprep.subr.bf16.mxu0 %v2302_v55  ;;  %v2359_v48 = vld [vmem:[#allocation4 + $0x870] sm:$0xff]  ;;  %v2361_v55 = vld [vmem:[#allocation4 + $0x880] sm:$0xff] }
 0x541   :  { %2561 = vmatprep.mubr.bf16.mxu1 %v5994_v47  ;;  %2720 = vmatprep.mubr.bf16.mxu0 %v5994_v47 }
 0x543   :  { %2536 = vmatpush1.bf16.msra.mxu1 %v2299_v33  ;;  %2695 = vmatpush1.bf16.msra.mxu0 %v2301_v2  ;;  %v2366_v33 = vld [vmem:[#allocation4 + $0x8a8] sm:$0xff]  ;;  %v2368_v2 = vld [vmem:[#allocation4 + $0x8b8] sm:$0xff] }
 0x544   :  { %2537 = vmatprep.subr.bf16.mxu1 %v2306_v13  ;;  %2696 = vmatprep.subr.bf16.mxu0 %v2308_v5  ;;  %v2365_v13 = vld [vmem:[#allocation4 + $0x8a0] sm:$0xff]  ;;  %v2367_v5 = vld [vmem:[#allocation4 + $0x8b0] sm:$0xff] }
 0x547   :  { %2538 = vmatpush1.bf16.msra.mxu1 %v2305_v18  ;;  %2697 = vmatpush1.bf16.msra.mxu0 %v2307_v10  ;;  %v2372_v18 = vld [vmem:[#allocation4 + $0x8d8] sm:$0xff]  ;;  %v2374_v10 = vld [vmem:[#allocation4 + $0x8e8] sm:$0xff] }
 0x548   :  { %2539 = vmatprep.subr.bf16.mxu1 %v2312_v22  ;;  %2698 = vmatprep.subr.bf16.mxu0 %v2314_v9  ;;  %v2371_v22 = vld [vmem:[#allocation4 + $0x8d0] sm:$0xff]  ;;  %v2373_v9 = vld [vmem:[#allocation4 + $0x8e0] sm:$0xff] }
 0x54b   :  { %2540 = vmatpush1.bf16.msra.mxu1 %v2311_v26  ;;  %2699 = vmatpush1.bf16.msra.mxu0 %v2313_v53  ;;  %v2094_v26 = vld [vmem:[#allocation4 + $0x28] sm:$0xff]  ;;  %v6002_v53 = vpack.c.bf16 %v5920_v4, %v5910_v15  ;;  %v6014_v4 = vpack.c.bf16 %v5944_v42, %v5932_v61  ;;  %v2123_v61 = vld [vmem:[#allocation4 + $0x110] sm:$0xff] }
 0x54c   :  { %2541 = vmatprep.subr.bf16.mxu1 %v2318_v11  ;;  %2700 = vmatprep.subr.bf16.mxu0 %v2320_v32  ;;  %v6006_v11 = vpack.c.bf16 %v5946_v20, %v5934_v50  ;;  %v2093_v32 = vld [vmem:[#allocation4 + $0x20] sm:$0xff]  ;;  %v2106_v15 = vld [vmem:[#allocation4 + $0x88] sm:$0xff]  ;;  %v2112_v20 = vld [vmem:[#allocation4 + $0xb8] sm:$0xff] }
 0x54d   :  { %v2105_v50 = vld [vmem:[#allocation4 + $0x80] sm:$0xff]  ;;  %v2130_v42 = vld [vmem:[#allocation4 + $0x148] sm:$0xff] }
 0x54f   :  { %2542 = vmatpush1.bf16.msra.mxu1 %v2317_v41  ;;  %2701 = vmatpush1.bf16.msra.mxu0 %v2319_v19  ;;  %v2100_v41 = vld [vmem:[#allocation4 + $0x58] sm:$0xff]  ;;  %v2099_v19 = vld [vmem:[#allocation4 + $0x50] sm:$0xff] }
 0x550   :  { %2543 = vmatprep.subr.bf16.mxu1 %v2324_v35  ;;  %2702 = vmatprep.subr.bf16.mxu0 %v2326_v25  ;;  %v2111_v35 = vld [vmem:[#allocation4 + $0xb0] sm:$0xff]  ;;  %v2118_v25 = vld [vmem:[#allocation4 + $0xe8] sm:$0xff] }
 0x553   :  { %2544 = vmatpush1.bf16.msra.mxu1 %v2323_v31  ;;  %2703 = vmatpush1.bf16.msra.mxu0 %v2325_v8  ;;  %v2117_v31 = vld [vmem:[#allocation4 + $0xe0] sm:$0xff]  ;;  %v2124_v8 = vld [vmem:[#allocation4 + $0x118] sm:$0xff] }
 0x554   :  { %2545 = vmatprep.subr.bf16.mxu1 %v2330_v37  ;;  %2704 = vmatprep.subr.bf16.mxu0 %v2332_v51  ;;  %v2129_v37 = vld [vmem:[#allocation4 + $0x140] sm:$0xff]  ;;  %v2136_v51 = vld [vmem:[#allocation4 + $0x178] sm:$0xff] }
 0x557   :  { %2546 = vmatpush1.bf16.msra.mxu1 %v2329_v57  ;;  %2705 = vmatpush1.bf16.msra.mxu0 %v2331_v46  ;;  %v2135_v57 = vld [vmem:[#allocation4 + $0x170] sm:$0xff]  ;;  %v2142_v46 = vld [vmem:[#allocation4 + $0x1a8] sm:$0xff] }
 0x558   :  { %2547 = vmatprep.subr.bf16.mxu1 %v2336_v16  ;;  %2706 = vmatprep.subr.bf16.mxu0 %v2338_v17  ;;  %v2148_v16 = vld [vmem:[#allocation4 + $0x1d8] sm:$0xff]  ;;  %v2147_v17 = vld [vmem:[#allocation4 + $0x1d0] sm:$0xff] }
 0x55b   :  { %2548 = vmatpush1.bf16.msra.mxu1 %v2335_v14  ;;  %2707 = vmatpush1.bf16.msra.mxu0 %v2337_v23  ;;  %v2154_v14 = vld [vmem:[#allocation4 + $0x208] sm:$0xff]  ;;  %v2153_v23 = vld [vmem:[#allocation4 + $0x200] sm:$0xff] }
 0x55c   :  { %2549 = vmatprep.subr.bf16.mxu1 %v2342_v49  ;;  %2708 = vmatprep.subr.bf16.mxu0 %v2344_v7  ;;  %v2160_v49 = vld [vmem:[#allocation4 + $0x238] sm:$0xff]  ;;  %v2159_v7 = vld [vmem:[#allocation4 + $0x230] sm:$0xff] }
 0x55f   :  { %2550 = vmatpush1.bf16.msra.mxu1 %v2341_v56  ;;  %2709 = vmatpush1.bf16.msra.mxu0 %v2343_v29  ;;  %v2166_v56 = vld [vmem:[#allocation4 + $0x268] sm:$0xff]  ;;  %v2165_v29 = vld [vmem:[#allocation4 + $0x260] sm:$0xff] }
 0x560   :  { %2551 = vmatprep.subr.bf16.mxu1 %v2348_v58  ;;  %2710 = vmatprep.subr.bf16.mxu0 %v2350_v43  ;;  %v2172_v58 = vld [vmem:[#allocation4 + $0x298] sm:$0xff]  ;;  %v2171_v43 = vld [vmem:[#allocation4 + $0x290] sm:$0xff] }
 0x563   :  { %2552 = vmatpush1.bf16.msra.mxu1 %v2347_v1  ;;  %2711 = vmatpush1.bf16.msra.mxu0 %v2349_v63  ;;  %v2178_v1 = vld [vmem:[#allocation4 + $0x2c8] sm:$0xff]  ;;  %v2177_v63 = vld [vmem:[#allocation4 + $0x2c0] sm:$0xff] }
 0x564   :  { %2553 = vmatprep.subr.bf16.mxu1 %v2354_v0  ;;  %2712 = vmatprep.subr.bf16.mxu0 %v2356_v62  ;;  %v2184_v0 = vld [vmem:[#allocation4 + $0x2f8] sm:$0xff]  ;;  %v2183_v62 = vld [vmem:[#allocation4 + $0x2f0] sm:$0xff] }
 0x567   :  { %2554 = vmatpush1.bf16.msra.mxu1 %v2353_v34  ;;  %2713 = vmatpush1.bf16.msra.mxu0 %v2355_v40  ;;  %v2190_v34 = vld [vmem:[#allocation4 + $0x328] sm:$0xff]  ;;  %v2189_v40 = vld [vmem:[#allocation4 + $0x320] sm:$0xff] }
 0x568   :  { %2555 = vmatprep.subr.bf16.mxu1 %v2360_v36  ;;  %2714 = vmatprep.subr.bf16.mxu0 %v2362_v44  ;;  %v2196_v36 = vld [vmem:[#allocation4 + $0x358] sm:$0xff]  ;;  %v2195_v44 = vld [vmem:[#allocation4 + $0x350] sm:$0xff] }
 0x56b   :  { %2556 = vmatpush1.bf16.msra.mxu1 %v2359_v48  ;;  %2715 = vmatpush1.bf16.msra.mxu0 %v2361_v55  ;;  %v2202_v48 = vld [vmem:[#allocation4 + $0x388] sm:$0xff]  ;;  %v2201_v55 = vld [vmem:[#allocation4 + $0x380] sm:$0xff] }
 0x56c   :  { %2557 = vmatprep.subr.bf16.mxu1 %v2366_v33  ;;  %2716 = vmatprep.subr.bf16.mxu0 %v2368_v2  ;;  %v2208_v33 = vld [vmem:[#allocation4 + $0x3b8] sm:$0xff]  ;;  %v2207_v2 = vld [vmem:[#allocation4 + $0x3b0] sm:$0xff] }
 0x56f   :  { %2558 = vmatpush1.bf16.msra.mxu1 %v2365_v13  ;;  %2717 = vmatpush1.bf16.msra.mxu0 %v2367_v5  ;;  %v2214_v13 = vld [vmem:[#allocation4 + $0x3e8] sm:$0xff]  ;;  %v2220_v5 = vld [vmem:[#allocation4 + $0x418] sm:$0xff] }
 0x570   :  { %2559 = vmatprep.subr.bf16.mxu1 %v2372_v18  ;;  %2718 = vmatprep.subr.bf16.mxu0 %v2374_v10  ;;  %v2226_v18 = vld [vmem:[#allocation4 + $0x448] sm:$0xff]  ;;  %v2225_v10 = vld [vmem:[#allocation4 + $0x440] sm:$0xff] }
 0x573   :  { %2560 = vmatpush1.bf16.msra.mxu1 %v2371_v22  ;;  %2719 = vmatpush1.bf16.msra.mxu0 %v2373_v9  ;;  %v2232_v22 = vld [vmem:[#allocation4 + $0x478] sm:$0xff]  ;;  %v2238_v9 = vld [vmem:[#allocation4 + $0x4a8] sm:$0xff] }
 0x574   :  { %2741 = vmatprep.subr.bf16.mxu1 %v2094_v26  ;;  %v2244_v26 = vld [vmem:[#allocation4 + $0x4d8] sm:$0xff] }
 0x576   :  { %2562 = vmatmul.mubr.bf16.vlgmr.msra.gmra.mrb[16].mxu1 %v6002_v53  ;;  %2721 = vmatmul.mubr.bf16.vlgmr.msra.gmra.mrb[24].mxu0 %v6002_v53 }
 0x577   :  { %2742 = vmatpush1.bf16.msra.mxu1 %v2093_v32  ;;  %2571 = vmatprep.mubr.bf16.mxu1 %v6006_v11  ;;  %v2243_v32 = vld [vmem:[#allocation4 + $0x4d0] sm:$0xff] }
 0x578   :  { %2743 = vmatprep.subr.bf16.mxu1 %v2100_v41  ;;  %2730 = vmatprep.mubr.bf16.mxu0 %v6006_v11  ;;  %v2250_v41 = vld [vmem:[#allocation4 + $0x508] sm:$0xff] }
 0x57b   :  { %2744 = vmatpush1.bf16.msra.mxu1 %v2099_v19  ;;  %v2249_v19 = vld [vmem:[#allocation4 + $0x500] sm:$0xff] }
 0x57c   :  { %2745 = vmatprep.subr.bf16.mxu1 %v2106_v15  ;;  %v2256_v15 = vld [vmem:[#allocation4 + $0x538] sm:$0xff] }
 0x57e   :  { %2572 = vmatmul.mubr.bf16.gmra.mrb[20].mxu1 %v6014_v4  ;;  %2731 = vmatmul.mubr.bf16.gmra.mrb[28].mxu0 %v6014_v4 }
 0x57f   :  { %2746 = vmatpush1.bf16.msra.mxu1 %v2105_v50  ;;  %2773 = vmatprep.mubr.bf16.mxu1 %v5948_v24  ;;  %v2141_v24 = vld [vmem:[#allocation4 + $0x1a0] sm:$0xff]  ;;  %v2255_v50 = vld [vmem:[#allocation4 + $0x530] sm:$0xff] }
 0x580   :  { %2747 = vmatprep.subr.bf16.mxu1 %v2112_v20  ;;  %v2262_v20 = vld [vmem:[#allocation4 + $0x568] sm:$0xff] }
 0x583   :  { %2748 = vmatpush1.bf16.msra.mxu1 %v2111_v35  ;;  %v2261_v35 = vld [vmem:[#allocation4 + $0x560] sm:$0xff] }
 0x584   :  { %2749 = vmatprep.subr.bf16.mxu1 %v2118_v25  ;;  %v2268_v25 = vld [vmem:[#allocation4 + $0x598] sm:$0xff] }
 0x587   :  { %2750 = vmatpush1.bf16.msra.mxu1 %v2117_v31  ;;  %v2267_v31 = vld [vmem:[#allocation4 + $0x590] sm:$0xff] }
 0x588   :  { %2751 = vmatprep.subr.bf16.mxu1 %v2124_v8  ;;  %v2274_v8 = vld [vmem:[#allocation4 + $0x5c8] sm:$0xff] }
 0x58b   :  { %2752 = vmatpush1.bf16.msra.mxu1 %v2123_v61  ;;  %v2273_v61 = vld [vmem:[#allocation4 + $0x5c0] sm:$0xff] }
 0x58c   :  { %2753 = vmatprep.subr.bf16.mxu1 %v2130_v42  ;;  %v2280_v42 = vld [vmem:[#allocation4 + $0x5f8] sm:$0xff] }
 0x58f   :  { %2754 = vmatpush1.bf16.msra.mxu1 %v2129_v37  ;;  %v2279_v37 = vld [vmem:[#allocation4 + $0x5f0] sm:$0xff] }
 0x590   :  { %2755 = vmatprep.subr.bf16.mxu1 %v2136_v51  ;;  %v2286_v51 = vld [vmem:[#allocation4 + $0x628] sm:$0xff] }
 0x593   :  { %2756 = vmatpush1.bf16.msra.mxu1 %v2135_v57  ;;  %v2285_v57 = vld [vmem:[#allocation4 + $0x620] sm:$0xff] }
 0x594   :  { %2757 = vmatprep.subr.bf16.mxu1 %v2142_v46  ;;  %v2292_v46 = vld [vmem:[#allocation4 + $0x658] sm:$0xff] }
 0x597   :  { %2758 = vmatpush1.bf16.msra.mxu1 %v2141_v24  ;;  %v2291_v24 = vld [vmem:[#allocation4 + $0x650] sm:$0xff] }
 0x598   :  { %2759 = vmatprep.subr.bf16.mxu1 %v2148_v16  ;;  %v2298_v16 = vld [vmem:[#allocation4 + $0x688] sm:$0xff] }
 0x59b   :  { %2760 = vmatpush1.bf16.msra.mxu1 %v2147_v17  ;;  %v2297_v17 = vld [vmem:[#allocation4 + $0x680] sm:$0xff] }
 0x59c   :  { %2761 = vmatprep.subr.bf16.mxu1 %v2154_v14  ;;  %v2304_v14 = vld [vmem:[#allocation4 + $0x6b8] sm:$0xff] }
 0x59f   :  { %2762 = vmatpush1.bf16.msra.mxu1 %v2153_v23  ;;  %v2303_v23 = vld [vmem:[#allocation4 + $0x6b0] sm:$0xff] }
 0x5a0   :  { %2763 = vmatprep.subr.bf16.mxu1 %v2160_v49  ;;  %v2310_v49 = vld [vmem:[#allocation4 + $0x6e8] sm:$0xff] }
 0x5a3   :  { %2764 = vmatpush1.bf16.msra.mxu1 %v2159_v7  ;;  %v2316_v7 = vld [vmem:[#allocation4 + $0x718] sm:$0xff] }
 0x5a4   :  { %2765 = vmatprep.subr.bf16.mxu1 %v2166_v56  ;;  %v2322_v56 = vld [vmem:[#allocation4 + $0x748] sm:$0xff] }
 0x5a7   :  { %2766 = vmatpush1.bf16.msra.mxu1 %v2165_v29  ;;  %v2321_v29 = vld [vmem:[#allocation4 + $0x740] sm:$0xff] }
 0x5a8   :  { %2767 = vmatprep.subr.bf16.mxu1 %v2172_v58  ;;  %v2328_v58 = vld [vmem:[#allocation4 + $0x778] sm:$0xff] }
 0x5ab   :  { %2768 = vmatpush1.bf16.msra.mxu1 %v2171_v43  ;;  %v2334_v43 = vld [vmem:[#allocation4 + $0x7a8] sm:$0xff] }
 0x5ac   :  { %2769 = vmatprep.subr.bf16.mxu1 %v2178_v1  ;;  %v2340_v1 = vld [vmem:[#allocation4 + $0x7d8] sm:$0xff] }
 0x5af   :  { %2770 = vmatpush1.bf16.msra.mxu1 %v2177_v63  ;;  %v2339_v63 = vld [vmem:[#allocation4 + $0x7d0] sm:$0xff] }
 0x5b0   :  { %2771 = vmatprep.subr.bf16.mxu1 %v2184_v0  ;;  %v2346_v0 = vld [vmem:[#allocation4 + $0x808] sm:$0xff] }
 0x5b3   :  { %2772 = vmatpush1.bf16.msra.mxu1 %v2183_v62  ;;  %v2345_v62 = vld [vmem:[#allocation4 + $0x800] sm:$0xff] }
 0x5b4   :  { %2794 = vmatprep.subr.bf16.mxu1 %v2190_v34  ;;  %v2352_v34 = vld [vmem:[#allocation4 + $0x838] sm:$0xff] }
 0x5b6   :  { %2774 = vmatmul.mubr.bf16.vlgmr.msra.gmra.mrb[24].mxu1 %v5954_v60  ;;  %v2213_v60 = vld [vmem:[#allocation4 + $0x3e0] sm:$0xff] }
 0x5b7   :  { %2795 = vmatpush1.bf16.msra.mxu1 %v2189_v40  ;;  %2783 = vmatprep.mubr.bf16.mxu1 %v5958_v39  ;;  %v2219_v39 = vld [vmem:[#allocation4 + $0x410] sm:$0xff] }
 0x5b8   :  { %2796 = vmatprep.subr.bf16.mxu1 %v2196_v36  ;;  %v2351_v40 = vld [vmem:[#allocation4 + $0x830] sm:$0xff]  ;;  %v2358_v36 = vld [vmem:[#allocation4 + $0x868] sm:$0xff] }
 0x5bb   :  { %2797 = vmatpush1.bf16.msra.mxu1 %v2195_v44  ;;  %v2357_v44 = vld [vmem:[#allocation4 + $0x860] sm:$0xff] }
 0x5bc   :  { %2798 = vmatprep.subr.bf16.mxu1 %v2202_v48  ;;  %v2364_v48 = vld [vmem:[#allocation4 + $0x898] sm:$0xff] }
 0x5be   :  { %2784 = vmatmul.mubr.bf16.gmra.mrb[28].mxu1 %v5966_v21  ;;  %v2231_v21 = vld [vmem:[#allocation4 + $0x470] sm:$0xff] }
 0x5bf   :  { %2799 = vmatpush1.bf16.msra.mxu1 %v2201_v55  ;;  %2826 = vmatprep.mubr.bf16.mxu1 %v5970_v59  ;;  %v2237_v59 = vld [vmem:[#allocation4 + $0x4a0] sm:$0xff]  ;;  %v2363_v55 = vld [vmem:[#allocation4 + $0x890] sm:$0xff] }
 0x5c0   :  { %2800 = vmatprep.subr.bf16.mxu1 %v2208_v33  ;;  %v2370_v33 = vld [vmem:[#allocation4 + $0x8c8] sm:$0xff] }
 0x5c3   :  { %2801 = vmatpush1.bf16.msra.mxu1 %v2207_v2  ;;  %v2369_v2 = vld [vmem:[#allocation4 + $0x8c0] sm:$0xff] }
 0x5c4   :  { %2802 = vmatprep.subr.bf16.mxu1 %v2214_v13  ;;  %v2376_v13 = vld [vmem:[#allocation4 + $0x8f8] sm:$0xff] }
 0x5c7   :  { %2803 = vmatpush1.bf16.msra.mxu1 %v2213_v60  ;;  %v2375_v60 = vld [vmem:[#allocation4 + $0x8f0] sm:$0xff] }
 0x5c8   :  { %2804 = vmatprep.subr.bf16.mxu1 %v2220_v5  ;;  %v6030_v5 = vld [vmem:[#allocation15 + $0xa] sm:$0x3f] }
 0x5cb   :  { %2805 = vmatpush1.bf16.msra.mxu1 %v2219_v39  ;;  %v2396_v39 = vrot.slane %v6030_v5, %v5438_v38 }
 0x5cc   :  { %2806 = vmatprep.subr.bf16.mxu1 %v2226_v18  ;;  %v2404_v18 = vrot.slane %v6030_v5, %v5441_v52 }
 0x5cf   :  { %2807 = vmatpush1.bf16.msra.mxu1 %v2225_v10  ;;  %v2400_v10 = vrot.slane %v6030_v5, %v5444_v54 }
 0x5d0   :  { %2808 = vmatprep.subr.bf16.mxu1 %v2232_v22  ;;  %v6040_v22 = vrot.slane %v6030_v5, %v5447_v30 }
 0x5d3   :  { %2809 = vmatpush1.bf16.msra.mxu1 %v2231_v21 }
 0x5d4   :  { %2810 = vmatprep.subr.bf16.mxu1 %v2238_v9 }
 0x5d7   :  { %2811 = vmatpush1.bf16.msra.mxu1 %v2237_v59 }
 0x5d8   :  { %2812 = vmatprep.subr.bf16.mxu1 %v2244_v26 }
 0x5db   :  { %2813 = vmatpush1.bf16.msra.mxu1 %v2243_v32 }
 0x5dc   :  { %2814 = vmatprep.subr.bf16.mxu1 %v2250_v41 }
 0x5df   :  { %2815 = vmatpush1.bf16.msra.mxu1 %v2249_v19 }
 0x5e0   :  { %2816 = vmatprep.subr.bf16.mxu1 %v2256_v15 }
 0x5e3   :  { %2817 = vmatpush1.bf16.msra.mxu1 %v2255_v50 }
 0x5e4   :  { %2818 = vmatprep.subr.bf16.mxu1 %v2262_v20 }
 0x5e7   :  { %2819 = vmatpush1.bf16.msra.mxu1 %v2261_v35 }
 0x5e8   :  { %2820 = vmatprep.subr.bf16.mxu1 %v2268_v25 }
 0x5eb   :  { %2821 = vmatpush1.bf16.msra.mxu1 %v2267_v31 }
 0x5ec   :  { %2822 = vmatprep.subr.bf16.mxu1 %v2274_v8 }
 0x5ef   :  { %2823 = vmatpush1.bf16.msra.mxu1 %v2273_v61 }
 0x5f0   :  { %2824 = vmatprep.subr.bf16.mxu1 %v2280_v42 }
 0x5f3   :  { %2825 = vmatpush1.bf16.msra.mxu1 %v2279_v37 }
 0x5f4   :  { %2847 = vmatprep.subr.bf16.mxu1 %v2286_v51 }
 0x5f6   :  { %2827 = vmatmul.mubr.bf16.vlgmr.msra.gmra.mrb[24].mxu1 %v5978_v28  ;;  %v2309_v28 = vld [vmem:[#allocation4 + $0x6e0] sm:$0xff] }
 0x5f7   :  { %2848 = vmatpush1.bf16.msra.mxu1 %v2285_v57  ;;  %2836 = vmatprep.mubr.bf16.mxu1 %v5982_v27  ;;  %v2315_v27 = vld [vmem:[#allocation4 + $0x710] sm:$0xff] }
 0x5f8   :  { %2849 = vmatprep.subr.bf16.mxu1 %v2292_v46 }
 0x5fb   :  { %2850 = vmatpush1.bf16.msra.mxu1 %v2291_v24 }
 0x5fc   :  { %2851 = vmatprep.subr.bf16.mxu1 %v2298_v16 }
 0x5fe   :  { %2837 = vmatmul.mubr.bf16.gmra.mrb[28].mxu1 %v5990_v45  ;;  %v2327_v45 = vld [vmem:[#allocation4 + $0x770] sm:$0xff] }
 0x5ff   :  { %2852 = vmatpush1.bf16.msra.mxu1 %v2297_v17  ;;  %2879 = vmatprep.mubr.bf16.mxu1 %v5994_v47  ;;  %v2333_v47 = vld [vmem:[#allocation4 + $0x7a0] sm:$0xff] }
 0x600   :  { %2853 = vmatprep.subr.bf16.mxu1 %v2304_v14 }
 0x603   :  { %2854 = vmatpush1.bf16.msra.mxu1 %v2303_v23 }
 0x604   :  { %2855 = vmatprep.subr.bf16.mxu1 %v2310_v49 }
 0x607   :  { %2856 = vmatpush1.bf16.msra.mxu1 %v2309_v28 }
 0x608   :  { %2857 = vmatprep.subr.bf16.mxu1 %v2316_v7 }
 0x60b   :  { %2858 = vmatpush1.bf16.msra.mxu1 %v2315_v27 }
 0x60c   :  { %2859 = vmatprep.subr.bf16.mxu1 %v2322_v56 }
 0x60f   :  { %2860 = vmatpush1.bf16.msra.mxu1 %v2321_v29 }
 0x610   :  { %2861 = vmatprep.subr.bf16.mxu1 %v2328_v58 }
 0x613   :  { %2862 = vmatpush1.bf16.msra.mxu1 %v2327_v45 }
 0x614   :  { %2863 = vmatprep.subr.bf16.mxu1 %v2334_v43 }
 0x617   :  { %2864 = vmatpush1.bf16.msra.mxu1 %v2333_v47 }
 0x618   :  { %2865 = vmatprep.subr.bf16.mxu1 %v2340_v1 }
 0x61b   :  { %2866 = vmatpush1.bf16.msra.mxu1 %v2339_v63 }
 0x61c   :  { %2867 = vmatprep.subr.bf16.mxu1 %v2346_v0 }
 0x61f   :  { %2868 = vmatpush1.bf16.msra.mxu1 %v2345_v62 }
 0x620   :  { %2869 = vmatprep.subr.bf16.mxu1 %v2352_v34 }
 0x623   :  { %2870 = vmatpush1.bf16.msra.mxu1 %v2351_v40 }
 0x624   :  { %2871 = vmatprep.subr.bf16.mxu1 %v2358_v36 }
 0x627   :  { %2872 = vmatpush1.bf16.msra.mxu1 %v2357_v44 }
 0x628   :  { %2873 = vmatprep.subr.bf16.mxu1 %v2364_v48 }
 0x62b   :  { %2874 = vmatpush1.bf16.msra.mxu1 %v2363_v55 }
 0x62c   :  { %2875 = vmatprep.subr.bf16.mxu1 %v2370_v33 }
 0x62f   :  { %2876 = vmatpush1.bf16.msra.mxu1 %v2369_v2 }
 0x630   :  { %2877 = vmatprep.subr.bf16.mxu1 %v2376_v13 }
 0x633   :  { %2878 = vmatpush1.bf16.msra.mxu1 %v2375_v60 }
 0x636   :  { %2880 = vmatmul.mubr.bf16.vlgmr.msra.gmra.mrb[24].mxu1 %v6002_v53 }
 0x637   :  { %2889 = vmatprep.mubr.bf16.mxu1 %v6006_v11 }
 0x63e   :  { %2890 = vmatmul.mubr.bf16.gmra.mrb[28].mxu1 %v6014_v4 }
 0x649   :  { %v2563_v53 = vpop.f32.mrb[16].mxu1  ;;  %v2722_v21 = vpop.f32.mrb[24].mxu0 }
 0x64a   :  { %v4663_v11 = vadd.f32 %v2563_v53, %v2396_v39  ;;  %v2565_v9 = vpop.f32.mrb[17].mxu1  ;;  %v4671_v4 = vadd.f32 %v2722_v21, %v2404_v18  ;;  %v2724_v59 = vpop.f32.mrb[25].mxu0 }
 0x64b   :  { %v4664_v26 = vadd.f32 %v2565_v9, %v2400_v10  ;;  %v2567_v32 = vpop.f32.mrb[18].mxu1  ;;  %v4672_v41 = vadd.f32 %v2724_v59, %v6040_v22  ;;  %v2726_v19 = vpop.f32.mrb[26].mxu0 }
 0x64c   :  { %v2924_v15 = vmul.f32 0.70710677, %v4663_v11  ;;  %v4665_v50 = vadd.f32 %v2567_v32, %v2396_v39  ;;  %v2569_v20 = vpop.f32.mrb[19].mxu1  ;;  %v2728_v35 = vpop.f32.mrb[27].mxu0  ;;  %v2926_v61 = vmul.f32 0.70710677, %v4671_v4  ;;  %v4673_v51 = vadd.f32 %v2726_v19, %v2404_v18 }
 0x64d   :  { %v2925_v25 = vmul.f32 0.70710677, %v4664_v26  ;;  %v4666_v31 = vadd.f32 %v2569_v20, %v2400_v10  ;;  %v2927_v37 = vmul.f32 0.70710677, %v4672_v41  ;;  %v4674_v57 = vadd.f32 %v2728_v35, %v6040_v22 }
 0x64e   :  { %4999 = verf.f32 %v2924_v15  ;;  %v2930_v8 = vmul.f32 0.70710677, %v4665_v50  ;;  %v2932_v16 = vmul.f32 0.70710677, %v4673_v51  ;;  %v2900_v1 = vmul.f32 0.5, %v4663_v11 }
 0x64f   :  { %5001 = verf.f32 %v2925_v25  ;;  %v2931_v42 = vmul.f32 0.70710677, %v4666_v31  ;;  %v2933_v23 = vmul.f32 0.70710677, %v4674_v57  ;;  %v2902_v63 = vmul.f32 0.5, %v4671_v4 }
 0x650   :  { %5003 = verf.f32 %v2930_v8  ;;  %v2901_v34 = vmul.f32 0.5, %v4664_v26  ;;  %v2906_v48 = vmul.f32 0.5, %v4665_v50  ;;  %v2907_v60 = vmul.f32 0.5, %v4666_v31 }
 0x651   :  { %5005 = verf.f32 %v2931_v42  ;;  %v2573_v46 = vpop.f32.mrb[20].mxu1  ;;  %v2732_v24 = vpop.f32.mrb[28].mxu0  ;;  %v2908_v11 = vmul.f32 0.5, %v4673_v51  ;;  %v2909_v26 = vmul.f32 0.5, %v4674_v57 }
 0x652   :  { %5007 = verf.f32 %v2926_v61  ;;  %v2575_v17 = vpop.f32.mrb[21].mxu1  ;;  %v2734_v14 = vpop.f32.mrb[29].mxu0  ;;  %v4667_v49 = vadd.f32 %v2573_v46, %v2396_v39  ;;  %v4675_v28 = vadd.f32 %v2732_v24, %v2404_v18 }
 0x653   :  { %5009 = verf.f32 %v2927_v37  ;;  %v2577_v7 = vpop.f32.mrb[22].mxu1  ;;  %v2736_v27 = vpop.f32.mrb[30].mxu0  ;;  %v4668_v56 = vadd.f32 %v2575_v17, %v2400_v10  ;;  %v4676_v29 = vadd.f32 %v2734_v14, %v6040_v22 }
 0x654   :  { %5011 = verf.f32 %v2932_v16  ;;  %v4669_v58 = vadd.f32 %v2577_v7, %v2396_v39  ;;  %v2579_v45 = vpop.f32.mrb[23].mxu1  ;;  %v2738_v43 = vpop.f32.mrb[31].mxu0  ;;  %v2936_v47 = vmul.f32 0.70710677, %v4667_v49  ;;  %v2938_v0 = vmul.f32 0.70710677, %v4675_v28 }
 0x655   :  { %5013 = verf.f32 %v2933_v23  ;;  %v2937_v62 = vmul.f32 0.70710677, %v4668_v56  ;;  %v2939_v40 = vmul.f32 0.70710677, %v4676_v29  ;;  %v4677_v55 = vadd.f32 %v2736_v27, %v2404_v18 }
 0x656   :  { %5015 = verf.f32 %v2936_v47  ;;  %v2942_v36 = vmul.f32 0.70710677, %v4669_v58  ;;  %v4670_v33 = vadd.f32 %v2579_v45, %v2400_v10  ;;  %v2903_v39 = vmul.f32 0.5, %v4672_v41 }
 0x657   :  { %5017 = verf.f32 %v2938_v0  ;;  %v2944_v9 = vmul.f32 0.70710677, %v4677_v55  ;;  %v2912_v32 = vmul.f32 0.5, %v4667_v49  ;;  %v2914_v35 = vmul.f32 0.5, %v4675_v28 }
 0x658   :  { %v5000_v44 = vpop.eup %4999  ;;  %5019 = verf.f32 %v2937_v62  ;;  %v2943_v10 = vmul.f32 0.70710677, %v4670_v33  ;;  %v6050_v25 = vadd.f32 %v2738_v43, %v6040_v22  ;;  %v2913_v61 = vmul.f32 0.5, %v4668_v56 }
 0x659   :  { %v5002_v2 = vpop.eup %5001  ;;  %v2972_v13 = vadd.f32 1.0, %v5000_v44  ;;  %5021 = verf.f32 %v2939_v40  ;;  %v2915_v42 = vmul.f32 0.5, %v4676_v29  ;;  %v2918_v24 = vmul.f32 0.5, %v4669_v58 }
 0x65a   :  { %v5004_v53 = vpop.eup %5003  ;;  %v2973_v21 = vadd.f32 1.0, %v5002_v2  ;;  %5023 = verf.f32 %v2942_v36  ;;  %v2920_v14 = vmul.f32 0.5, %v4677_v55  ;;  %v2919_v22 = vmul.f32 0.5, %v4670_v33 }
 0x65b   :  { %v5006_v4 = vpop.eup %5005  ;;  %v2978_v59 = vadd.f32 1.0, %v5004_v53  ;;  %v6045_v15 = vmul.f32 %v2972_v13, %v2900_v1  ;;  %5025 = verf.f32 %v2944_v9  ;;  %v2945_v27 = vmul.f32 0.70710677, %v6050_v25 }
 0x65c   :  { %v5008_v19 = vpop.eup %5007  ;;  %v2979_v18 = vadd.f32 1.0, %v5006_v4  ;;  %v6047_v20 = vmul.f32 %v2973_v21, %v2901_v34  ;;  %5027 = verf.f32 %v2943_v10 }
 0x65d   :  { %v5010_v50 = vpop.eup %5009  ;;  %v2974_v41 = vadd.f32 1.0, %v5008_v19  ;;  %v6052_v8 = vmul.f32 %v2978_v59, %v2906_v48  ;;  %v3080_v16 = vmul.f32 %v6045_v15, %v6045_v15  ;;  %5029 = verf.f32 %v2945_v27 }
 0x65e   :  { %v5012_v31 = vpop.eup %5011  ;;  %v6054_v51 = vmul.f32 %v2979_v18, %v2907_v60  ;;  %v2975_v17 = vadd.f32 1.0, %v5010_v50  ;;  %v3081_v49 = vmul.f32 %v6047_v20, %v6047_v20  ;;  %v2921_v27 = vmul.f32 0.5, %v6050_v25 }
 0x65f   :  { %v5014_v37 = vpop.eup %5013  ;;  %v6056_v57 = vmul.f32 %v2974_v41, %v2902_v63  ;;  %v2980_v46 = vadd.f32 1.0, %v5012_v31  ;;  %v3020_v29 = vadd.f32 %v6052_v8, %v6045_v15  ;;  %v3086_v58 = vmul.f32 %v6052_v8, %v6052_v8 }
 0x660   :  { %v5016_v23 = vpop.eup %5015  ;;  %v2981_v7 = vadd.f32 1.0, %v5014_v37  ;;  %v3087_v1 = vmul.f32 %v6054_v51, %v6054_v51  ;;  %v6075_v34 = vmul.f32 %v2975_v17, %v2903_v39  ;;  %v3029_v55 = vadd.f32 %v6054_v51, %v6047_v20 }
 0x661   :  { %v6062_v28 = vmul.f32 %v2980_v46, %v2908_v11  ;;  %v5018_v56 = vpop.eup %5017  ;;  %v3082_v45 = vmul.f32 %v6056_v57, %v6056_v57  ;;  %v2984_v43 = vadd.f32 1.0, %v5016_v23  ;;  %v3104_v53 = vadd.f32 %v3086_v58, %v3080_v16 }
 0x662   :  { %v5020_v47 = vpop.eup %5019  ;;  %v2986_v0 = vadd.f32 1.0, %v5018_v56  ;;  %v6083_v33 = vmul.f32 %v2981_v7, %v2909_v26  ;;  %v3113_v9 = vadd.f32 %v3087_v1, %v3081_v49  ;;  %v3083_v19 = vmul.f32 %v6075_v34, %v6075_v34 }
 0x663   :  { %v3088_v63 = vmul.f32 %v6062_v28, %v6062_v28  ;;  %v5022_v62 = vpop.eup %5021  ;;  %v3038_v40 = vadd.f32 %v6062_v28, %v6056_v57  ;;  %v6079_v36 = vmul.f32 %v2984_v43, %v2912_v32  ;;  %v2985_v44 = vadd.f32 1.0, %v5020_v47 }
 0x664   :  { %v5024_v48 = vpop.eup %5023  ;;  %v6085_v2 = vmul.f32 %v2986_v0, %v2914_v35  ;;  %v2987_v13 = vadd.f32 1.0, %v5022_v62  ;;  %v3089_v41 = vmul.f32 %v6083_v33, %v6083_v33  ;;  %v3047_v23 = vadd.f32 %v6083_v33, %v6075_v34 }
 0x665   :  { %v5026_v60 = vpop.eup %5025  ;;  %v3122_v21 = vadd.f32 %v3088_v63, %v3082_v45  ;;  %v3092_v39 = vmul.f32 %v6079_v36, %v6079_v36  ;;  %v6089_v11 = vmul.f32 %v2985_v44, %v2913_v61  ;;  %v3021_v4 = vadd.f32 %v3020_v29, %v6079_v36 }
 0x666   :  { %v3094_v59 = vmul.f32 %v6085_v2, %v6085_v2  ;;  %v2990_v32 = vadd.f32 1.0, %v5024_v48  ;;  %v5028_v26 = vpop.eup %5027  ;;  %v3039_v18 = vadd.f32 %v3038_v40, %v6085_v2  ;;  %v2992_v50 = vadd.f32 1.0, %v5026_v60 }
 0x667   :  { %v3093_v10 = vmul.f32 %v6089_v11, %v6089_v11  ;;  %v3105_v35 = vadd.f32 %v3104_v53, %v3092_v39  ;;  %v6101_v31 = vmul.f32 %v2987_v13, %v2915_v42  ;;  %v3030_v46 = vadd.f32 %v3029_v55, %v6089_v11 }
 0x668   :  { %v6103_v61 = vmul.f32 %v2990_v32, %v2918_v24  ;;  %v3123_v37 = vadd.f32 %v3122_v21, %v3094_v59  ;;  %v6106_v16 = vmul.f32 %v2992_v50, %v2920_v14  ;;  %v2991_v17 = vadd.f32 1.0, %v5028_v26  ;;  %v5030_v14 = vpop.eup %5029 }
 0x669   :  { %v3114_v42 = vadd.f32 %v3113_v9, %v3093_v10  ;;  %v3131_v58 = vadd.f32 %v3089_v41, %v3083_v19  ;;  %v3095_v45 = vmul.f32 %v6101_v31, %v6101_v31  ;;  %v3048_v62 = vadd.f32 %v3047_v23, %v6101_v31 }
 0x66a   :  { %v3022_v49 = vadd.f32 %v3021_v4, %v6103_v61  ;;  %v3098_v7 = vmul.f32 %v6103_v61, %v6103_v61  ;;  %v3040_v24 = vadd.f32 %v3039_v18, %v6106_v16  ;;  %v3100_v56 = vmul.f32 %v6106_v16, %v6106_v16 }
 0x66b   :  { %v6117_v29 = vmul.f32 %v2991_v17, %v2919_v22  ;;  %v2993_v22 = vadd.f32 1.0, %v5030_v14  ;;  %v3132_v53 = vadd.f32 %v3131_v58, %v3095_v45 }
 0x66c   :  { %v3023_v43 = vrot.slane %v3022_v49, 4  ;;  %v3106_v47 = vadd.f32 %v3105_v35, %v3098_v7  ;;  %v3041_v1 = vrot.slane %v3040_v24, 4  ;;  %v3124_v63 = vadd.f32 %v3123_v37, %v3100_v56 }
 0x66d   :  { %v3031_v0 = vadd.f32 %v3030_v46, %v6117_v29  ;;  %v3099_v25 = vmul.f32 %v6117_v29, %v6117_v29  ;;  %v6125_v9 = vmul.f32 %v2993_v22, %v2921_v27 }
 0x66e   :  { %v3024_v40 = vadd.f32 %v3023_v43, %v3022_v49  ;;  %v3107_v44 = vrot.slane %v3106_v47, 4  ;;  %v3042_v48 = vadd.f32 %v3041_v1, %v3040_v24  ;;  %v3125_v55 = vrot.slane %v3124_v63, 4 }
 0x66f   :  { %v3032_v13 = vrot.slane %v3031_v0, 4  ;;  %v3115_v60 = vadd.f32 %v3114_v42, %v3099_v25  ;;  %v3049_v10 = vadd.f32 %v3048_v62, %v6125_v9  ;;  %v3101_v50 = vmul.f32 %v6125_v9, %v6125_v9 }
 0x670   :  { %v3025_v21 = vrot.slane %v3024_v40, 2  ;;  %v3108_v39 = vadd.f32 %v3107_v44, %v3106_v47  ;;  %v3043_v4 = vrot.slane %v3042_v48, 2  ;;  %v3126_v59 = vadd.f32 %v3125_v55, %v3124_v63 }
 0x671   :  { %v3033_v32 = vadd.f32 %v3032_v13, %v3031_v0  ;;  %v3116_v26 = vrot.slane %v3115_v60, 4  ;;  %v3050_v49 = vrot.slane %v3049_v10, 4  ;;  %v3133_v7 = vadd.f32 %v3132_v53, %v3101_v50 }
 0x672   :  { %v3026_v19 = vadd.f32 %v3025_v21, %v3024_v40  ;;  %v3109_v18 = vrot.slane %v3108_v39, 2  ;;  %v3044_v41 = vadd.f32 %v3043_v4, %v3042_v48  ;;  %v3127_v35 = vrot.slane %v3126_v59, 2 }
 0x673   :  { %v3034_v37 = vrot.slane %v3033_v32, 2  ;;  %v3117_v46 = vadd.f32 %v3116_v26, %v3115_v60  ;;  %v3051_v45 = vadd.f32 %v3050_v49, %v3049_v10  ;;  %v3134_v43 = vrot.slane %v3133_v7, 4 }
 0x674   :  { %v3027_v17 = vrot.slane %v3026_v19, 1  ;;  %v3110_v23 = vadd.f32 %v3109_v18, %v3108_v39  ;;  %v3045_v27 = vrot.slane %v3044_v41, 1  ;;  %v3128_v42 = vadd.f32 %v3127_v35, %v3126_v59 }
 0x675   :  { %v3035_v24 = vadd.f32 %v3034_v37, %v3033_v32  ;;  %v3118_v56 = vrot.slane %v3117_v46, 2  ;;  %v3052_v40 = vrot.slane %v3051_v45, 2  ;;  %v3135_v44 = vadd.f32 %v3134_v43, %v3133_v7 }
 0x676   :  { %v3028_v14 = vadd.f32 %v3027_v17, %v3026_v19  ;;  %v3111_v58 = vrot.slane %v3110_v23, 1  ;;  %v3046_v47 = vadd.f32 %v3045_v27, %v3044_v41  ;;  %v3129_v1 = vrot.slane %v3128_v42, 1 }
 0x677   :  { %v3036_v63 = vrot.slane %v3035_v24, 1  ;;  %v3119_v0 = vadd.f32 %v3118_v56, %v3117_v46  ;;  %v3053_v21 = vadd.f32 %v3052_v40, %v3051_v45  ;;  %v3136_v39 = vrot.slane %v3135_v44, 2 }
 0x678   :  { %v6130_v25 = vmul.f32 0.03125, %v3028_v14  ;;  %v3112_v62 = vadd.f32 %v3111_v58, %v3110_v23  ;;  %v6132_v22 = vmul.f32 0.03125, %v3046_v47  ;;  %v3130_v48 = vadd.f32 %v3129_v1, %v3128_v42 }
 0x679   :  { %v3037_v55 = vadd.f32 %v3036_v63, %v3035_v24  ;;  %v3120_v13 = vrot.slane %v3119_v0, 1  ;;  %v3054_v18 = vrot.slane %v3053_v21, 1  ;;  %v3137_v10 = vadd.f32 %v3136_v39, %v3135_v44 }
 0x67a   :  { %v3158_v60 = vmul.f32 0.03125, %v3112_v62  ;;  %v3164_v53 = vmul.f32 %v6130_v25, %v6130_v25  ;;  %v3160_v4 = vmul.f32 0.03125, %v3130_v48  ;;  %v3166_v59 = vmul.f32 %v6132_v22, %v6132_v22 }
 0x67b   :  { %v6138_v32 = vmul.f32 0.03125, %v3037_v55  ;;  %v3121_v26 = vadd.f32 %v3120_v13, %v3119_v0  ;;  %v3055_v46 = vadd.f32 %v3054_v18, %v3053_v21  ;;  %v3138_v17 = vrot.slane %v3137_v10, 1 }
 0x67c   :  { %v3170_v19 = vsub.f32 %v3158_v60, %v3164_v53  ;;  %v3172_v50 = vsub.f32 %v3160_v4, %v3166_v59 }
 0x67d   :  { %v3159_v41 = vmul.f32 0.03125, %v3121_v26  ;;  %v3165_v35 = vmul.f32 %v6138_v32, %v6138_v32  ;;  %v6142_v49 = vmul.f32 0.03125, %v3055_v46  ;;  %v3139_v7 = vadd.f32 %v3138_v17, %v3137_v10 }
 0x67e   :  { %v3176_v37 = vadd.f32 1e-05, %v3170_v19  ;;  %v3178_v42 = vadd.f32 1e-05, %v3172_v50 }
 0x67f   :  { %v3171_v23 = vsub.f32 %v3159_v41, %v3165_v35  ;;  %v3161_v24 = vmul.f32 0.03125, %v3139_v7  ;;  %v3167_v56 = vmul.f32 %v6142_v49, %v6142_v49 }
 0x680   :  { %5031 = vrsqrt.f32 %v3176_v37 }
 0x681   :  { %v3177_v27 = vadd.f32 1e-05, %v3171_v23  ;;  %v3173_v14 = vsub.f32 %v3161_v24, %v3167_v56 }
 0x683   :  { %5033 = vrsqrt.f32 %v3177_v27  ;;  %v3179_v58 = vadd.f32 1e-05, %v3173_v14 }
 0x684   :  { %5035 = vrsqrt.f32 %v3178_v42 }
 0x685   :  { %5037 = vrsqrt.f32 %v3179_v58 }
 0x68a   :  { %v5032_v45 = vpop.eup %5031 }
 0x68d   :  { %v5034_v43 = vpop.eup %5033 }
 0x68e   :  { %v3194_v47 = vcombine.low %v5032_v45, %v5034_v43  ;;  %v5036_v1 = vpop.eup %5035 }
 0x68f   :  { %v5038_v63 = vpop.eup %5037 }
 0x690   :  { %v6147_v0 = vrot.slane %v3194_v47, %v5554_v6  ;;  %v3195_v62 = vcombine.low %v5036_v1, %v5038_v63 }
 0x692   :  { %v6150_v40 = vrot.slane %v3195_v62, %v5554_v6 }
 0x693   :  { %5184 = shalt.err (!%p5181_p1)  }
 0x694   :  { %s5185_s4 = scalar_lea.vmem %s2086_s15, 4096  ;;  %p5190_p3 = scmp.lt.s32.totalorder %s2086_s15, %s2086_s15 }
 0x695   :  { %p5186_p2 = scmp.ne.s32.totalorder %s2086_s15, %s5185_s4  ;;  %p5191_p4 = scmp.lt.s32.totalorder %s5185_s4, %s5185_s4 }
 0x697   :  { %p5192_p5 = por %p5191_p4, %p5190_p3 }
 0x699   :  { %p5193_p6 = pnand %p5192_p5, %p5186_p2 }
 0x69b   :  { %5196 = shalt.err (!%p5193_p6)  }
 0x69c   :  { %2088 = dma.hbm_to_vmem [thread:$0]  %s6506_s6, 4096, %s2086_s15, [#allocation7 + $0x3]  ;;  %v2412_v48 = vrot.slane %v6030_v5, %v5804_v3  ;;  %v2416_v55 = vrot.slane %v6030_v5, %v5807_v12 }
 0x709   :  { %v2881_v13 = vpop.f32.mrb[24].mxu1 }
 0x70a   :  { %v4679_v60 = vadd.f32 %v2881_v13, %v2412_v48  ;;  %v2883_v53 = vpop.f32.mrb[25].mxu1 }
 0x70b   :  { %v4680_v21 = vadd.f32 %v2883_v53, %v2416_v55  ;;  %v2885_v39 = vpop.f32.mrb[26].mxu1 }
 0x70c   :  { %v2928_v4 = vmul.f32 0.70710677, %v4679_v60  ;;  %v4681_v59 = vadd.f32 %v2885_v39, %v2412_v48  ;;  %v2887_v26 = vpop.f32.mrb[27].mxu1  ;;  %v2904_v45 = vmul.f32 0.5, %v4679_v60 }
 0x70d   :  { %v2929_v19 = vmul.f32 0.70710677, %v4680_v21  ;;  %v4682_v18 = vadd.f32 %v2887_v26, %v2416_v55  ;;  %v2905_v1 = vmul.f32 0.5, %v4680_v21 }
 0x70e   :  { %5039 = verf.f32 %v2928_v4  ;;  %v2934_v10 = vmul.f32 0.70710677, %v4681_v59 }
 0x70f   :  { %5041 = verf.f32 %v2929_v19  ;;  %v2935_v50 = vmul.f32 0.70710677, %v4682_v18 }
 0x710   :  { %5043 = verf.f32 %v2934_v10 }
 0x711   :  { %5045 = verf.f32 %v2935_v50  ;;  %v2891_v41 = vpop.f32.mrb[28].mxu1 }
 0x712   :  { %v4683_v35 = vadd.f32 %v2891_v41, %v2412_v48  ;;  %v2893_v37 = vpop.f32.mrb[29].mxu1 }
 0x713   :  { %v4684_v5 = vadd.f32 %v2893_v37, %v2416_v55  ;;  %v2895_v46 = vpop.f32.mrb[30].mxu1 }
 0x714   :  { %v2940_v17 = vmul.f32 0.70710677, %v4683_v35  ;;  %v4685_v23 = vadd.f32 %v2895_v46, %v2412_v48  ;;  %v2897_v7 = vpop.f32.mrb[31].mxu1  ;;  %v2910_v48 = vmul.f32 0.5, %v4681_v59 }
 0x715   :  { %v2941_v27 = vmul.f32 0.70710677, %v4684_v5  ;;  %v4686_v42 = vadd.f32 %v2897_v7, %v2416_v55  ;;  %v2911_v55 = vmul.f32 0.5, %v4682_v18 }
 0x716   :  { %5047 = verf.f32 %v2940_v17  ;;  %v2946_v24 = vmul.f32 0.70710677, %v4685_v23  ;;  %v2916_v17 = vmul.f32 0.5, %v4683_v35 }
 0x717   :  { %5049 = verf.f32 %v2941_v27  ;;  %v2947_v56 = vmul.f32 0.70710677, %v4686_v42 }
 0x718   :  { %v5040_v14 = vpop.eup %5039  ;;  %5051 = verf.f32 %v2946_v24 }
 0x719   :  { %v5042_v58 = vpop.eup %5041  ;;  %v2976_v43 = vadd.f32 1.0, %v5040_v14  ;;  %5053 = verf.f32 %v2947_v56  ;;  %v2917_v56 = vmul.f32 0.5, %v4684_v5 }
 0x71a   :  { %v5044_v47 = vpop.eup %5043  ;;  %v2977_v63 = vadd.f32 1.0, %v5042_v58 }
 0x71b   :  { %v5046_v62 = vpop.eup %5045  ;;  %v6170_v13 = vmul.f32 %v2976_v43, %v2904_v45  ;;  %v2982_v53 = vadd.f32 1.0, %v5044_v47  ;;  %v2922_v43 = vmul.f32 0.5, %v4685_v23 }
 0x71c   :  { %v6172_v39 = vmul.f32 %v2977_v63, %v2905_v1  ;;  %v2983_v4 = vadd.f32 1.0, %v5046_v62  ;;  %v2923_v63 = vmul.f32 0.5, %v4686_v42 }
 0x71d   :  { %v6174_v26 = vmul.f32 %v2982_v53, %v2910_v48  ;;  %v3084_v60 = vmul.f32 %v6170_v13, %v6170_v13 }
 0x71e   :  { %v6176_v19 = vmul.f32 %v2983_v4, %v2911_v55  ;;  %v3085_v59 = vmul.f32 %v6172_v39, %v6172_v39 }
 0x71f   :  { %v3056_v21 = vadd.f32 %v6174_v26, %v6170_v13  ;;  %v3090_v10 = vmul.f32 %v6174_v26, %v6174_v26 }
 0x720   :  { %v5048_v50 = vpop.eup %5047  ;;  %v3065_v18 = vadd.f32 %v6176_v19, %v6172_v39  ;;  %v3091_v41 = vmul.f32 %v6176_v19, %v6176_v19 }
 0x721   :  { %v5050_v37 = vpop.eup %5049  ;;  %v3140_v46 = vadd.f32 %v3090_v10, %v3084_v60  ;;  %v2988_v7 = vadd.f32 1.0, %v5048_v50 }
 0x722   :  { %v5052_v27 = vpop.eup %5051  ;;  %v3149_v24 = vadd.f32 %v3091_v41, %v3085_v59  ;;  %v2989_v14 = vadd.f32 1.0, %v5050_v37 }
 0x723   :  { %v5054_v58 = vpop.eup %5053  ;;  %v6190_v45 = vmul.f32 %v2988_v7, %v2916_v17  ;;  %v2994_v47 = vadd.f32 1.0, %v5052_v27 }
 0x724   :  { %v6192_v1 = vmul.f32 %v2989_v14, %v2917_v56  ;;  %v2995_v62 = vadd.f32 1.0, %v5054_v58 }
 0x725   :  { %v3057_v48 = vadd.f32 %v3056_v21, %v6190_v45  ;;  %v3096_v53 = vmul.f32 %v6190_v45, %v6190_v45  ;;  %v6197_v35 = vmul.f32 %v2994_v47, %v2922_v43 }
 0x726   :  { %v3066_v55 = vadd.f32 %v3065_v18, %v6192_v1  ;;  %v3097_v5 = vmul.f32 %v6192_v1, %v6192_v1  ;;  %v6202_v4 = vmul.f32 %v2995_v62, %v2923_v63 }
 0x727   :  { %v3141_v23 = vadd.f32 %v3140_v46, %v3096_v53  ;;  %v3058_v60 = vadd.f32 %v3057_v48, %v6197_v35  ;;  %v3102_v42 = vmul.f32 %v6197_v35, %v6197_v35 }
 0x728   :  { %v3150_v10 = vadd.f32 %v3149_v24, %v3097_v5  ;;  %v3067_v21 = vadd.f32 %v3066_v55, %v6202_v4  ;;  %v3103_v50 = vmul.f32 %v6202_v4, %v6202_v4 }
 0x729   :  { %v3059_v59 = vrot.slane %v3058_v60, 4  ;;  %v3142_v41 = vadd.f32 %v3141_v23, %v3102_v42 }
 0x72a   :  { %v3068_v18 = vrot.slane %v3067_v21, 4  ;;  %v3151_v37 = vadd.f32 %v3150_v10, %v3103_v50 }
 0x72b   :  { %v3060_v17 = vadd.f32 %v3059_v59, %v3058_v60  ;;  %v3143_v7 = vrot.slane %v3142_v41, 4 }
 0x72c   :  { %v3069_v27 = vadd.f32 %v3068_v18, %v3067_v21  ;;  %v3152_v56 = vrot.slane %v3151_v37, 4 }
 0x72d   :  { %v3061_v46 = vrot.slane %v3060_v17, 2  ;;  %v3144_v14 = vadd.f32 %v3143_v7, %v3142_v41 }
 0x72e   :  { %v3070_v58 = vrot.slane %v3069_v27, 2  ;;  %v3153_v43 = vadd.f32 %v3152_v56, %v3151_v37 }
 0x72f   :  { %v3062_v47 = vadd.f32 %v3061_v46, %v3060_v17  ;;  %v3145_v63 = vrot.slane %v3144_v14, 2 }
 0x730   :  { %v3071_v24 = vadd.f32 %v3070_v58, %v3069_v27  ;;  %v3154_v62 = vrot.slane %v3153_v43, 2 }
 0x731   :  { %v3063_v48 = vrot.slane %v3062_v47, 1  ;;  %v3146_v53 = vadd.f32 %v3145_v63, %v3144_v14 }
 0x732   :  { %v3072_v55 = vrot.slane %v3071_v24, 1  ;;  %v3155_v5 = vadd.f32 %v3154_v62, %v3153_v43  ;;  %v2378_v62 = vld [vmem:[#allocation15 + $0x29] sm:$0x3f] }
 0x733   :  { %v3064_v44 = vadd.f32 %v3063_v48, %v3062_v47  ;;  %v3147_v23 = vrot.slane %v3146_v53, 1 }
 0x734   :  { %v3073_v42 = vadd.f32 %v3072_v55, %v3071_v24  ;;  %v3156_v10 = vrot.slane %v3155_v5, 1 }
 0x735   :  { %v3078_v60 = vmul.f32 0.03125, %v3064_v44  ;;  %v3148_v50 = vadd.f32 %v3147_v23, %v3146_v53  ;;  %v6510_v44 = vcombine.low %v6147_v0, %v6150_v40 }
 0x736   :  { %v3079_v21 = vmul.f32 0.03125, %v3073_v42  ;;  %v3157_v59 = vadd.f32 %v3156_v10, %v3155_v5 }
 0x737   :  { %v3162_v18 = vmul.f32 0.03125, %v3148_v50  ;;  %v3168_v41 = vmul.f32 %v3078_v60, %v3078_v60  ;;  %v3225_v63 = vrot.slane %v6510_v44, %v5554_v6 }
 0x738   :  { %v3163_v7 = vmul.f32 0.03125, %v3157_v59  ;;  %v3169_v37 = vmul.f32 %v3079_v21, %v3079_v21 }
 0x739   :  { %v3174_v17 = vsub.f32 %v3162_v18, %v3168_v41 }
 0x73a   :  { %v3175_v56 = vsub.f32 %v3163_v7, %v3169_v37 }
 0x73b   :  { %v3180_v27 = vadd.f32 1e-05, %v3174_v17 }
 0x73c   :  { %v3181_v46 = vadd.f32 1e-05, %v3175_v56 }
 0x73d   :  { %5055 = vrsqrt.f32 %v3180_v27 }
 0x73e   :  { %5057 = vrsqrt.f32 %v3181_v46 }
 0x747   :  { %v5056_v14 = vpop.eup %5055 }
 0x748   :  { %v5058_v58 = vpop.eup %5057 }
 0x749   :  { %v3196_v43 = vcombine.low %v5056_v14, %v5058_v58 }
 0x74b   :  { %v3217_v47 = vrot.slane %v3196_v43, %v5554_v6 }
 0x74d   :  { %v3232_v24 = vrot.slane %v3217_v47, %v5554_v6 }
 0x74f   :  { %v3233_v48 = vcombine.low %v3225_v63, %v3232_v24  ;;  %v2379_v24 = vld [vmem:[#allocation15 + $0x2f] sm:$0x3f] }
 0x751   :  { %v3235_v53 = vmul.f32 %v3233_v48, %v2378_v62 }
 0x753   :  { %v3240_v55 = vrot.slane %v3235_v53, %v5438_v38  ;;  %v3244_v5 = vrot.slane %v3235_v53, %v5444_v54  ;;  %v3248_v23 = vrot.slane %v3235_v53, %v5441_v52  ;;  %v3252_v42 = vrot.slane %v3235_v53, %v5447_v30 }
 0x754   :  { %v3256_v10 = vrot.slane %v3235_v53, %v5804_v3  ;;  %v3260_v50 = vrot.slane %v3235_v53, %v5807_v12 }
 0x755   :  { %v3267_v0 = vmul.f32 %v3240_v55, %v6130_v25  ;;  %v3268_v40 = vmul.f32 %v3244_v5, %v6138_v32  ;;  %v3269_v59 = vmul.f32 %v3248_v23, %v6132_v22  ;;  %v3270_v18 = vmul.f32 %v3252_v42, %v6142_v49 }
 0x756   :  { %v3271_v41 = vmul.f32 %v3256_v10, %v3078_v60  ;;  %v3272_v7 = vmul.f32 %v3260_v50, %v3079_v21  ;;  %v3325_v27 = vmul.f32 %v3256_v10, %v6170_v13  ;;  %v3326_v46 = vmul.f32 %v3260_v50, %v6172_v39 }
 0x757   :  { %v3279_v37 = vcombine.low %v3267_v0, %v3268_v40  ;;  %v3280_v17 = vcombine.low %v3269_v59, %v3270_v18  ;;  %v3331_v32 = vmul.f32 %v3256_v10, %v6174_v26  ;;  %v3332_v22 = vmul.f32 %v3260_v50, %v6176_v19 }
 0x758   :  { %v3281_v56 = vcombine.low %v3271_v41, %v3272_v7  ;;  %v3333_v60 = vmul.f32 %v3240_v55, %v6079_v36  ;;  %v3334_v21 = vmul.f32 %v3244_v5, %v6089_v11  ;;  %v3335_v43 = vmul.f32 %v3248_v23, %v6085_v2 }
 0x759   :  { %v3288_v14 = vrot.slane %v3279_v37, %v5554_v6  ;;  %v3295_v58 = vrot.slane %v3280_v17, %v5554_v6  ;;  %v3336_v39 = vmul.f32 %v3252_v42, %v6101_v31  ;;  %v3337_v47 = vmul.f32 %v3256_v10, %v6190_v45 }
 0x75a   :  { %v3302_v25 = vrot.slane %v3281_v56, %v5554_v6  ;;  %v3338_v44 = vmul.f32 %v3260_v50, %v6192_v1  ;;  %v3339_v26 = vmul.f32 %v3240_v55, %v6103_v61  ;;  %v3340_v19 = vmul.f32 %v3244_v5, %v6117_v29 }
 0x75b   :  { %v3303_v49 = vcombine.low %v3288_v14, %v3295_v58  ;;  %v3341_v36 = vmul.f32 %v3248_v23, %v6106_v16  ;;  %v3342_v11 = vmul.f32 %v3252_v42, %v6125_v9  ;;  %v3343_v2 = vmul.f32 %v3256_v10, %v6197_v35 }
 0x75c   :  { %v3317_v13 = vrot.slane %v3302_v25, %v5554_v6  ;;  %v3344_v62 = vmul.f32 %v3260_v50, %v6202_v4  ;;  %v3321_v45 = vmul.f32 %v3240_v55, %v6045_v15  ;;  %v3322_v1 = vmul.f32 %v3244_v5, %v6047_v20 }
 0x75d   :  { %v3310_v63 = vrot.slane %v3303_v49, %v5554_v6  ;;  %v3323_v53 = vmul.f32 %v3248_v23, %v6056_v57  ;;  %v3324_v61 = vmul.f32 %v3252_v42, %v6075_v34  ;;  %v3327_v29 = vmul.f32 %v3240_v55, %v6052_v8 }
 0x75e   :  { %v3328_v16 = vmul.f32 %v3244_v5, %v6054_v51  ;;  %v3329_v15 = vmul.f32 %v3248_v23, %v6062_v28  ;;  %v3330_v20 = vmul.f32 %v3252_v42, %v6083_v33 }
 0x75f   :  { %v3318_v31 = vcombine.low %v3310_v63, %v3317_v13 }
 0x761   :  { %v3320_v48 = vsub.f32 %v2379_v24, %v3318_v31 }
 0x763   :  { %v3349_v9 = vrot.slane %v3320_v48, %v5438_v38  ;;  %v3353_v35 = vrot.slane %v3320_v48, %v5444_v54  ;;  %v3357_v4 = vrot.slane %v3320_v48, %v5441_v52  ;;  %v3361_v10 = vrot.slane %v3320_v48, %v5447_v30 }
 0x764   :  { %v3365_v57 = vrot.slane %v3320_v48, %v5804_v3  ;;  %v3369_v34 = vrot.slane %v3320_v48, %v5807_v12 }
 0x765   :  { %v6261_v50 = vadd.f32 %v3349_v9, %v3321_v45  ;;  %v3377_v8 = vadd.f32 %v3353_v35, %v3322_v1  ;;  %v6263_v51 = vadd.f32 %v3357_v4, %v3323_v53  ;;  %v6265_v55 = vadd.f32 %v3361_v10, %v3324_v61 }
 0x766   :  { %v6267_v5 = vadd.f32 %v3365_v57, %v3325_v27  ;;  %v6269_v0 = vadd.f32 %v3369_v34, %v3326_v46  ;;  %v6271_v40 = vadd.f32 %v3349_v9, %v3327_v29  ;;  %v3383_v28 = vadd.f32 %v3353_v35, %v3328_v16 }
 0x767   :  { %v6273_v23 = vadd.f32 %v3357_v4, %v3329_v15  ;;  %v6275_v33 = vadd.f32 %v3361_v10, %v3330_v20  ;;  %v6277_v3 = vadd.f32 %v3365_v57, %v3331_v32  ;;  %v6279_v12 = vadd.f32 %v3369_v34, %v3332_v22 }
 0x768   :  { %v6281_v42 = vadd.f32 %v3349_v9, %v3333_v60  ;;  %v6283_v59 = vadd.f32 %v3353_v35, %v3334_v21  ;;  %v6285_v18 = vadd.f32 %v3357_v4, %v3335_v43  ;;  %v6287_v41 = vadd.f32 %v3361_v10, %v3336_v39 }
 0x769   :  { %v6289_v7 = vadd.f32 %v3365_v57, %v3337_v47  ;;  %v6291_v37 = vadd.f32 %v3369_v34, %v3338_v44  ;;  %v6293_v17 = vadd.f32 %v3349_v9, %v3339_v26  ;;  %v6295_v56 = vadd.f32 %v3353_v35, %v3340_v19 }
 0x76a   :  { %v6297_v27 = vadd.f32 %v3357_v4, %v3341_v36  ;;  %v6299_v46 = vadd.f32 %v3361_v10, %v3342_v11  ;;  %v6301_v14 = vadd.f32 %v3365_v57, %v3343_v2  ;;  %v6303_v58 = vadd.f32 %v3369_v34, %v3344_v62 }
 0x76b   :  { %5229 = dma.done.wait [#allocation7 + $0x2], 24576 }
 0x76c   :  { %5230 = vsyncadd [#allocation7 + $0x2], 4294942720  ;;  %v3599_v25 = vpack.c.bf16 %v3383_v28, %v3377_v8  ;;  %v3404_v32 = vld [vmem:[#allocation5 + $0x8] sm:$0xff]  ;;  %v3406_v22 = vld [vmem:[#allocation5 + $0x18] sm:$0xff] }
 0x76d   :  { %v3403_v49 = vld [vmem:[#allocation5] sm:$0xff]  ;;  %3631 = vmatprep.subr.bf16.mxu0 %v3404_v32  ;;  %3790 = vmatprep.subr.bf16.mxu1 %v3406_v22  ;;  %v3405_v60 = vld [vmem:[#allocation5 + $0x10] sm:$0xff]  ;;  %v3408_v21 = vld [vmem:[#allocation5 + $0x28] sm:$0xff] }
 0x76e   :  { %3663 = vmatprep.mubr.bf16.mxu0 %v3599_v25  ;;  %3822 = vmatprep.mubr.bf16.mxu1 %v3599_v25  ;;  %v3410_v43 = vld [vmem:[#allocation5 + $0x38] sm:$0xff]  ;;  %v3407_v13 = vld [vmem:[#allocation5 + $0x20] sm:$0xff]  ;;  %v3409_v39 = vld [vmem:[#allocation5 + $0x30] sm:$0xff] }
 0x76f   :  { %3632 = vmatpush1.bf16.msra.mxu0 %v3403_v49  ;;  %3791 = vmatpush1.bf16.msra.mxu1 %v3405_v60  ;;  %v3412_v47 = vld [vmem:[#allocation5 + $0x48] sm:$0xff]  ;;  %v3414_v44 = vld [vmem:[#allocation5 + $0x58] sm:$0xff]  ;;  %v3411_v63 = vld [vmem:[#allocation5 + $0x40] sm:$0xff] }
 0x770   :  { %3633 = vmatprep.subr.bf16.mxu0 %v3408_v21  ;;  %3792 = vmatprep.subr.bf16.mxu1 %v3410_v43  ;;  %v3413_v26 = vld [vmem:[#allocation5 + $0x50] sm:$0xff]  ;;  %v3416_v19 = vld [vmem:[#allocation5 + $0x68] sm:$0xff]  ;;  %v3418_v36 = vld [vmem:[#allocation5 + $0x78] sm:$0xff] }
 0x771   :  { %v3415_v24 = vld [vmem:[#allocation5 + $0x60] sm:$0xff]  ;;  %v3417_v11 = vld [vmem:[#allocation5 + $0x70] sm:$0xff]  ;;  %v3420_v2 = vld [vmem:[#allocation5 + $0x88] sm:$0xff] }
 0x772   :  { %v3422_v62 = vld [vmem:[#allocation5 + $0x98] sm:$0xff]  ;;  %v3419_v31 = vld [vmem:[#allocation5 + $0x80] sm:$0xff]  ;;  %v3421_v48 = vld [vmem:[#allocation5 + $0x90] sm:$0xff] }
 0x773   :  { %3634 = vmatpush1.bf16.msra.mxu0 %v3407_v13  ;;  %3793 = vmatpush1.bf16.msra.mxu1 %v3409_v39  ;;  %v3424_v45 = vld [vmem:[#allocation5 + $0xa8] sm:$0xff]  ;;  %v3426_v1 = vld [vmem:[#allocation5 + $0xb8] sm:$0xff]  ;;  %v3423_v53 = vld [vmem:[#allocation5 + $0xa0] sm:$0xff] }
 0x774   :  { %3635 = vmatprep.subr.bf16.mxu0 %v3412_v47  ;;  %3794 = vmatprep.subr.bf16.mxu1 %v3414_v44  ;;  %v3425_v61 = vld [vmem:[#allocation5 + $0xb0] sm:$0xff]  ;;  %v3428_v29 = vld [vmem:[#allocation5 + $0xc8] sm:$0xff]  ;;  %v3430_v16 = vld [vmem:[#allocation5 + $0xd8] sm:$0xff] }
 0x775   :  { %v3427_v9 = vld [vmem:[#allocation5 + $0xc0] sm:$0xff]  ;;  %v3429_v35 = vld [vmem:[#allocation5 + $0xd0] sm:$0xff]  ;;  %v3432_v4 = vld [vmem:[#allocation5 + $0xe8] sm:$0xff] }
 0x776   :  { %v3434_v10 = vld [vmem:[#allocation5 + $0xf8] sm:$0xff]  ;;  %v3431_v15 = vld [vmem:[#allocation5 + $0xe0] sm:$0xff]  ;;  %v3433_v20 = vld [vmem:[#allocation5 + $0xf0] sm:$0xff] }
 0x777   :  { %3636 = vmatpush1.bf16.msra.mxu0 %v3411_v63  ;;  %3795 = vmatpush1.bf16.msra.mxu1 %v3413_v26  ;;  %v3436_v57 = vld [vmem:[#allocation5 + $0x108] sm:$0xff]  ;;  %v3438_v34 = vld [vmem:[#allocation5 + $0x118] sm:$0xff]  ;;  %v3435_v8 = vld [vmem:[#allocation5 + $0x100] sm:$0xff] }
 0x778   :  { %3637 = vmatprep.subr.bf16.mxu0 %v3416_v19  ;;  %3796 = vmatprep.subr.bf16.mxu1 %v3418_v36  ;;  %v3437_v28 = vld [vmem:[#allocation5 + $0x110] sm:$0xff]  ;;  %v3440_v25 = vld [vmem:[#allocation5 + $0x128] sm:$0xff]  ;;  %v3442_v32 = vld [vmem:[#allocation5 + $0x138] sm:$0xff] }
 0x779   :  { %v3439_v22 = vld [vmem:[#allocation5 + $0x120] sm:$0xff]  ;;  %v3441_v49 = vld [vmem:[#allocation5 + $0x130] sm:$0xff]  ;;  %v3444_v60 = vld [vmem:[#allocation5 + $0x148] sm:$0xff] }
 0x77a   :  { %v3446_v21 = vld [vmem:[#allocation5 + $0x158] sm:$0xff]  ;;  %v3443_v43 = vld [vmem:[#allocation5 + $0x140] sm:$0xff]  ;;  %v3445_v13 = vld [vmem:[#allocation5 + $0x150] sm:$0xff] }
 0x77b   :  { %3638 = vmatpush1.bf16.msra.mxu0 %v3415_v24  ;;  %3797 = vmatpush1.bf16.msra.mxu1 %v3417_v11  ;;  %v3448_v39 = vld [vmem:[#allocation5 + $0x168] sm:$0xff]  ;;  %v3450_v47 = vld [vmem:[#allocation5 + $0x178] sm:$0xff]  ;;  %v3447_v44 = vld [vmem:[#allocation5 + $0x160] sm:$0xff] }
 0x77c   :  { %3639 = vmatprep.subr.bf16.mxu0 %v3420_v2  ;;  %3798 = vmatprep.subr.bf16.mxu1 %v3422_v62  ;;  %v3449_v63 = vld [vmem:[#allocation5 + $0x170] sm:$0xff]  ;;  %v3452_v26 = vld [vmem:[#allocation5 + $0x188] sm:$0xff]  ;;  %v3454_v19 = vld [vmem:[#allocation5 + $0x198] sm:$0xff] }
 0x77d   :  { %v3451_v36 = vld [vmem:[#allocation5 + $0x180] sm:$0xff]  ;;  %v3453_v24 = vld [vmem:[#allocation5 + $0x190] sm:$0xff]  ;;  %v3456_v11 = vld [vmem:[#allocation5 + $0x1a8] sm:$0xff] }
 0x77e   :  { %v3458_v2 = vld [vmem:[#allocation5 + $0x1b8] sm:$0xff]  ;;  %v3455_v62 = vld [vmem:[#allocation5 + $0x1a0] sm:$0xff] }
 0x77f   :  { %3640 = vmatpush1.bf16.msra.mxu0 %v3419_v31  ;;  %3799 = vmatpush1.bf16.msra.mxu1 %v3421_v48  ;;  %v3457_v31 = vld [vmem:[#allocation5 + $0x1b0] sm:$0xff]  ;;  %v3460_v48 = vld [vmem:[#allocation5 + $0x1c8] sm:$0xff] }
 0x780   :  { %3641 = vmatprep.subr.bf16.mxu0 %v3424_v45  ;;  %3800 = vmatprep.subr.bf16.mxu1 %v3426_v1  ;;  %v3462_v45 = vld [vmem:[#allocation5 + $0x1d8] sm:$0xff]  ;;  %v3459_v1 = vld [vmem:[#allocation5 + $0x1c0] sm:$0xff] }
 0x783   :  { %3642 = vmatpush1.bf16.msra.mxu0 %v3423_v53  ;;  %3801 = vmatpush1.bf16.msra.mxu1 %v3425_v61  ;;  %v3461_v53 = vld [vmem:[#allocation5 + $0x1d0] sm:$0xff]  ;;  %v3464_v61 = vld [vmem:[#allocation5 + $0x1e8] sm:$0xff] }
 0x784   :  { %3643 = vmatprep.subr.bf16.mxu0 %v3428_v29  ;;  %3802 = vmatprep.subr.bf16.mxu1 %v3430_v16  ;;  %v3466_v29 = vld [vmem:[#allocation5 + $0x1f8] sm:$0xff]  ;;  %v3463_v16 = vld [vmem:[#allocation5 + $0x1e0] sm:$0xff] }
 0x787   :  { %3644 = vmatpush1.bf16.msra.mxu0 %v3427_v9  ;;  %3803 = vmatpush1.bf16.msra.mxu1 %v3429_v35  ;;  %v3465_v9 = vld [vmem:[#allocation5 + $0x1f0] sm:$0xff]  ;;  %v3468_v35 = vld [vmem:[#allocation5 + $0x208] sm:$0xff] }
 0x788   :  { %3645 = vmatprep.subr.bf16.mxu0 %v3432_v4  ;;  %3804 = vmatprep.subr.bf16.mxu1 %v3434_v10  ;;  %v3470_v4 = vld [vmem:[#allocation5 + $0x218] sm:$0xff]  ;;  %v3598_v10 = vpack.c.bf16 %v6271_v40, %v6261_v50  ;;  %v3476_v50 = vld [vmem:[#allocation5 + $0x248] sm:$0xff] }
 0x789   :  { %v3478_v40 = vld [vmem:[#allocation5 + $0x258] sm:$0xff] }
 0x78b   :  { %3646 = vmatpush1.bf16.msra.mxu0 %v3431_v15  ;;  %3805 = vmatpush1.bf16.msra.mxu1 %v3433_v20  ;;  %v3467_v15 = vld [vmem:[#allocation5 + $0x200] sm:$0xff]  ;;  %v3469_v20 = vld [vmem:[#allocation5 + $0x210] sm:$0xff] }
 0x78c   :  { %3647 = vmatprep.subr.bf16.mxu0 %v3436_v57  ;;  %3806 = vmatprep.subr.bf16.mxu1 %v3438_v34  ;;  %v3472_v57 = vld [vmem:[#allocation5 + $0x228] sm:$0xff]  ;;  %v3474_v34 = vld [vmem:[#allocation5 + $0x238] sm:$0xff] }
 0x78f   :  { %3648 = vmatpush1.bf16.msra.mxu0 %v3435_v8  ;;  %3807 = vmatpush1.bf16.msra.mxu1 %v3437_v28  ;;  %v3605_v8 = vpack.c.bf16 %v6295_v56, %v6283_v59  ;;  %v3471_v28 = vld [vmem:[#allocation5 + $0x220] sm:$0xff]  ;;  %v3477_v56 = vld [vmem:[#allocation5 + $0x250] sm:$0xff] }
 0x790   :  { %3649 = vmatprep.subr.bf16.mxu0 %v3440_v25  ;;  %3808 = vmatprep.subr.bf16.mxu1 %v3442_v32  ;;  %v3473_v25 = vld [vmem:[#allocation5 + $0x230] sm:$0xff]  ;;  %v3604_v32 = vpack.c.bf16 %v6293_v17, %v6281_v42  ;;  %v3475_v59 = vld [vmem:[#allocation5 + $0x240] sm:$0xff]  ;;  %v3484_v42 = vld [vmem:[#allocation5 + $0x288] sm:$0xff] }
 0x791   :  { %v3486_v17 = vld [vmem:[#allocation5 + $0x298] sm:$0xff] }
 0x793   :  { %3650 = vmatpush1.bf16.msra.mxu0 %v3439_v22  ;;  %3809 = vmatpush1.bf16.msra.mxu1 %v3441_v49  ;;  %v3480_v22 = vld [vmem:[#allocation5 + $0x268] sm:$0xff]  ;;  %v3482_v49 = vld [vmem:[#allocation5 + $0x278] sm:$0xff] }
 0x794   :  { %3651 = vmatprep.subr.bf16.mxu0 %v3444_v60  ;;  %3810 = vmatprep.subr.bf16.mxu1 %v3446_v21  ;;  %v3601_v60 = vpack.c.bf16 %v6275_v33, %v6265_v55  ;;  %v3479_v21 = vld [vmem:[#allocation5 + $0x260] sm:$0xff]  ;;  %v3490_v55 = vld [vmem:[#allocation5 + $0x2b8] sm:$0xff] }
 0x795   :  { %v3487_v33 = vld [vmem:[#allocation5 + $0x2a0] sm:$0xff] }
 0x797   :  { %3652 = vmatpush1.bf16.msra.mxu0 %v3443_v43  ;;  %3811 = vmatpush1.bf16.msra.mxu1 %v3445_v13  ;;  %v3481_v43 = vld [vmem:[#allocation5 + $0x270] sm:$0xff]  ;;  %v3483_v13 = vld [vmem:[#allocation5 + $0x280] sm:$0xff] }
 0x798   :  { %3653 = vmatprep.subr.bf16.mxu0 %v3448_v39  ;;  %3812 = vmatprep.subr.bf16.mxu1 %v3450_v47  ;;  %v3485_v39 = vld [vmem:[#allocation5 + $0x290] sm:$0xff]  ;;  %v3488_v47 = vld [vmem:[#allocation5 + $0x2a8] sm:$0xff] }
 0x79b   :  { %3654 = vmatpush1.bf16.msra.mxu0 %v3447_v44  ;;  %3813 = vmatpush1.bf16.msra.mxu1 %v3449_v63  ;;  %v3489_v44 = vld [vmem:[#allocation5 + $0x2b0] sm:$0xff]  ;;  %v3492_v63 = vld [vmem:[#allocation5 + $0x2c8] sm:$0xff] }
 0x79c   :  { %3655 = vmatprep.subr.bf16.mxu0 %v3452_v26  ;;  %3814 = vmatprep.subr.bf16.mxu1 %v3454_v19  ;;  %v3494_v26 = vld [vmem:[#allocation5 + $0x2d8] sm:$0xff]  ;;  %v3491_v19 = vld [vmem:[#allocation5 + $0x2c0] sm:$0xff] }
 0x79f   :  { %3656 = vmatpush1.bf16.msra.mxu0 %v3451_v36  ;;  %3815 = vmatpush1.bf16.msra.mxu1 %v3453_v24  ;;  %v3493_v36 = vld [vmem:[#allocation5 + $0x2d0] sm:$0xff]  ;;  %v3496_v24 = vld [vmem:[#allocation5 + $0x2e8] sm:$0xff] }
 0x7a0   :  { %3657 = vmatprep.subr.bf16.mxu0 %v3456_v11  ;;  %3816 = vmatprep.subr.bf16.mxu1 %v3458_v2  ;;  %v3498_v11 = vld [vmem:[#allocation5 + $0x2f8] sm:$0xff]  ;;  %v3495_v2 = vld [vmem:[#allocation5 + $0x2e0] sm:$0xff] }
 0x7a3   :  { %3658 = vmatpush1.bf16.msra.mxu0 %v3455_v62  ;;  %3817 = vmatpush1.bf16.msra.mxu1 %v3457_v31  ;;  %v3497_v62 = vld [vmem:[#allocation5 + $0x2f0] sm:$0xff]  ;;  %v3500_v31 = vld [vmem:[#allocation5 + $0x308] sm:$0xff] }
 0x7a4   :  { %3659 = vmatprep.subr.bf16.mxu0 %v3460_v48  ;;  %3818 = vmatprep.subr.bf16.mxu1 %v3462_v45  ;;  %v3502_v48 = vld [vmem:[#allocation5 + $0x318] sm:$0xff]  ;;  %v3499_v45 = vld [vmem:[#allocation5 + $0x300] sm:$0xff] }
 0x7a7   :  { %3660 = vmatpush1.bf16.msra.mxu0 %v3459_v1  ;;  %3819 = vmatpush1.bf16.msra.mxu1 %v3461_v53  ;;  %v3501_v1 = vld [vmem:[#allocation5 + $0x310] sm:$0xff]  ;;  %v3504_v53 = vld [vmem:[#allocation5 + $0x328] sm:$0xff] }
 0x7a8   :  { %3661 = vmatprep.subr.bf16.mxu0 %v3464_v61  ;;  %3820 = vmatprep.subr.bf16.mxu1 %v3466_v29  ;;  %v3506_v61 = vld [vmem:[#allocation5 + $0x338] sm:$0xff]  ;;  %v3503_v29 = vld [vmem:[#allocation5 + $0x320] sm:$0xff] }
 0x7ab   :  { %3662 = vmatpush1.bf16.msra.mxu0 %v3463_v16  ;;  %3821 = vmatpush1.bf16.msra.mxu1 %v3465_v9  ;;  %v3505_v16 = vld [vmem:[#allocation5 + $0x330] sm:$0xff]  ;;  %v3508_v9 = vld [vmem:[#allocation5 + $0x348] sm:$0xff] }
 0x7ac   :  { %3684 = vmatprep.subr.bf16.mxu0 %v3468_v35  ;;  %3843 = vmatprep.subr.bf16.mxu1 %v3470_v4  ;;  %v3510_v35 = vld [vmem:[#allocation5 + $0x358] sm:$0xff]  ;;  %v3507_v4 = vld [vmem:[#allocation5 + $0x340] sm:$0xff] }
 0x7ae   :  { %3664 = vmatmul.mubr.bf16.vlgmr.msra.gmra.mrb[32].mxu0 %v3598_v10  ;;  %3823 = vmatmul.mubr.bf16.vlgmr.msra.gmra.mrb[32].mxu1 %v3598_v10  ;;  %v3509_v10 = vld [vmem:[#allocation5 + $0x350] sm:$0xff] }
 0x7af   :  { %3685 = vmatpush1.bf16.msra.mxu0 %v3467_v15  ;;  %3844 = vmatpush1.bf16.msra.mxu1 %v3469_v20  ;;  %v3512_v15 = vld [vmem:[#allocation5 + $0x368] sm:$0xff]  ;;  %v3514_v20 = vld [vmem:[#allocation5 + $0x378] sm:$0xff] }
 0x7b0   :  { %3686 = vmatprep.subr.bf16.mxu0 %v3472_v57  ;;  %3845 = vmatprep.subr.bf16.mxu1 %v3474_v34  ;;  %v3511_v57 = vld [vmem:[#allocation5 + $0x360] sm:$0xff]  ;;  %v3513_v34 = vld [vmem:[#allocation5 + $0x370] sm:$0xff] }
 0x7b1   :  { %3673 = vmatprep.mubr.bf16.mxu0 %v3605_v8  ;;  %3832 = vmatprep.mubr.bf16.mxu1 %v3605_v8  ;;  %v3516_v8 = vld [vmem:[#allocation5 + $0x388] sm:$0xff] }
 0x7b3   :  { %3687 = vmatpush1.bf16.msra.mxu0 %v3471_v28  ;;  %3846 = vmatpush1.bf16.msra.mxu1 %v3473_v25  ;;  %v3518_v28 = vld [vmem:[#allocation5 + $0x398] sm:$0xff]  ;;  %v3515_v25 = vld [vmem:[#allocation5 + $0x380] sm:$0xff] }
 0x7b4   :  { %3688 = vmatprep.subr.bf16.mxu0 %v3476_v50  ;;  %3847 = vmatprep.subr.bf16.mxu1 %v3478_v40  ;;  %v3517_v50 = vld [vmem:[#allocation5 + $0x390] sm:$0xff]  ;;  %v3520_v40 = vld [vmem:[#allocation5 + $0x3a8] sm:$0xff] }
 0x7b6   :  { %3674 = vmatmul.mubr.bf16.gmra.mrb[36].mxu0 %v3604_v32  ;;  %3833 = vmatmul.mubr.bf16.gmra.mrb[36].mxu1 %v3604_v32  ;;  %v3522_v32 = vld [vmem:[#allocation5 + $0x3b8] sm:$0xff] }
 0x7b7   :  { %3689 = vmatpush1.bf16.msra.mxu0 %v3475_v59  ;;  %3848 = vmatpush1.bf16.msra.mxu1 %v3477_v56  ;;  %v3519_v59 = vld [vmem:[#allocation5 + $0x3a0] sm:$0xff]  ;;  %v3521_v56 = vld [vmem:[#allocation5 + $0x3b0] sm:$0xff] }
 0x7b8   :  { %3690 = vmatprep.subr.bf16.mxu0 %v3480_v22  ;;  %3849 = vmatprep.subr.bf16.mxu1 %v3482_v49  ;;  %v3524_v22 = vld [vmem:[#allocation5 + $0x3c8] sm:$0xff]  ;;  %v3526_v49 = vld [vmem:[#allocation5 + $0x3d8] sm:$0xff] }
 0x7b9   :  { %3716 = vmatprep.mubr.bf16.mxu0 %v3601_v60  ;;  %3875 = vmatprep.mubr.bf16.mxu1 %v3601_v60  ;;  %v3523_v60 = vld [vmem:[#allocation5 + $0x3c0] sm:$0xff] }
 0x7bb   :  { %3691 = vmatpush1.bf16.msra.mxu0 %v3479_v21  ;;  %3850 = vmatpush1.bf16.msra.mxu1 %v3481_v43  ;;  %v3525_v21 = vld [vmem:[#allocation5 + $0x3d0] sm:$0xff]  ;;  %v3528_v43 = vld [vmem:[#allocation5 + $0x3e8] sm:$0xff] }
 0x7bc   :  { %3692 = vmatprep.subr.bf16.mxu0 %v3484_v42  ;;  %3851 = vmatprep.subr.bf16.mxu1 %v3486_v17  ;;  %v3530_v42 = vld [vmem:[#allocation5 + $0x3f8] sm:$0xff]  ;;  %v3527_v17 = vld [vmem:[#allocation5 + $0x3e0] sm:$0xff] }
 0x7bf   :  { %3693 = vmatpush1.bf16.msra.mxu0 %v3483_v13  ;;  %3852 = vmatpush1.bf16.msra.mxu1 %v3485_v39  ;;  %v3529_v13 = vld [vmem:[#allocation5 + $0x3f0] sm:$0xff]  ;;  %v3532_v39 = vld [vmem:[#allocation5 + $0x408] sm:$0xff] }
 0x7c0   :  { %3694 = vmatprep.subr.bf16.mxu0 %v3488_v47  ;;  %3853 = vmatprep.subr.bf16.mxu1 %v3490_v55  ;;  %v3534_v47 = vld [vmem:[#allocation5 + $0x418] sm:$0xff]  ;;  %v3600_v55 = vpack.c.bf16 %v6273_v23, %v6263_v51  ;;  %v3540_v51 = vld [vmem:[#allocation5 + $0x448] sm:$0xff] }
 0x7c1   :  { %v3542_v23 = vld [vmem:[#allocation5 + $0x458] sm:$0xff] }
 0x7c3   :  { %3695 = vmatpush1.bf16.msra.mxu0 %v3487_v33  ;;  %3854 = vmatpush1.bf16.msra.mxu1 %v3489_v44  ;;  %v3531_v33 = vld [vmem:[#allocation5 + $0x400] sm:$0xff]  ;;  %v3533_v44 = vld [vmem:[#allocation5 + $0x410] sm:$0xff] }
 0x7c4   :  { %3696 = vmatprep.subr.bf16.mxu0 %v3492_v63  ;;  %3855 = vmatprep.subr.bf16.mxu1 %v3494_v26  ;;  %v3536_v63 = vld [vmem:[#allocation5 + $0x428] sm:$0xff]  ;;  %v3538_v26 = vld [vmem:[#allocation5 + $0x438] sm:$0xff] }
 0x7c7   :  { %3697 = vmatpush1.bf16.msra.mxu0 %v3491_v19  ;;  %3856 = vmatpush1.bf16.msra.mxu1 %v3493_v36  ;;  %v3607_v19 = vpack.c.bf16 %v6299_v46, %v6287_v41  ;;  %v3535_v36 = vld [vmem:[#allocation5 + $0x420] sm:$0xff]  ;;  %v3541_v46 = vld [vmem:[#allocation5 + $0x450] sm:$0xff] }
 0x7c8   :  { %3698 = vmatprep.subr.bf16.mxu0 %v3496_v24  ;;  %3857 = vmatprep.subr.bf16.mxu1 %v3498_v11  ;;  %v3537_v24 = vld [vmem:[#allocation5 + $0x430] sm:$0xff]  ;;  %v3606_v11 = vpack.c.bf16 %v6297_v27, %v6285_v18  ;;  %v3539_v41 = vld [vmem:[#allocation5 + $0x440] sm:$0xff]  ;;  %v3548_v18 = vld [vmem:[#allocation5 + $0x488] sm:$0xff] }
 0x7c9   :  { %v3550_v27 = vld [vmem:[#allocation5 + $0x498] sm:$0xff] }
 0x7cb   :  { %3699 = vmatpush1.bf16.msra.mxu0 %v3495_v2  ;;  %3858 = vmatpush1.bf16.msra.mxu1 %v3497_v62  ;;  %v3544_v2 = vld [vmem:[#allocation5 + $0x468] sm:$0xff]  ;;  %v3546_v62 = vld [vmem:[#allocation5 + $0x478] sm:$0xff] }
 0x7cc   :  { %3700 = vmatprep.subr.bf16.mxu0 %v3500_v31  ;;  %3859 = vmatprep.subr.bf16.mxu1 %v3502_v48  ;;  %v3603_v31 = vpack.c.bf16 %v6279_v12, %v6269_v0  ;;  %v3543_v48 = vld [vmem:[#allocation5 + $0x460] sm:$0xff]  ;;  %v3554_v0 = vld [vmem:[#allocation5 + $0x4b8] sm:$0xff] }
 0x7cd   :  { %v3551_v12 = vld [vmem:[#allocation5 + $0x4a0] sm:$0xff] }
 0x7cf   :  { %3701 = vmatpush1.bf16.msra.mxu0 %v3499_v45  ;;  %3860 = vmatpush1.bf16.msra.mxu1 %v3501_v1  ;;  %v3545_v45 = vld [vmem:[#allocation5 + $0x470] sm:$0xff]  ;;  %v3547_v1 = vld [vmem:[#allocation5 + $0x480] sm:$0xff] }
 0x7d0   :  { %3702 = vmatprep.subr.bf16.mxu0 %v3504_v53  ;;  %3861 = vmatprep.subr.bf16.mxu1 %v3506_v61  ;;  %v3549_v53 = vld [vmem:[#allocation5 + $0x490] sm:$0xff]  ;;  %v3552_v61 = vld [vmem:[#allocation5 + $0x4a8] sm:$0xff] }
 0x7d3   :  { %3703 = vmatpush1.bf16.msra.mxu0 %v3503_v29  ;;  %3862 = vmatpush1.bf16.msra.mxu1 %v3505_v16  ;;  %v3553_v29 = vld [vmem:[#allocation5 + $0x4b0] sm:$0xff]  ;;  %v3556_v16 = vld [vmem:[#allocation5 + $0x4c8] sm:$0xff] }
 0x7d4   :  { %3704 = vmatprep.subr.bf16.mxu0 %v3508_v9  ;;  %3863 = vmatprep.subr.bf16.mxu1 %v3510_v35  ;;  %v3558_v9 = vld [vmem:[#allocation5 + $0x4d8] sm:$0xff]  ;;  %v3555_v35 = vld [vmem:[#allocation5 + $0x4c0] sm:$0xff] }
 0x7d7   :  { %3705 = vmatpush1.bf16.msra.mxu0 %v3507_v4  ;;  %3864 = vmatpush1.bf16.msra.mxu1 %v3509_v10  ;;  %v3557_v4 = vld [vmem:[#allocation5 + $0x4d0] sm:$0xff]  ;;  %v3560_v10 = vld [vmem:[#allocation5 + $0x4e8] sm:$0xff] }
 0x7d8   :  { %3706 = vmatprep.subr.bf16.mxu0 %v3512_v15  ;;  %3865 = vmatprep.subr.bf16.mxu1 %v3514_v20  ;;  %v3562_v15 = vld [vmem:[#allocation5 + $0x4f8] sm:$0xff]  ;;  %v3559_v20 = vld [vmem:[#allocation5 + $0x4e0] sm:$0xff] }
 0x7db   :  { %3707 = vmatpush1.bf16.msra.mxu0 %v3511_v57  ;;  %3866 = vmatpush1.bf16.msra.mxu1 %v3513_v34  ;;  %v3561_v57 = vld [vmem:[#allocation5 + $0x4f0] sm:$0xff]  ;;  %v3564_v34 = vld [vmem:[#allocation5 + $0x508] sm:$0xff] }
 0x7dc   :  { %3708 = vmatprep.subr.bf16.mxu0 %v3516_v8  ;;  %3867 = vmatprep.subr.bf16.mxu1 %v3518_v28  ;;  %v3566_v8 = vld [vmem:[#allocation5 + $0x518] sm:$0xff]  ;;  %v3563_v28 = vld [vmem:[#allocation5 + $0x500] sm:$0xff] }
 0x7df   :  { %3709 = vmatpush1.bf16.msra.mxu0 %v3515_v25  ;;  %3868 = vmatpush1.bf16.msra.mxu1 %v3517_v50  ;;  %v3565_v25 = vld [vmem:[#allocation5 + $0x510] sm:$0xff]  ;;  %v3568_v50 = vld [vmem:[#allocation5 + $0x528] sm:$0xff] }
 0x7e0   :  { %3710 = vmatprep.subr.bf16.mxu0 %v3520_v40  ;;  %3869 = vmatprep.subr.bf16.mxu1 %v3522_v32  ;;  %v3570_v40 = vld [vmem:[#allocation5 + $0x538] sm:$0xff]  ;;  %v3567_v32 = vld [vmem:[#allocation5 + $0x520] sm:$0xff] }
 0x7e3   :  { %3711 = vmatpush1.bf16.msra.mxu0 %v3519_v59  ;;  %3870 = vmatpush1.bf16.msra.mxu1 %v3521_v56  ;;  %v3569_v59 = vld [vmem:[#allocation5 + $0x530] sm:$0xff]  ;;  %v3572_v56 = vld [vmem:[#allocation5 + $0x548] sm:$0xff] }
 0x7e4   :  { %3712 = vmatprep.subr.bf16.mxu0 %v3524_v22  ;;  %3871 = vmatprep.subr.bf16.mxu1 %v3526_v49  ;;  %v3574_v22 = vld [vmem:[#allocation5 + $0x558] sm:$0xff]  ;;  %v3571_v49 = vld [vmem:[#allocation5 + $0x540] sm:$0xff] }
 0x7e7   :  { %3713 = vmatpush1.bf16.msra.mxu0 %v3523_v60  ;;  %3872 = vmatpush1.bf16.msra.mxu1 %v3525_v21  ;;  %v3573_v60 = vld [vmem:[#allocation5 + $0x550] sm:$0xff]  ;;  %v3576_v21 = vld [vmem:[#allocation5 + $0x568] sm:$0xff] }
 0x7e8   :  { %3714 = vmatprep.subr.bf16.mxu0 %v3528_v43  ;;  %3873 = vmatprep.subr.bf16.mxu1 %v3530_v42  ;;  %v3578_v43 = vld [vmem:[#allocation5 + $0x578] sm:$0xff]  ;;  %v3575_v42 = vld [vmem:[#allocation5 + $0x560] sm:$0xff] }
 0x7eb   :  { %3715 = vmatpush1.bf16.msra.mxu0 %v3527_v17  ;;  %3874 = vmatpush1.bf16.msra.mxu1 %v3529_v13  ;;  %v3577_v17 = vld [vmem:[#allocation5 + $0x570] sm:$0xff]  ;;  %v3580_v13 = vld [vmem:[#allocation5 + $0x588] sm:$0xff] }
 0x7ec   :  { %3737 = vmatprep.subr.bf16.mxu0 %v3532_v39  ;;  %3896 = vmatprep.subr.bf16.mxu1 %v3534_v47  ;;  %v3582_v39 = vld [vmem:[#allocation5 + $0x598] sm:$0xff]  ;;  %v3579_v47 = vld [vmem:[#allocation5 + $0x580] sm:$0xff] }
 0x7ee   :  { %3717 = vmatmul.mubr.bf16.vlgmr.msra.gmra.mrb[32].mxu0 %v3600_v55  ;;  %3876 = vmatmul.mubr.bf16.vlgmr.msra.gmra.mrb[32].mxu1 %v3600_v55  ;;  %v3581_v55 = vld [vmem:[#allocation5 + $0x590] sm:$0xff] }
 0x7ef   :  { %3738 = vmatpush1.bf16.msra.mxu0 %v3531_v33  ;;  %3897 = vmatpush1.bf16.msra.mxu1 %v3533_v44  ;;  %v3584_v33 = vld [vmem:[#allocation5 + $0x5a8] sm:$0xff]  ;;  %v3586_v44 = vld [vmem:[#allocation5 + $0x5b8] sm:$0xff] }
 0x7f0   :  { %3739 = vmatprep.subr.bf16.mxu0 %v3536_v63  ;;  %3898 = vmatprep.subr.bf16.mxu1 %v3538_v26  ;;  %v3583_v63 = vld [vmem:[#allocation5 + $0x5a0] sm:$0xff]  ;;  %v3585_v26 = vld [vmem:[#allocation5 + $0x5b0] sm:$0xff] }
 0x7f1   :  { %3726 = vmatprep.mubr.bf16.mxu0 %v3607_v19  ;;  %3885 = vmatprep.mubr.bf16.mxu1 %v3607_v19  ;;  %v3588_v19 = vld [vmem:[#allocation5 + $0x5c8] sm:$0xff] }
 0x7f3   :  { %3740 = vmatpush1.bf16.msra.mxu0 %v3535_v36  ;;  %3899 = vmatpush1.bf16.msra.mxu1 %v3537_v24  ;;  %v3590_v36 = vld [vmem:[#allocation5 + $0x5d8] sm:$0xff]  ;;  %v3587_v24 = vld [vmem:[#allocation5 + $0x5c0] sm:$0xff] }
 0x7f4   :  { %3741 = vmatprep.subr.bf16.mxu0 %v3540_v51  ;;  %3900 = vmatprep.subr.bf16.mxu1 %v3542_v23  ;;  %v3589_v51 = vld [vmem:[#allocation5 + $0x5d0] sm:$0xff]  ;;  %v3592_v23 = vld [vmem:[#allocation5 + $0x5e8] sm:$0xff] }
 0x7f6   :  { %3727 = vmatmul.mubr.bf16.gmra.mrb[36].mxu0 %v3606_v11  ;;  %3886 = vmatmul.mubr.bf16.gmra.mrb[36].mxu1 %v3606_v11  ;;  %v3594_v11 = vld [vmem:[#allocation5 + $0x5f8] sm:$0xff] }
 0x7f7   :  { %3742 = vmatpush1.bf16.msra.mxu0 %v3539_v41  ;;  %3901 = vmatpush1.bf16.msra.mxu1 %v3541_v46  ;;  %v3591_v41 = vld [vmem:[#allocation5 + $0x5e0] sm:$0xff]  ;;  %v3593_v46 = vld [vmem:[#allocation5 + $0x5f0] sm:$0xff] }
 0x7f8   :  { %3743 = vmatprep.subr.bf16.mxu0 %v3544_v2  ;;  %3902 = vmatprep.subr.bf16.mxu1 %v3546_v62  ;;  %v3602_v2 = vpack.c.bf16 %v6277_v3, %v6267_v5  ;;  %v3609_v62 = vpack.c.bf16 %v6303_v58, %v6291_v37 }
 0x7f9   :  { %3769 = vmatprep.mubr.bf16.mxu0 %v3603_v31  ;;  %3928 = vmatprep.mubr.bf16.mxu1 %v3603_v31  ;;  %v3608_v31 = vpack.c.bf16 %v6301_v14, %v6289_v7 }
 0x7fb   :  { %3744 = vmatpush1.bf16.msra.mxu0 %v3543_v48  ;;  %3903 = vmatpush1.bf16.msra.mxu1 %v3545_v45  ;;  %v3595_v48 = vld [vmem:[#allocation15 + $0x10] sm:$0xf] }
 0x7fc   :  { %3745 = vmatprep.subr.bf16.mxu0 %v3548_v18  ;;  %3904 = vmatprep.subr.bf16.mxu1 %v3550_v27  ;;  %v3614_v45 = vrot.slane %v3595_v48, %v5438_v38  ;;  %v3622_v18 = vrot.slane %v3595_v48, %v5441_v52  ;;  %v3618_v5 = vrot.slane %v3595_v48, %v5444_v54 }
 0x7fd   :  { %v6331_v3 = vrot.slane %v3595_v48, %v5447_v30 }
 0x7ff   :  { %3746 = vmatpush1.bf16.msra.mxu0 %v3547_v1  ;;  %3905 = vmatpush1.bf16.msra.mxu1 %v3549_v53 }
 0x800   :  { %3747 = vmatprep.subr.bf16.mxu0 %v3552_v61  ;;  %3906 = vmatprep.subr.bf16.mxu1 %v3554_v0 }
 0x803   :  { %3748 = vmatpush1.bf16.msra.mxu0 %v3551_v12  ;;  %3907 = vmatpush1.bf16.msra.mxu1 %v3553_v29 }
 0x804   :  { %3749 = vmatprep.subr.bf16.mxu0 %v3556_v16  ;;  %3908 = vmatprep.subr.bf16.mxu1 %v3558_v9 }
 0x807   :  { %3750 = vmatpush1.bf16.msra.mxu0 %v3555_v35  ;;  %3909 = vmatpush1.bf16.msra.mxu1 %v3557_v4 }
 0x808   :  { %3751 = vmatprep.subr.bf16.mxu0 %v3560_v10  ;;  %3910 = vmatprep.subr.bf16.mxu1 %v3562_v15 }
 0x80b   :  { %3752 = vmatpush1.bf16.msra.mxu0 %v3559_v20  ;;  %3911 = vmatpush1.bf16.msra.mxu1 %v3561_v57 }
 0x80c   :  { %3753 = vmatprep.subr.bf16.mxu0 %v3564_v34  ;;  %3912 = vmatprep.subr.bf16.mxu1 %v3566_v8 }
 0x80f   :  { %3754 = vmatpush1.bf16.msra.mxu0 %v3563_v28  ;;  %3913 = vmatpush1.bf16.msra.mxu1 %v3565_v25 }
 0x810   :  { %3755 = vmatprep.subr.bf16.mxu0 %v3568_v50  ;;  %3914 = vmatprep.subr.bf16.mxu1 %v3570_v40 }
 0x813   :  { %3756 = vmatpush1.bf16.msra.mxu0 %v3567_v32  ;;  %3915 = vmatpush1.bf16.msra.mxu1 %v3569_v59 }
 0x814   :  { %3757 = vmatprep.subr.bf16.mxu0 %v3572_v56  ;;  %3916 = vmatprep.subr.bf16.mxu1 %v3574_v22 }
 0x817   :  { %3758 = vmatpush1.bf16.msra.mxu0 %v3571_v49  ;;  %3917 = vmatpush1.bf16.msra.mxu1 %v3573_v60 }
 0x818   :  { %3759 = vmatprep.subr.bf16.mxu0 %v3576_v21  ;;  %3918 = vmatprep.subr.bf16.mxu1 %v3578_v43 }
 0x81b   :  { %3760 = vmatpush1.bf16.msra.mxu0 %v3575_v42  ;;  %3919 = vmatpush1.bf16.msra.mxu1 %v3577_v17 }
 0x81c   :  { %3761 = vmatprep.subr.bf16.mxu0 %v3580_v13  ;;  %3920 = vmatprep.subr.bf16.mxu1 %v3582_v39 }
 0x81f   :  { %3762 = vmatpush1.bf16.msra.mxu0 %v3579_v47  ;;  %3921 = vmatpush1.bf16.msra.mxu1 %v3581_v55 }
 0x820   :  { %3763 = vmatprep.subr.bf16.mxu0 %v3584_v33  ;;  %3922 = vmatprep.subr.bf16.mxu1 %v3586_v44 }
 0x823   :  { %3764 = vmatpush1.bf16.msra.mxu0 %v3583_v63  ;;  %3923 = vmatpush1.bf16.msra.mxu1 %v3585_v26 }
 0x824   :  { %3765 = vmatprep.subr.bf16.mxu0 %v3588_v19  ;;  %3924 = vmatprep.subr.bf16.mxu1 %v3590_v36 }
 0x827   :  { %3766 = vmatpush1.bf16.msra.mxu0 %v3587_v24  ;;  %3925 = vmatpush1.bf16.msra.mxu1 %v3589_v51 }
 0x828   :  { %3767 = vmatprep.subr.bf16.mxu0 %v3592_v23  ;;  %3926 = vmatprep.subr.bf16.mxu1 %v3594_v11 }
 0x82b   :  { %3768 = vmatpush1.bf16.msra.mxu0 %v3591_v41  ;;  %3927 = vmatpush1.bf16.msra.mxu1 %v3593_v46 }
 0x82e   :  { %3770 = vmatmul.mubr.bf16.vlgmr.msra.gmra.mrb[32].mxu0 %v3602_v2  ;;  %3929 = vmatmul.mubr.bf16.vlgmr.msra.gmra.mrb[32].mxu1 %v3602_v2 }
 0x82f   :  { %3779 = vmatprep.mubr.bf16.mxu0 %v3609_v62  ;;  %3938 = vmatprep.mubr.bf16.mxu1 %v3609_v62 }
 0x836   :  { %3780 = vmatmul.mubr.bf16.gmra.mrb[36].mxu0 %v3608_v31  ;;  %3939 = vmatmul.mubr.bf16.gmra.mrb[36].mxu1 %v3608_v31 }
 0x901   :  { %v3771_v37 = vpop.f32.mrb[32].mxu0  ;;  %v3930_v58 = vpop.f32.mrb[32].mxu1 }
 0x902   :  { %v4687_v27 = vadd.f32 %v3771_v37, %v3614_v45  ;;  %v4695_v1 = vadd.f32 %v3930_v58, %v3622_v18  ;;  %v3773_v53 = vpop.f32.mrb[33].mxu0  ;;  %v3932_v61 = vpop.f32.mrb[33].mxu1 }
 0x903   :  { %v4688_v0 = vadd.f32 %v3773_v53, %v3618_v5  ;;  %v4696_v7 = vadd.f32 %v3932_v61, %v6331_v3  ;;  %v3775_v14 = vpop.f32.mrb[34].mxu0  ;;  %v3934_v12 = vpop.f32.mrb[34].mxu1 }
 0x904   :  { %v3965_v29 = vmul.f32 0.70710677, %v4687_v27  ;;  %v3967_v16 = vmul.f32 0.70710677, %v4695_v1  ;;  %v4689_v4 = vadd.f32 %v3775_v14, %v3614_v45  ;;  %v4697_v10 = vadd.f32 %v3934_v12, %v3622_v18  ;;  %v3777_v15 = vpop.f32.mrb[35].mxu0  ;;  %v3936_v20 = vpop.f32.mrb[35].mxu1 }
 0x905   :  { %v3966_v9 = vmul.f32 0.70710677, %v4688_v0  ;;  %v3968_v35 = vmul.f32 0.70710677, %v4696_v7  ;;  %v4690_v57 = vadd.f32 %v3777_v15, %v3618_v5  ;;  %v4698_v34 = vadd.f32 %v3936_v20, %v6331_v3 }
 0x906   :  { %5059 = verf.f32 %v3965_v29  ;;  %v3969_v8 = vmul.f32 0.70710677, %v4689_v4  ;;  %v3949_v28 = vmul.f32 0.5, %v4687_v27  ;;  %v3971_v25 = vmul.f32 0.70710677, %v4697_v10 }
 0x907   :  { %5061 = verf.f32 %v3967_v16  ;;  %v3970_v50 = vmul.f32 0.70710677, %v4690_v57  ;;  %v3951_v32 = vmul.f32 0.5, %v4695_v1  ;;  %v3972_v59 = vmul.f32 0.70710677, %v4698_v34 }
 0x908   :  { %5063 = verf.f32 %v3966_v9  ;;  %v3950_v60 = vmul.f32 0.5, %v4688_v0  ;;  %v3952_v13 = vmul.f32 0.5, %v4696_v7  ;;  %v3953_v44 = vmul.f32 0.5, %v4689_v4 }
 0x909   :  { %5065 = verf.f32 %v3968_v35  ;;  %v3781_v40 = vpop.f32.mrb[36].mxu0  ;;  %v3940_v22 = vpop.f32.mrb[36].mxu1  ;;  %v3955_v63 = vmul.f32 0.5, %v4697_v10  ;;  %v3954_v36 = vmul.f32 0.5, %v4690_v57  ;;  %v3956_v2 = vmul.f32 0.5, %v4698_v34 }
 0x90a   :  { %5067 = verf.f32 %v3969_v8  ;;  %v4691_v56 = vadd.f32 %v3781_v40, %v3614_v45  ;;  %v3783_v49 = vpop.f32.mrb[37].mxu0  ;;  %v4699_v21 = vadd.f32 %v3940_v22, %v3622_v18  ;;  %v3942_v42 = vpop.f32.mrb[37].mxu1 }
 0x90b   :  { %5069 = verf.f32 %v3971_v25  ;;  %v4692_v43 = vadd.f32 %v3783_v49, %v3618_v5  ;;  %v3785_v17 = vpop.f32.mrb[38].mxu0  ;;  %v4700_v47 = vadd.f32 %v3942_v42, %v6331_v3  ;;  %v3944_v55 = vpop.f32.mrb[38].mxu1 }
 0x90c   :  { %5071 = verf.f32 %v3970_v50  ;;  %v3973_v39 = vmul.f32 0.70710677, %v4691_v56  ;;  %v3787_v33 = vpop.f32.mrb[39].mxu0  ;;  %v3975_v26 = vmul.f32 0.70710677, %v4699_v21  ;;  %v3946_v19 = vpop.f32.mrb[39].mxu1  ;;  %v4693_v23 = vadd.f32 %v3785_v17, %v3614_v45 }
 0x90d   :  { %5073 = verf.f32 %v3972_v59  ;;  %v3974_v24 = vmul.f32 0.70710677, %v4692_v43  ;;  %v3976_v51 = vmul.f32 0.70710677, %v4700_v47  ;;  %v4701_v11 = vadd.f32 %v3944_v55, %v3622_v18 }
 0x90e   :  { %5075 = verf.f32 %v3973_v39  ;;  %v6336_v41 = vadd.f32 %v3787_v33, %v3618_v5  ;;  %v3957_v62 = vmul.f32 0.5, %v4691_v56  ;;  %v3959_v31 = vmul.f32 0.5, %v4699_v21 }
 0x90f   :  { %5077 = verf.f32 %v3975_v26  ;;  %v6338_v58 = vmul.f32 0.5, %v4692_v43  ;;  %v3977_v27 = vmul.f32 0.70710677, %v4693_v23  ;;  %v6340_v61 = vmul.f32 0.5, %v4700_v47 }
 0x910   :  { %v5060_v46 = vpop.eup %5059  ;;  %5079 = verf.f32 %v3974_v24  ;;  %v3979_v0 = vmul.f32 0.70710677, %v4701_v11  ;;  %v6343_v45 = vadd.f32 %v3946_v19, %v6331_v3  ;;  %v3978_v14 = vmul.f32 0.70710677, %v6336_v41 }
 0x911   :  { %v5062_v48 = vpop.eup %5061  ;;  %v3997_v37 = vadd.f32 1.0, %v5060_v46  ;;  %5081 = verf.f32 %v3976_v51  ;;  %v3961_v9 = vmul.f32 0.5, %v4693_v23  ;;  %v3963_v15 = vmul.f32 0.5, %v4701_v11 }
 0x912   :  { %v5064_v1 = vpop.eup %5063  ;;  %v3999_v53 = vadd.f32 1.0, %v5062_v48  ;;  %5083 = verf.f32 %v3977_v27  ;;  %v3980_v8 = vmul.f32 0.70710677, %v6343_v45 }
 0x913   :  { %v5066_v18 = vpop.eup %5065  ;;  %v6345_v5 = vmul.f32 %v3997_v37, %v3949_v28  ;;  %v3998_v7 = vadd.f32 1.0, %v5064_v1  ;;  %5085 = verf.f32 %v3979_v0 }
 0x914   :  { %v5068_v12 = vpop.eup %5067  ;;  %v6348_v29 = vmul.f32 %v3999_v53, %v3951_v32  ;;  %v4000_v16 = vadd.f32 1.0, %v5066_v18  ;;  %5087 = verf.f32 %v3978_v14 }
 0x915   :  { %v5070_v35 = vpop.eup %5069  ;;  %v6350_v4 = vmul.f32 %v3998_v7, %v3950_v60  ;;  %v4001_v10 = vadd.f32 1.0, %v5068_v12  ;;  %v4069_v20 = vmul.f32 %v6345_v5, %v6345_v5  ;;  %5089 = verf.f32 %v3980_v8 }
 0x916   :  { %v5072_v3 = vpop.eup %5071  ;;  %v6354_v57 = vmul.f32 %v4000_v16, %v3952_v13  ;;  %v4003_v34 = vadd.f32 1.0, %v5070_v35  ;;  %v4071_v25 = vmul.f32 %v6348_v29, %v6348_v29 }
 0x917   :  { %v5074_v28 = vpop.eup %5073  ;;  %v4070_v50 = vmul.f32 %v6350_v4, %v6350_v4  ;;  %v6361_v40 = vmul.f32 %v4001_v10, %v3953_v44  ;;  %v4002_v32 = vadd.f32 1.0, %v5072_v3  ;;  %v3962_v3 = vmul.f32 0.5, %v6336_v41 }
 0x918   :  { %v5076_v59 = vpop.eup %5075  ;;  %v4072_v56 = vmul.f32 %v6354_v57, %v6354_v57  ;;  %v6365_v22 = vmul.f32 %v4003_v34, %v3955_v63  ;;  %v4004_v49 = vadd.f32 1.0, %v5074_v28  ;;  %v3964_v41 = vmul.f32 0.5, %v6343_v45 }
 0x919   :  { %v5078_v60 = vpop.eup %5077  ;;  %v4029_v21 = vadd.f32 %v6361_v40, %v6345_v5  ;;  %v4073_v43 = vmul.f32 %v6361_v40, %v6361_v40  ;;  %v6371_v42 = vmul.f32 %v4002_v32, %v3954_v36  ;;  %v4005_v17 = vadd.f32 1.0, %v5076_v59 }
 0x91a   :  { %v5080_v13 = vpop.eup %5079  ;;  %v4047_v39 = vadd.f32 %v6365_v22, %v6348_v29  ;;  %v4075_v47 = vmul.f32 %v6365_v22, %v6365_v22  ;;  %v6377_v55 = vmul.f32 %v4004_v49, %v3956_v2  ;;  %v4007_v33 = vadd.f32 1.0, %v5078_v60 }
 0x91b   :  { %v5082_v44 = vpop.eup %5081  ;;  %v4085_v63 = vadd.f32 %v4073_v43, %v4069_v20  ;;  %v4038_v26 = vadd.f32 %v6371_v42, %v6350_v4  ;;  %v4074_v19 = vmul.f32 %v6371_v42, %v6371_v42  ;;  %v6383_v36 = vmul.f32 %v4005_v17, %v3957_v62 }
 0x91c   :  { %v4103_v24 = vadd.f32 %v4075_v47, %v4071_v25  ;;  %v4056_v51 = vadd.f32 %v6377_v55, %v6354_v57  ;;  %v4076_v23 = vmul.f32 %v6377_v55, %v6377_v55  ;;  %v6389_v11 = vmul.f32 %v4007_v33, %v3959_v31  ;;  %v5084_v46 = vpop.eup %5083 }
 0x91d   :  { %v4094_v2 = vadd.f32 %v4074_v19, %v4070_v50  ;;  %v4030_v48 = vadd.f32 %v4029_v21, %v6383_v36  ;;  %v4077_v37 = vmul.f32 %v6383_v36, %v6383_v36  ;;  %v4006_v27 = vadd.f32 1.0, %v5080_v13  ;;  %v5086_v1 = vpop.eup %5085 }
 0x91e   :  { %v4112_v62 = vadd.f32 %v4076_v23, %v4072_v56  ;;  %v4048_v53 = vadd.f32 %v4047_v39, %v6389_v11  ;;  %v4079_v0 = vmul.f32 %v6389_v11, %v6389_v11  ;;  %v4008_v18 = vadd.f32 1.0, %v5082_v44  ;;  %v5088_v7 = vpop.eup %5087 }
 0x91f   :  { %v4086_v14 = vadd.f32 %v4085_v63, %v4077_v37  ;;  %v6398_v31 = vmul.f32 %v4006_v27, %v6338_v58  ;;  %v4009_v12 = vadd.f32 1.0, %v5084_v46  ;;  %v4011_v16 = vadd.f32 1.0, %v5086_v1  ;;  %v5090_v58 = vpop.eup %5089 }
 0x920   :  { %v4104_v35 = vadd.f32 %v4103_v24, %v4079_v0  ;;  %v6401_v10 = vmul.f32 %v4008_v18, %v6340_v61  ;;  %v4010_v20 = vadd.f32 1.0, %v5088_v7  ;;  %v4012_v39 = vadd.f32 1.0, %v5090_v58 }
 0x921   :  { %v4039_v34 = vadd.f32 %v4038_v26, %v6398_v31  ;;  %v4078_v8 = vmul.f32 %v6398_v31, %v6398_v31  ;;  %v6407_v28 = vmul.f32 %v4009_v12, %v3961_v9  ;;  %v6409_v25 = vmul.f32 %v4011_v16, %v3963_v15 }
 0x922   :  { %v4057_v50 = vadd.f32 %v4056_v51, %v6401_v10  ;;  %v4080_v32 = vmul.f32 %v6401_v10, %v6401_v10  ;;  %v6414_v61 = vmul.f32 %v4010_v20, %v3962_v3  ;;  %v6426_v24 = vmul.f32 %v4012_v39, %v3964_v41 }
 0x923   :  { %v4095_v59 = vadd.f32 %v4094_v2, %v4078_v8  ;;  %v4031_v56 = vadd.f32 %v4030_v48, %v6407_v28  ;;  %v4081_v49 = vmul.f32 %v6407_v28, %v6407_v28  ;;  %v4049_v9 = vadd.f32 %v4048_v53, %v6409_v25 }
 0x924   :  { %v4113_v15 = vadd.f32 %v4112_v62, %v4080_v32  ;;  %v4083_v60 = vmul.f32 %v6409_v25, %v6409_v25  ;;  %v4040_v21 = vadd.f32 %v4039_v34, %v6414_v61  ;;  %v4082_v43 = vmul.f32 %v6414_v61, %v6414_v61 }
 0x925   :  { %v4032_v17 = vrot.slane %v4031_v56, 4  ;;  %v4087_v13 = vadd.f32 %v4086_v14, %v4081_v49  ;;  %v4050_v45 = vrot.slane %v4049_v9, 4  ;;  %v4058_v27 = vadd.f32 %v4057_v50, %v6426_v24 }
 0x926   :  { %v4105_v47 = vadd.f32 %v4104_v35, %v4083_v60  ;;  %v4041_v33 = vrot.slane %v4040_v21, 4  ;;  %v4096_v44 = vadd.f32 %v4095_v59, %v4082_v43  ;;  %v4084_v0 = vmul.f32 %v6426_v24, %v6426_v24 }
 0x927   :  { %v4033_v63 = vadd.f32 %v4032_v17, %v4031_v56  ;;  %v4088_v26 = vrot.slane %v4087_v13, 4  ;;  %v4051_v19 = vadd.f32 %v4050_v45, %v4049_v9  ;;  %v4059_v12 = vrot.slane %v4058_v27, 4 }
 0x928   :  { %v4106_v51 = vrot.slane %v4105_v47, 4  ;;  %v4042_v23 = vadd.f32 %v4041_v33, %v4040_v21  ;;  %v4097_v46 = vrot.slane %v4096_v44, 4  ;;  %v4114_v20 = vadd.f32 %v4113_v15, %v4084_v0 }
 0x929   :  { %v4034_v2 = vrot.slane %v4033_v63, 2  ;;  %v4089_v48 = vadd.f32 %v4088_v26, %v4087_v13  ;;  %v4052_v37 = vrot.slane %v4051_v19, 2  ;;  %v4060_v32 = vadd.f32 %v4059_v12, %v4058_v27 }
 0x92a   :  { %v4107_v1 = vadd.f32 %v4106_v51, %v4105_v47  ;;  %v4043_v62 = vrot.slane %v4042_v23, 2  ;;  %v4098_v53 = vadd.f32 %v4097_v46, %v4096_v44  ;;  %v4115_v56 = vrot.slane %v4114_v20, 4 }
 0x92b   :  { %v4035_v18 = vadd.f32 %v4034_v2, %v4033_v63  ;;  %v4090_v7 = vrot.slane %v4089_v48, 2  ;;  %v4053_v14 = vadd.f32 %v4052_v37, %v4051_v19  ;;  %v4061_v21 = vrot.slane %v4060_v32, 2 }
 0x92c   :  { %v4108_v16 = vrot.slane %v4107_v1, 2  ;;  %v4044_v35 = vadd.f32 %v4043_v62, %v4042_v23  ;;  %v4099_v3 = vrot.slane %v4098_v53, 2  ;;  %v4116_v45 = vadd.f32 %v4115_v56, %v4114_v20 }
 0x92d   :  { %v4036_v34 = vrot.slane %v4035_v18, 1  ;;  %v4091_v8 = vadd.f32 %v4090_v7, %v4089_v48  ;;  %v4054_v58 = vrot.slane %v4053_v14, 1  ;;  %v4062_v15 = vadd.f32 %v4061_v21, %v4060_v32 }
 0x92e   :  { %v4109_v41 = vadd.f32 %v4108_v16, %v4107_v1  ;;  %v4045_v50 = vrot.slane %v4044_v35, 1  ;;  %v4100_v59 = vadd.f32 %v4099_v3, %v4098_v53  ;;  %v4117_v19 = vrot.slane %v4116_v45, 2 }
 0x92f   :  { %v4037_v49 = vadd.f32 %v4036_v34, %v4035_v18  ;;  %v4092_v9 = vrot.slane %v4091_v8, 1  ;;  %v4055_v60 = vadd.f32 %v4054_v58, %v4053_v14  ;;  %v4063_v2 = vrot.slane %v4062_v15, 1 }
 0x930   :  { %v4110_v43 = vrot.slane %v4109_v41, 1  ;;  %v4046_v17 = vadd.f32 %v4045_v50, %v4044_v35  ;;  %v4101_v13 = vrot.slane %v4100_v59, 1  ;;  %v4118_v1 = vadd.f32 %v4117_v19, %v4116_v45 }
 0x931   :  { %v4065_v39 = vmul.f32 0.03125, %v4037_v49  ;;  %v4093_v47 = vadd.f32 %v4092_v9, %v4091_v8  ;;  %v4067_v33 = vmul.f32 0.03125, %v4055_v60  ;;  %v4064_v53 = vadd.f32 %v4063_v2, %v4062_v15 }
 0x932   :  { %v4111_v44 = vadd.f32 %v4110_v43, %v4109_v41  ;;  %v4066_v63 = vmul.f32 0.03125, %v4046_v17  ;;  %v4102_v26 = vadd.f32 %v4101_v13, %v4100_v59  ;;  %v4119_v7 = vrot.slane %v4118_v1, 1  ;;  %v3596_v43 = vld [vmem:[#allocation15 + $0x35] sm:$0xf] }
 0x933   :  { %v4121_v51 = vmul.f32 0.03125, %v4093_v47  ;;  %v4125_v23 = vmul.f32 %v4065_v39, %v4065_v39  ;;  %v4127_v46 = vmul.f32 %v4067_v33, %v4067_v33  ;;  %v4068_v12 = vmul.f32 0.03125, %v4064_v53 }
 0x934   :  { %v4123_v48 = vmul.f32 0.03125, %v4111_v44  ;;  %v4122_v37 = vmul.f32 0.03125, %v4102_v26  ;;  %v4126_v27 = vmul.f32 %v4066_v63, %v4066_v63  ;;  %v4120_v35 = vadd.f32 %v4119_v7, %v4118_v1 }
 0x935   :  { %v4129_v62 = vsub.f32 %v4121_v51, %v4125_v23  ;;  %v4128_v3 = vmul.f32 %v4068_v12, %v4068_v12 }
 0x936   :  { %v4131_v0 = vsub.f32 %v4123_v48, %v4127_v46  ;;  %v4130_v18 = vsub.f32 %v4122_v37, %v4126_v27  ;;  %v4124_v34 = vmul.f32 0.03125, %v4120_v35 }
 0x937   :  { %v4133_v14 = vadd.f32 1e-05, %v4129_v62 }
 0x938   :  { %v4134_v16 = vadd.f32 1e-05, %v4130_v18  ;;  %v4135_v20 = vadd.f32 1e-05, %v4131_v0  ;;  %v4132_v8 = vsub.f32 %v4124_v34, %v4128_v3 }
 0x939   :  { %5091 = vrsqrt.f32 %v4133_v14 }
 0x93a   :  { %5093 = vrsqrt.f32 %v4134_v16  ;;  %v4136_v58 = vadd.f32 1e-05, %v4132_v8 }
 0x93b   :  { %5095 = vrsqrt.f32 %v4135_v20 }
 0x93c   :  { %5097 = vrsqrt.f32 %v4136_v58 }
 0x943   :  { %v5092_v32 = vpop.eup %5091 }
 0x944   :  { %v5094_v41 = vpop.eup %5093 }
 0x945   :  { %v4145_v50 = vcombine.low %v5092_v32, %v5094_v41  ;;  %v5096_v59 = vpop.eup %5095 }
 0x946   :  { %v5098_v56 = vpop.eup %5097 }
 0x947   :  { %v4153_v49 = vrot.slane %v4145_v50, %v5554_v6  ;;  %v4146_v9 = vcombine.low %v5096_v59, %v5098_v56 }
 0x949   :  { %v4160_v60 = vrot.slane %v4146_v9, %v5554_v6 }
 0x94b   :  { %v4161_v21 = vcombine.low %v4153_v49, %v4160_v60 }
 0x94d   :  { %v4168_v17 = vrot.slane %v4161_v21, %v5554_v6 }
 0x94f   :  { %v4170_v13 = vmul.f32 %v4168_v17, %v3596_v43 }
 0x951   :  { %v4175_v45 = vrot.slane %v4170_v13, %v5438_v38  ;;  %v4179_v47 = vrot.slane %v4170_v13, %v5444_v54  ;;  %v4183_v15 = vrot.slane %v4170_v13, %v5441_v52  ;;  %v4187_v44 = vrot.slane %v4170_v13, %v5447_v30 }
 0x953   :  { %v4192_v26 = vmul.f32 %v4175_v45, %v4065_v39  ;;  %v4193_v19 = vmul.f32 %v4179_v47, %v4066_v63  ;;  %v4194_v51 = vmul.f32 %v4183_v15, %v4067_v33  ;;  %v4195_v23 = vmul.f32 %v4187_v44, %v4068_v12 }
 0x954   :  { %v4226_v46 = vmul.f32 %v4175_v45, %v6345_v5  ;;  %v4227_v2 = vmul.f32 %v4179_v47, %v6350_v4  ;;  %v4228_v48 = vmul.f32 %v4183_v15, %v6348_v29  ;;  %v4229_v37 = vmul.f32 %v4187_v44, %v6354_v57 }
 0x955   :  { %v4200_v27 = vcombine.low %v4192_v26, %v4193_v19  ;;  %v4201_v1 = vcombine.low %v4194_v51, %v4195_v23  ;;  %v4230_v62 = vmul.f32 %v4175_v45, %v6361_v40  ;;  %v4231_v53 = vmul.f32 %v4179_v47, %v6371_v42 }
 0x956   :  { %v4232_v0 = vmul.f32 %v4183_v15, %v6365_v22  ;;  %v4233_v39 = vmul.f32 %v4187_v44, %v6377_v55  ;;  %v4234_v33 = vmul.f32 %v4175_v45, %v6383_v36  ;;  %v4235_v5 = vmul.f32 %v4179_v47, %v6398_v31  ;;  %v3597_v36 = vld [vmem:[#allocation15 + $0x39] sm:$0xf] }
 0x957   :  { %v4208_v4 = vrot.slane %v4200_v27, %v5554_v6  ;;  %v4215_v29 = vrot.slane %v4201_v1, %v5554_v6  ;;  %v4236_v57 = vmul.f32 %v4183_v15, %v6389_v11  ;;  %v4237_v63 = vmul.f32 %v4187_v44, %v6401_v10 }
 0x958   :  { %v4238_v40 = vmul.f32 %v4175_v45, %v6407_v28  ;;  %v4239_v42 = vmul.f32 %v4179_v47, %v6414_v61  ;;  %v4240_v22 = vmul.f32 %v4183_v15, %v6409_v25  ;;  %v4241_v55 = vmul.f32 %v4187_v44, %v6426_v24 }
 0x959   :  { %v4216_v18 = vcombine.low %v4208_v4, %v4215_v29 }
 0x95b   :  { %v4223_v31 = vrot.slane %v4216_v18, %v5554_v6 }
 0x95d   :  { %v4225_v7 = vsub.f32 %v3597_v36, %v4223_v31 }
 0x95f   :  { %v4246_v14 = vrot.slane %v4225_v7, %v5438_v38  ;;  %v4250_v12 = vrot.slane %v4225_v7, %v5444_v54  ;;  %v4254_v11 = vrot.slane %v4225_v7, %v5441_v52  ;;  %v4258_v10 = vrot.slane %v4225_v7, %v5447_v30 }
 0x961   :  { %v4263_v28 = vadd.f32 %v4246_v14, %v4226_v46  ;;  %v4264_v16 = vadd.f32 %v4250_v12, %v4227_v2  ;;  %v6461_v61 = vadd.f32 %v4254_v11, %v4228_v48  ;;  %v6463_v25 = vadd.f32 %v4258_v10, %v4229_v37 }
 0x962   :  { %v4267_v24 = vadd.f32 %v4246_v14, %v4230_v62  ;;  %v4268_v35 = vadd.f32 %v4250_v12, %v4231_v53  ;;  %v6465_v3 = vadd.f32 %v4254_v11, %v4232_v0  ;;  %v6467_v6 = vadd.f32 %v4258_v10, %v4233_v39 }
 0x963   :  { %v4271_v20 = vadd.f32 %v4246_v14, %v4234_v33  ;;  %v4272_v38 = vadd.f32 %v4250_v12, %v4235_v5  ;;  %v6469_v34 = vadd.f32 %v4254_v11, %v4236_v57  ;;  %v6471_v54 = vadd.f32 %v4258_v10, %v4237_v63 }
 0x964   :  { %v4275_v52 = vadd.f32 %v4246_v14, %v4238_v40  ;;  %v4276_v30 = vadd.f32 %v4250_v12, %v4239_v42  ;;  %v6473_v8 = vadd.f32 %v4254_v11, %v4240_v22  ;;  %v6475_v58 = vadd.f32 %v4258_v10, %v4241_v55 }
 0x965   :  { %5231 = dma.done.wait [#allocation7 + $0x3], 4096 }
 0x966   :  { %5232 = vsyncadd [#allocation7 + $0x3], 4294963200  ;;  %v4283_v32 = vpack.c.bf16 %v4268_v35, %v4264_v16  ;;  %v4298_v41 = vld [vmem:[#allocation6 + $0x40] sm:$0xff]  ;;  %v4299_v59 = vld [vmem:[#allocation6 + $0x48] sm:$0xff]  ;;  %v4282_v51 = vpack.c.bf16 %v4267_v24, %v4263_v28  ;;  %v4287_v23 = vpack.c.bf16 %v4276_v30, %v4272_v38  ;;  %v4286_v27 = vpack.c.bf16 %v4275_v52, %v4271_v20  ;;  %s5262_s6 = smov [#allocation16]  }
 0x967   :  { %v4290_v50 = vld [vmem:[#allocation6] sm:$0xff]  ;;  %4583 = vmatprep.subr.bf16.mxu0 %v4298_v41  ;;  %v4291_v56 = vld [vmem:[#allocation6 + $0x8] sm:$0xff]  ;;  %v4300_v49 = vld [vmem:[#allocation6 + $0x50] sm:$0xff]  ;;  %v4285_v1 = vpack.c.bf16 %v6467_v6, %v6463_v25  ;;  %v4284_v42 = vpack.c.bf16 %v6465_v3, %v6461_v61  ;;  %v4289_v22 = vpack.c.bf16 %v6475_v58, %v6471_v54  ;;  %v4288_v55 = vpack.c.bf16 %v6473_v8, %v6469_v34  ;;  %s4436_s19 = sshll.u32 %s5262_s6, 4  ;;  %s4437_s19 = int_to_ptr.vmem [resolvable:$true] %s4436_s19 }
 0x968   :  { %4361 = vmatprep.mubr.bf16.mxu0 %v4283_v32  ;;  %4584 = vmatpush3.bf16.msra.mxu0 %v4290_v50  ;;  %v4292_v9 = vld [vmem:[#allocation6 + $0x10] sm:$0xff]  ;;  %v4301_v60 = vld [vmem:[#allocation6 + $0x58] sm:$0xff]  ;;  %v4302_v43 = vld [vmem:[#allocation6 + $0x60] sm:$0xff]  ;;  %s5197_s25 = scalar_lea.vmem %s4437_s19, 512  ;;  %p5202_p8 = scmp.lt.s32.totalorder %s4437_s19, %s4437_s19 }
 0x969   :  { %4585 = vmatprep.subr.bf16.mxu0 %v4299_v59  ;;  %v4293_v21 = vld [vmem:[#allocation6 + $0x18] sm:$0xff]  ;;  %v4294_v17 = vld [vmem:[#allocation6 + $0x20] sm:$0xff]  ;;  %v4303_v13 = vld [vmem:[#allocation6 + $0x68] sm:$0xff]  ;;  %p5198_p7 = scmp.ne.s32.totalorder %s4437_s19, %s5197_s25  ;;  %p5203_p9 = scmp.lt.s32.totalorder %s5197_s25, %s5197_s25 }
 0x96a   :  { %v4295_v45 = vld [vmem:[#allocation6 + $0x28] sm:$0xff]  ;;  %v4304_v47 = vld [vmem:[#allocation6 + $0x70] sm:$0xff]  ;;  %v4305_v44 = vld [vmem:[#allocation6 + $0x78] sm:$0xff] }
 0x96b   :  { %v4296_v15 = vld [vmem:[#allocation6 + $0x30] sm:$0xff]  ;;  %v4297_v26 = vld [vmem:[#allocation6 + $0x38] sm:$0xff]  ;;  %v4314_v19 = vld [vmem:[#allocation6 + $0xc0] sm:$0xff]  ;;  %p5204_p10 = por %p5203_p9, %p5202_p8 }
 0x96c   :  { %4586 = vmatpush3.bf16.msra.mxu0 %v4291_v56  ;;  %v4306_v46 = vld [vmem:[#allocation6 + $0x80] sm:$0xff]  ;;  %v4315_v2 = vld [vmem:[#allocation6 + $0xc8] sm:$0xff]  ;;  %v4316_v37 = vld [vmem:[#allocation6 + $0xd0] sm:$0xff] }
 0x96d   :  { %4587 = vmatprep.subr.bf16.mxu0 %v4300_v49  ;;  %v4307_v48 = vld [vmem:[#allocation6 + $0x88] sm:$0xff]  ;;  %v4308_v62 = vld [vmem:[#allocation6 + $0x90] sm:$0xff]  ;;  %v4317_v53 = vld [vmem:[#allocation6 + $0xd8] sm:$0xff]  ;;  %p5205_p11 = pnand %p5204_p10, %p5198_p7 }
 0x96e   :  { %v4309_v0 = vld [vmem:[#allocation6 + $0x98] sm:$0xff]  ;;  %v4318_v39 = vld [vmem:[#allocation6 + $0xe0] sm:$0xff]  ;;  %v4319_v5 = vld [vmem:[#allocation6 + $0xe8] sm:$0xff] }
 0x96f   :  { %v4310_v33 = vld [vmem:[#allocation6 + $0xa0] sm:$0xff]  ;;  %v4311_v4 = vld [vmem:[#allocation6 + $0xa8] sm:$0xff]  ;;  %v4320_v29 = vld [vmem:[#allocation6 + $0xf0] sm:$0xff] }
 0x970   :  { %4588 = vmatpush3.bf16.msra.mxu0 %v4292_v9  ;;  %v4312_v57 = vld [vmem:[#allocation6 + $0xb0] sm:$0xff]  ;;  %v4321_v63 = vld [vmem:[#allocation6 + $0xf8] sm:$0xff]  ;;  %v4578_v24 = vld [vmem:[#allocation15 + $0x14] ss:$0 sm:$0xff] }
 0x971   :  { %4589 = vmatprep.subr.bf16.mxu0 %v4301_v60  ;;  %v4313_v40 = vld [vmem:[#allocation6 + $0xb8] sm:$0xff] }
 0x974   :  { %4590 = vmatpush3.bf16.msra.mxu0 %v4293_v21 }
 0x975   :  { %4591 = vmatprep.subr.bf16.mxu0 %v4302_v43 }
 0x978   :  { %4592 = vmatpush3.bf16.msra.mxu0 %v4294_v17 }
 0x979   :  { %4593 = vmatprep.subr.bf16.mxu0 %v4303_v13 }
 0x97c   :  { %4594 = vmatpush3.bf16.msra.mxu0 %v4295_v45 }
 0x97d   :  { %4595 = vmatprep.subr.bf16.mxu0 %v4304_v47 }
 0x980   :  { %4596 = vmatpush3.bf16.msra.mxu0 %v4296_v15 }
 0x981   :  { %4597 = vmatprep.subr.bf16.mxu0 %v4305_v44 }
 0x984   :  { %4598 = vmatpush3.bf16.msra.mxu0 %v4297_v26 }
 0x985   :  { %4611 = vmatprep.subr.bf16.mxu0 %v4314_v19 }
 0x987   :  { %4362 = vmatmul.mubr.bf16.vlgmr.msra.gmra.mrb[40].mxu0 %v4282_v51 }
 0x988   :  { %4612 = vmatpush3.bf16.msra.mxu0 %v4306_v46  ;;  %4369 = vmatprep.mubr.bf16.mxu0 %v4287_v23 }
 0x989   :  { %4613 = vmatprep.subr.bf16.mxu0 %v4315_v2 }
 0x98c   :  { %4614 = vmatpush3.bf16.msra.mxu0 %v4307_v48 }
 0x98d   :  { %4615 = vmatprep.subr.bf16.mxu0 %v4316_v37 }
 0x98f   :  { %4370 = vmatmul.mubr.bf16.gmra.mrb[44].mxu0 %v4286_v27 }
 0x990   :  { %4616 = vmatpush3.bf16.msra.mxu0 %v4308_v62  ;;  %4410 = vmatprep.mubr.bf16.mxu0 %v4285_v1 }
 0x991   :  { %4617 = vmatprep.subr.bf16.mxu0 %v4317_v53 }
 0x994   :  { %4618 = vmatpush3.bf16.msra.mxu0 %v4309_v0 }
 0x995   :  { %4619 = vmatprep.subr.bf16.mxu0 %v4318_v39 }
 0x998   :  { %4620 = vmatpush3.bf16.msra.mxu0 %v4310_v33 }
 0x999   :  { %4621 = vmatprep.subr.bf16.mxu0 %v4319_v5 }
 0x99c   :  { %4622 = vmatpush3.bf16.msra.mxu0 %v4311_v4 }
 0x99d   :  { %4623 = vmatprep.subr.bf16.mxu0 %v4320_v29 }
 0x9a0   :  { %4624 = vmatpush3.bf16.msra.mxu0 %v4312_v57 }
 0x9a1   :  { %4625 = vmatprep.subr.bf16.mxu0 %v4321_v63 }
 0x9a4   :  { %4626 = vmatpush3.bf16.msra.mxu0 %v4313_v40 }
 0x9a7   :  { %4411 = vmatmul.mubr.bf16.vlgmr.msra.gmra.mrb[48].mxu0 %v4284_v42 }
 0x9a8   :  { %4418 = vmatprep.mubr.bf16.mxu0 %v4289_v22 }
 0x9af   :  { %4419 = vmatmul.mubr.bf16.gmra.mrb[52].mxu0 %v4288_v55 }
 0xa5a   :  { %v4599_v18 = vpop.f32.mrb[40].mxu0 }
 0xa5b   :  { %v4600_v36 = vpop.f32.mrb[41].mxu0 }
 0xa5c   :  { %v4601_v31 = vadd.f32 %v4600_v36, %v4599_v18  ;;  %v4602_v7 = vpop.f32.mrb[42].mxu0 }
 0xa5d   :  { %v4603_v14 = vpop.f32.mrb[43].mxu0 }
 0xa5e   :  { %v4604_v12 = vadd.f32 %v4603_v14, %v4602_v7  ;;  %v4364_v6 = vadd.f32 %v4601_v31, %v4578_v24 }
 0xa60   :  { %v4367_v54 = vadd.f32 %v4604_v12, %v4578_v24 }
 0xa62   :  { %v4605_v11 = vpop.f32.mrb[44].mxu0 }
 0xa63   :  { %v4606_v10 = vpop.f32.mrb[45].mxu0 }
 0xa64   :  { %v4607_v28 = vadd.f32 %v4606_v10, %v4605_v11  ;;  %v4608_v16 = vpop.f32.mrb[46].mxu0 }
 0xa65   :  { %v4609_v61 = vpop.f32.mrb[47].mxu0 }
 0xa66   :  { %v4610_v25 = vadd.f32 %v4609_v61, %v4608_v16  ;;  %v4372_v41 = vadd.f32 %v4607_v28, %v4578_v24 }
 0xa68   :  { %v4375_v49 = vadd.f32 %v4610_v25, %v4578_v24 }
 0xa7a   :  { %v4627_v35 = vpop.f32.mrb[48].mxu0 }
 0xa7b   :  { %v4628_v3 = vpop.f32.mrb[49].mxu0 }
 0xa7c   :  { %v4629_v20 = vadd.f32 %v4628_v3, %v4627_v35  ;;  %v4630_v38 = vpop.f32.mrb[50].mxu0 }
 0xa7d   :  { %v4631_v34 = vpop.f32.mrb[51].mxu0 }
 0xa7e   :  { %v4413_v52 = vadd.f32 %v4629_v20, %v4364_v6  ;;  %v4632_v30 = vadd.f32 %v4631_v34, %v4630_v38 }
 0xa80   :  { %4427 = vst [vmem:[#allocation16] sm:$0xff] %v4413_v52  ;;  %v4416_v8 = vadd.f32 %v4632_v30, %v4367_v54 }
 0xa82   :  { %4428 = vst [vmem:[#allocation16 + $0x8] sm:$0xff] %v4416_v8  ;;  %v4633_v58 = vpop.f32.mrb[52].mxu0 }
 0xa83   :  { %v4634_v32 = vpop.f32.mrb[53].mxu0 }
 0xa84   :  { %v4635_v50 = vadd.f32 %v4634_v32, %v4633_v58  ;;  %v4636_v59 = vpop.f32.mrb[54].mxu0 }
 0xa85   :  { %v4637_v56 = vpop.f32.mrb[55].mxu0 }
 0xa86   :  { %v4421_v9 = vadd.f32 %v4635_v50, %v4372_v41  ;;  %v4638_v60 = vadd.f32 %v4637_v56, %v4636_v59 }
 0xa88   :  { %4429 = vst [vmem:[#allocation16 + $0x10] sm:$0xff] %v4421_v9  ;;  %v4424_v21 = vadd.f32 %v4638_v60, %v4375_v49 }
 0xa8a   :  { %4430 = vst [vmem:[#allocation16 + $0x18] sm:$0xff] %v4424_v21 }
 0xa8b   :  { %5208 = shalt.err (!%p5205_p11)
}
 0xa8c   :  { %s5209_s29 = scalar_lea.hbm %s6508_s8, 512 }
 0xa8d   :  { %p5210_p12 = scmp.ne.s32.totalorder %s6508_s8, %s5209_s29  ;;  %p5213_p13 = scmp.lt.u32.totalorder %s5209_s29, %s6508_s8 }
 0xa8f   :  { %p5215_p0 = pnand %p5213_p13, %p5210_p12 }
 0xa91   :  { %5218 = shalt.err (!%p5215_p0)
}
 0xa92   :  { %4442 = dma.vmem_to_hbm [thread:$0]  %s4437_s19, 512, %s6508_s8, [#allocation10], %s5240_s0, %s5240_s0, %s5241_s17  }
 0xa93   :  { %5233 = dma.done.wait [#allocation10], 512  }
 0xa94   :  { %5234 = vsyncadd [#allocation10], 4294966784 }
 0xa95   :  { %4446 = vsyncpa [#allocation9], 1 }
 0xa96   :  { %4447 = vsyncpa [#allocation14], 1 }
 0xa97   :  { %4448 = vsyncpa [#allocation10], 1 }
 0xa98   :  { %4449 = vsyncpa [#allocation11], 1 }
 0xa99   :  { %4450 = vsyncmov [#allocation7] }
 0xa9c   :  { %s4451_s10 = vpop.sfrf %4450 }
 0xa9d   :  { %p4579_p1 = scmp.ne.s32.totalorder %s4451_s10, 0 }
 0xa9f   :  { %4455 = shalt.err (%p4579_p1)  }
 0xaa0   :  { %4457 = vsyncmov [#allocation7 + $0x1] }
 0xaa3   :  { %s4458_s11 = vpop.sfrf %4457 }
 0xaa4   :  { %p4580_p2 = scmp.ne.s32.totalorder %s4458_s11, 0 }
 0xaa6   :  { %4462 = shalt.err (%p4580_p2)  }
 0xaa7   :  { %4464 = vsyncmov [#allocation7 + $0x2] }
 0xaaa   :  { %s4465_s12 = vpop.sfrf %4464 }
 0xaab   :  { %p4581_p3 = scmp.ne.s32.totalorder %s4465_s12, 0 }
 0xaad   :  { %4469 = shalt.err (%p4581_p3)  }
 0xaae   :  { %4471 = vsyncmov [#allocation7 + $0x3] }
 0xab1   :  { %s4472_s8 = vpop.sfrf %4471 }
 0xab2   :  { %p4582_p4 = scmp.ne.s32.totalorder %s4472_s8, 0 }
 0xab4   :  { %4476 = shalt.err (%p4582_p4)  }

</bundles_post_ra>
